<compile_context>
chip_gen: v7x
topology: tpu7x:2x2x1
jax: 0.10.0
libtpu: 0.0.40
codegen_flags: <defaults>
</compile_context>

<pallas_src>
import jax
import jax.numpy as jnp
import numpy as np
from jax.experimental import pallas as pl
from jax.experimental.pallas import tpu as pltpu

JOINTS = 22
NODE_N = 3 * JOINTS          # 66
INPUT_FEATURE = 8            # dct_n (small)
GC1_OUT = 128                # hard-coded in the module
GA1_OUT = 3 * 128            # 384
HIDDEN = 256                 # forced: concat of 128 + 128
NUM_STAGE = 1
BATCH = 2
LRELU_ALPHA = 0.2
BN_EPS = 1e-5


# --------------------------------------------------------------------------
# Fused Pallas kernel: one grid step == one batch element, everything in VMEM
# --------------------------------------------------------------------------
def fused_kernel(x_ref, x22_ref,
                 gc1_att_ref, gc1_w_ref, bn1_s_ref, bn1_sh_ref,
                 ga1_w_ref, a1_ref, a2_ref, adj_ref, ba1_s_ref, ba1_sh_ref,
                 perm_ref,
                 w1_ref, att1_ref, s1_ref, sh1_ref,
                 w2_ref, att2_ref, s2_ref, sh2_ref,
                 gc7_w_ref, gc7_att_ref, gc7_b_ref,
                 o_ref, cat_ref):
    f32 = jnp.float32
    x = x_ref[0]                                                       # (66, 8)

    # ---- gc1 -> bn1(folded; gc1 bias folded into shift) -> tanh -----------
    # reassociated: (att @ x) @ W   (Fin=8 << Fout=128)
    ax = jnp.dot(gc1_att_ref[...], x, preferred_element_type=f32)      # (66, 8)
    y1 = jnp.dot(ax, gc1_w_ref[...], preferred_element_type=f32)       # (66, 128)
    y1 = jnp.tanh(y1 * bn1_s_ref[...] + bn1_sh_ref[...])

    # ---- ga1 (GraphAttentionLayer, concat=True, dropout=0) -> ba1 -> tanh -
    h = x22_ref[0]                                                     # (22, 24)
    wh = jnp.dot(h, ga1_w_ref[...], preferred_element_type=f32)        # (22, 384)
    # e[i, j] = leakyrelu( (wh[i]·a1) + (wh[j]·a2) )
    e1 = jnp.sum(wh * a1_ref[...], axis=-1, keepdims=True)             # (22, 1) VPU+XLU
    e2 = jax.lax.dot_general(a2_ref[...], wh, (((1,), (1,)), ((), ())),
                             preferred_element_type=f32)               # (1, 22) MXU
    e = e1 + e2                                                        # (22, 22)
    e = jnp.where(e > 0, e, LRELU_ALPHA * e)                           # LeakyReLU
    e = jnp.where(adj_ref[...] > 0, e, -9e15)                          # adjacency mask
    e = e - jnp.max(e, axis=-1, keepdims=True)                         # stable softmax
    p = jnp.exp(e)
    attn = p * pl.reciprocal(jnp.sum(p, axis=-1, keepdims=True), approx=False)
    hp = jnp.dot(attn, wh, preferred_element_type=f32)                 # (22, 384)
    hp = jnp.where(hp > 0, hp, jnp.exp(hp) - 1.0)                      # ELU (concat=True)
    y2 = jnp.tanh(hp * ba1_s_ref[...] + ba1_sh_ref[...])               # (22, 384)

    # ---- row-major view (22,384) -> (66,128) via 3 permutation matmuls ----
    # (avoids an in-kernel lane->sublane relayout; P_r[3j+r, j] = 1)
    y2r = (jnp.dot(perm_ref[0], y2[:, 0:128], preferred_element_type=f32)
           + jnp.dot(perm_ref[1], y2[:, 128:256], preferred_element_type=f32)
           + jnp.dot(perm_ref[2], y2[:, 256:384], preferred_element_type=f32))

    # ---- concat([y2_view, y1], axis=-1): 128-lane-aligned halves -> unmasked vst
    cat_ref[:, 0:GC1_OUT] = y2r
    cat_ref[:, GC1_OUT:HIDDEN] = y1

    # ---- GC_Blocks: 2x (gcn -> bn(folded) -> tanh) + residual --------------
    for r in range(NUM_STAGE):                                         # static unroll
        yin = cat_ref[...]                                             # (66, 256)
        t = jnp.dot(yin, w1_ref[r], preferred_element_type=f32)
        t = jnp.dot(att1_ref[r], t, preferred_element_type=f32)
        t = jnp.tanh(t * s1_ref[r] + sh1_ref[r])
        t = jnp.dot(t, w2_ref[r], preferred_element_type=f32)
        t = jnp.dot(att2_ref[r], t, preferred_element_type=f32)
        t = jnp.tanh(t * s2_ref[r] + sh2_ref[r])
        cat_ref[...] = t + yin

    # ---- gc7 + residual with module input (keep att@(y@W): Fout=8) ---------
    yv = cat_ref[...]
    g = jnp.dot(yv, gc7_w_ref[...], preferred_element_type=f32)        # (66, 8)
    g = jnp.dot(gc7_att_ref[...], g, preferred_element_type=f32)       # (66, 8)
    o_ref[0] = g + gc7_b_ref[...] + x


# --------------------------------------------------------------------------
# pallas_call wrapper
# --------------------------------------------------------------------------
def _const_spec(shape):
    n = len(shape)
    return pl.BlockSpec(tuple(shape), lambda i, _n=n: (0,) * _n)


def _batch_spec(shape):
    n = len(shape)
    return pl.BlockSpec((1,) + tuple(shape[1:]),
                        lambda i, _n=n: (i,) + (0,) * (_n - 1))


def st_gcna_forward(x, params, A):
    B, N, Fin = x.shape
    adj = jnp.squeeze(A, 0)                                            # (22, 22)
    x22 = x.reshape(B, JOINTS, 3 * Fin)                                # (B, 22, 24)

    # Fold BN (eval mode) and the GraphConvolution bias into scale/shift.
    s1, sh1 = params["bn1"]
    bn1_s = s1.reshape(N, GC1_OUT)
    bn1_sh = sh1.reshape(N, GC1_OUT) + params["gc1_b"] * bn1_s

    sa, sha = params["ba1"]
    ba1_s = sa.reshape(JOINTS, GA1_OUT)
    ba1_sh = sha.reshape(JOINTS, GA1_OUT)

    # Permutation matrices implementing the row-major (22,384)->(66,128) view.
    Pnp = np.zeros((3, NODE_N, JOINTS), np.float32)
    for r in range(3):
        Pnp[r, 3 * np.arange(JOINTS) + r, np.arange(JOINTS)] = 1.0
    perm = jnp.asarray(Pnp)

    # Stack GC_Block params along a leading stage axis (bias folded into shift).
    w1s, att1s, s1s, sh1s, w2s, att2s, s2s, sh2s = ([] for _ in range(8))
    for blk in params["blocks"]:
        sA, shA = blk["bn_a"]
        sB, shB = blk["bn_b"]
        sA = sA.reshape(N, HIDDEN)
        shA = shA.reshape(N, HIDDEN) + blk["b1"] * sA
        sB = sB.reshape(N, HIDDEN)
        shB = shB.reshape(N, HIDDEN) + blk["b2"] * sB
        w1s.append(blk["w1"]); att1s.append(blk["att1"]); s1s.append(sA); sh1s.append(shA)
        w2s.append(blk["w2"]); att2s.append(blk["att2"]); s2s.append(sB); sh2s.append(shB)
    w1s, att1s, s1s, sh1s = map(jnp.stack, (w1s, att1s, s1s, sh1s))
    w2s, att2s, s2s, sh2s = map(jnp.stack, (w2s, att2s, s2s, sh2s))

    args = (x, x22,
            params["gc1_att"], params["gc1_w"], bn1_s, bn1_sh,
            params["ga1_w"], params["ga1_a1"], params["ga1_a2"], adj, ba1_s, ba1_sh,
            perm,
            w1s, att1s, s1s, sh1s, w2s, att2s, s2s, sh2s,
            params["gc7_w"], params["gc7_att"], params["gc7_b"])

    in_specs = [_batch_spec(a.shape) if k in (0, 1) else _const_spec(a.shape)
                for k, a in enumerate(args)]

    return pl.pallas_call(
        fused_kernel,
        out_shape=jax.ShapeDtypeStruct((B, N, Fin), jnp.float32),
        grid=(B,),
        in_specs=in_specs,
        out_specs=_batch_spec((B, N, Fin)),
        scratch_shapes=[pltpu.VMEM((NODE_N, HIDDEN), jnp.float32)],
        compiler_params=pltpu.CompilerParams(
            dimension_semantics=("parallel",),
            vmem_limit_bytes=32 * 1024 * 1024),
    )(*args)


# --------------------------------------------------------------------------
# Parameters (deterministic synthetic init) and graph adjacency
# --------------------------------------------------------------------------
def bn_fold(key, n):
    k1, k2, k3, k4 = jax.random.split(key, 4)
    gamma = 1.0 + 0.1 * jax.random.normal(k1, (n,), jnp.float32)
    beta = 0.1 * jax.random.normal(k2, (n,), jnp.float32)
    mean = 0.1 * jax.random.normal(k3, (n,), jnp.float32)
    var = 1.0 + 0.1 * jnp.abs(jax.random.normal(k4, (n,), jnp.float32))
    scale = gamma / jnp.sqrt(var + BN_EPS)
    shift = beta - mean * scale
    return scale, shift


def make_params(key):
    keys = iter(jax.random.split(key, 32))

    def nrm(shape, s=0.1):
        return s * jax.random.normal(next(keys), shape, jnp.float32)

    p = {
        "gc1_w": nrm((INPUT_FEATURE, GC1_OUT)),
        "gc1_att": nrm((NODE_N, NODE_N)),
        "gc1_b": nrm((1, GC1_OUT)),
        "bn1": bn_fold(next(keys), NODE_N * GC1_OUT),
        "ga1_w": nrm((3 * INPUT_FEATURE, GA1_OUT)),
        "ga1_a1": nrm((1, GA1_OUT)),
        "ga1_a2": nrm((1, GA1_OUT)),
        "ba1": bn_fold(next(keys), NODE_N * GC1_OUT),
        "gc7_w": nrm((HIDDEN, INPUT_FEATURE)),
        "gc7_att": nrm((NODE_N, NODE_N)),
        "gc7_b": nrm((1, INPUT_FEATURE)),
    }
    blocks = []
    for _ in range(NUM_STAGE):
        blocks.append({
            "w1": nrm((HIDDEN, HIDDEN)), "att1": nrm((NODE_N, NODE_N)), "b1": nrm((1, HIDDEN)),
            "bn_a": bn_fold(next(keys), NODE_N * HIDDEN),
            "w2": nrm((HIDDEN, HIDDEN)), "att2": nrm((NODE_N, NODE_N)), "b2": nrm((1, HIDDEN)),
            "bn_b": bn_fold(next(keys), NODE_N * HIDDEN),
        })
    p["blocks"] = blocks
    return p


def make_graph_A():
    # Deterministic stand-in for Graph(layout, strategy).A : chain skeleton with
    # self-loops, row-normalized; shape (1, 22, 22) like the registered buffer.
    A = np.eye(JOINTS, dtype=np.float32)
    for i in range(JOINTS - 1):
        A[i, i + 1] = 1.0
        A[i + 1, i] = 1.0
    A = A / A.sum(axis=1, keepdims=True)
    return jnp.asarray(A[None])


# --------------------------------------------------------------------------
# Pure-JAX reference (for correctness check)
# --------------------------------------------------------------------------
def ref_forward(x, params, A):
    B, N, Fin = x.shape
    adj = jnp.squeeze(A, 0)

    def gcn(z, w, att, b):
        return jnp.matmul(att, jnp.matmul(z, w)) + b

    s1, sh1 = params["bn1"]
    y = jnp.tanh(gcn(x, params["gc1_w"], params["gc1_att"], params["gc1_b"])
                 * s1.reshape(N, GC1_OUT) + sh1.reshape(N, GC1_OUT))

    h = x.reshape(B, JOINTS, 3 * Fin)
    wh = jnp.matmul(h, params["ga1_w"])
    e1 = jnp.sum(wh * params["ga1_a1"], axis=-1, keepdims=True)
    e2 = jnp.sum(wh * params["ga1_a2"], axis=-1, keepdims=True)
    e = e1 + jnp.swapaxes(e2, -1, -2)
    e = jnp.where(e > 0, e, LRELU_ALPHA * e)
    e = jnp.where(adj > 0, e, -9e15)
    attn = jax.nn.softmax(e, axis=-1)
    hp = jnp.matmul(attn, wh)
    hp = jnp.where(hp > 0, hp, jnp.exp(hp) - 1.0)
    sa, sha = params["ba1"]
    y2 = jnp.tanh(hp * sa.reshape(JOINTS, GA1_OUT) + sha.reshape(JOINTS, GA1_OUT))
    y2 = y2.reshape(B, NODE_N, GC1_OUT)

    y = jnp.concatenate([y2, y], axis=2)
    for blk in params["blocks"]:
        sA, shA = blk["bn_a"]
        sB, shB = blk["bn_b"]
        t = jnp.tanh(gcn(y, blk["w1"], blk["att1"], blk["b1"])
                     * sA.reshape(N, HIDDEN) + shA.reshape(N, HIDDEN))
        t = jnp.tanh(gcn(t, blk["w2"], blk["att2"], blk["b2"])
                     * sB.reshape(N, HIDDEN) + shB.reshape(N, HIDDEN))
        y = t + y
    y = gcn(y, params["gc7_w"], params["gc7_att"], params["gc7_b"]) + x
    return y


if __name__ == "__main__":
    key = jax.random.PRNGKey(0)
    kx, kp = jax.random.split(key)
    x = jax.random.normal(kx, (BATCH, NODE_N, INPUT_FEATURE), dtype=jnp.float32)
    params = make_params(kp)
    A = make_graph_A()

    out = st_gcna_forward(x, params, A)
    out = jax.block_until_ready(out)

    ref = ref_forward(x, params, A)
    assert out.shape == (BATCH, NODE_N, INPUT_FEATURE)
    np.testing.assert_allclose(np.asarray(out), np.asarray(ref), atol=1e-2, rtol=1e-2)

    print("KERNEL_OK")
</pallas_src>

<mosaic_0001>
module attributes {stable_mosaic.version = 11 : i64} {
  func.func @fused_kernel(%arg0: i32, %arg1: memref<1x66x8xf32, #tpu.memory_space<vmem>>, %arg2: memref<1x22x24xf32, #tpu.memory_space<vmem>>, %arg3: memref<66x66xf32, #tpu.memory_space<vmem>>, %arg4: memref<8x128xf32, #tpu.memory_space<vmem>>, %arg5: memref<66x128xf32, #tpu.memory_space<vmem>>, %arg6: memref<66x128xf32, #tpu.memory_space<vmem>>, %arg7: memref<24x384xf32, #tpu.memory_space<vmem>>, %arg8: memref<1x384xf32, #tpu.memory_space<vmem>>, %arg9: memref<1x384xf32, #tpu.memory_space<vmem>>, %arg10: memref<22x22xf32, #tpu.memory_space<vmem>>, %arg11: memref<22x384xf32, #tpu.memory_space<vmem>>, %arg12: memref<22x384xf32, #tpu.memory_space<vmem>>, %arg13: memref<3x66x22xf32, #tpu.memory_space<vmem>>, %arg14: memref<1x256x256xf32, #tpu.memory_space<vmem>>, %arg15: memref<1x66x66xf32, #tpu.memory_space<vmem>>, %arg16: memref<1x66x256xf32, #tpu.memory_space<vmem>>, %arg17: memref<1x66x256xf32, #tpu.memory_space<vmem>>, %arg18: memref<1x256x256xf32, #tpu.memory_space<vmem>>, %arg19: memref<1x66x66xf32, #tpu.memory_space<vmem>>, %arg20: memref<1x66x256xf32, #tpu.memory_space<vmem>>, %arg21: memref<1x66x256xf32, #tpu.memory_space<vmem>>, %arg22: memref<256x8xf32, #tpu.memory_space<vmem>>, %arg23: memref<66x66xf32, #tpu.memory_space<vmem>>, %arg24: memref<1x8xf32, #tpu.memory_space<vmem>>, %arg25: memref<1x66x8xf32, #tpu.memory_space<vmem>>, %arg26: memref<66x256xf32, #tpu.memory_space<vmem>>) attributes {dimension_semantics = [#tpu.dimension_semantics<parallel>], iteration_bounds = array<i64: 2>, scalar_prefetch = 0 : i64, scratch_operands = 1 : i64, tpu.core_type = #tpu.core_type<tc>, window_params = [{transform_indices = @transform_0, window_bounds = array<i64: 1, 66, 8>}, {transform_indices = @transform_1, window_bounds = array<i64: 1, 22, 24>}, {pipeline_mode = #tpu.pipeline_mode<synchronous>, transform_indices = @transform_2, window_bounds = array<i64: 66, 66>}, {pipeline_mode = #tpu.pipeline_mode<synchronous>, transform_indices = @transform_3, window_bounds = array<i64: 8, 128>}, {pipeline_mode = #tpu.pipeline_mode<synchronous>, transform_indices = @transform_4, window_bounds = array<i64: 66, 128>}, {pipeline_mode = #tpu.pipeline_mode<synchronous>, transform_indices = @transform_5, window_bounds = array<i64: 66, 128>}, {pipeline_mode = #tpu.pipeline_mode<synchronous>, transform_indices = @transform_6, window_bounds = array<i64: 24, 384>}, {pipeline_mode = #tpu.pipeline_mode<synchronous>, transform_indices = @transform_7, window_bounds = array<i64: 1, 384>}, {pipeline_mode = #tpu.pipeline_mode<synchronous>, transform_indices = @transform_8, window_bounds = array<i64: 1, 384>}, {pipeline_mode = #tpu.pipeline_mode<synchronous>, transform_indices = @transform_9, window_bounds = array<i64: 22, 22>}, {pipeline_mode = #tpu.pipeline_mode<synchronous>, transform_indices = @transform_10, window_bounds = array<i64: 22, 384>}, {pipeline_mode = #tpu.pipeline_mode<synchronous>, transform_indices = @transform_11, window_bounds = array<i64: 22, 384>}, {pipeline_mode = #tpu.pipeline_mode<synchronous>, transform_indices = @transform_12, window_bounds = array<i64: 3, 66, 22>}, {pipeline_mode = #tpu.pipeline_mode<synchronous>, transform_indices = @transform_13, window_bounds = array<i64: 1, 256, 256>}, {pipeline_mode = #tpu.pipeline_mode<synchronous>, transform_indices = @transform_14, window_bounds = array<i64: 1, 66, 66>}, {pipeline_mode = #tpu.pipeline_mode<synchronous>, transform_indices = @transform_15, window_bounds = array<i64: 1, 66, 256>}, {pipeline_mode = #tpu.pipeline_mode<synchronous>, transform_indices = @transform_16, window_bounds = array<i64: 1, 66, 256>}, {pipeline_mode = #tpu.pipeline_mode<synchronous>, transform_indices = @transform_17, window_bounds = array<i64: 1, 256, 256>}, {pipeline_mode = #tpu.pipeline_mode<synchronous>, transform_indices = @transform_18, window_bounds = array<i64: 1, 66, 66>}, {pipeline_mode = #tpu.pipeline_mode<synchronous>, transform_indices = @transform_19, window_bounds = array<i64: 1, 66, 256>}, {pipeline_mode = #tpu.pipeline_mode<synchronous>, transform_indices = @transform_20, window_bounds = array<i64: 1, 66, 256>}, {pipeline_mode = #tpu.pipeline_mode<synchronous>, transform_indices = @transform_21, window_bounds = array<i64: 256, 8>}, {pipeline_mode = #tpu.pipeline_mode<synchronous>, transform_indices = @transform_22, window_bounds = array<i64: 66, 66>}, {pipeline_mode = #tpu.pipeline_mode<synchronous>, transform_indices = @transform_23, window_bounds = array<i64: 1, 8>}, {transform_indices = @transform_24, window_bounds = array<i64: 1, 66, 8>}]} {
    %c0 = arith.constant 0 : index
    %c0_0 = arith.constant 0 : index
    %c0_1 = arith.constant 0 : index
    %0 = vector.load %arg1[%c0, %c0_0, %c0_1] : memref<1x66x8xf32, #tpu.memory_space<vmem>>, vector<1x66x8xf32>
    %1 = vector.shape_cast %0 : vector<1x66x8xf32> to vector<66x8xf32>
    %c0_2 = arith.constant 0 : index
    %c0_3 = arith.constant 0 : index
    %2 = vector.load %arg3[%c0_2, %c0_3] : memref<66x66xf32, #tpu.memory_space<vmem>>, vector<66x66xf32>
    %cst = arith.constant dense<0.000000e+00> : vector<66x8xf32>
    %3 = tpu.matmul %2, %1, %cst {dimension_numbers = #tpu.dot_dimension_numbers<[1], [0], [0], [1], [0, 0, 1, 1], [], []>} : vector<66x66xf32>, vector<66x8xf32>, vector<66x8xf32> -> vector<66x8xf32>
    %c0_4 = arith.constant 0 : index
    %c0_5 = arith.constant 0 : index
    %4 = vector.load %arg4[%c0_4, %c0_5] : memref<8x128xf32, #tpu.memory_space<vmem>>, vector<8x128xf32>
    %cst_6 = arith.constant dense<0.000000e+00> : vector<66x128xf32>
    %5 = tpu.matmul %3, %4, %cst_6 {dimension_numbers = #tpu.dot_dimension_numbers<[1], [0], [0], [1], [0, 0, 1, 1], [], []>} : vector<66x8xf32>, vector<8x128xf32>, vector<66x128xf32> -> vector<66x128xf32>
    %c0_7 = arith.constant 0 : index
    %c0_8 = arith.constant 0 : index
    %6 = vector.load %arg5[%c0_7, %c0_8] : memref<66x128xf32, #tpu.memory_space<vmem>>, vector<66x128xf32>
    %7 = arith.mulf %5, %6 : vector<66x128xf32>
    %c0_9 = arith.constant 0 : index
    %c0_10 = arith.constant 0 : index
    %8 = vector.load %arg6[%c0_9, %c0_10] : memref<66x128xf32, #tpu.memory_space<vmem>>, vector<66x128xf32>
    %9 = arith.addf %7, %8 : vector<66x128xf32>
    %10 = math.tanh %9 : vector<66x128xf32>
    %c0_11 = arith.constant 0 : index
    %c0_12 = arith.constant 0 : index
    %c0_13 = arith.constant 0 : index
    %11 = vector.load %arg2[%c0_11, %c0_12, %c0_13] : memref<1x22x24xf32, #tpu.memory_space<vmem>>, vector<1x22x24xf32>
    %12 = vector.shape_cast %11 : vector<1x22x24xf32> to vector<22x24xf32>
    %c0_14 = arith.constant 0 : index
    %c0_15 = arith.constant 0 : index
    %13 = vector.load %arg7[%c0_14, %c0_15] : memref<24x384xf32, #tpu.memory_space<vmem>>, vector<24x384xf32>
    %cst_16 = arith.constant dense<0.000000e+00> : vector<22x384xf32>
    %14 = tpu.matmul %12, %13, %cst_16 {dimension_numbers = #tpu.dot_dimension_numbers<[1], [0], [0], [1], [0, 0, 1, 1], [], []>} : vector<22x24xf32>, vector<24x384xf32>, vector<22x384xf32> -> vector<22x384xf32>
    %c0_17 = arith.constant 0 : index
    %c0_18 = arith.constant 0 : index
    %15 = vector.load %arg8[%c0_17, %c0_18] : memref<1x384xf32, #tpu.memory_space<vmem>>, vector<1x384xf32>
    %16 = vector.broadcast %15 : vector<1x384xf32> to vector<22x384xf32>
    %17 = arith.mulf %14, %16 : vector<22x384xf32>
    %cst_19 = arith.constant dense<0.000000e+00> : vector<22xf32>
    %18 = vector.multi_reduction <add>, %17, %cst_19 [1] : vector<22x384xf32> to vector<22xf32>
    %19 = vector.shape_cast %18 : vector<22xf32> to vector<22x1xf32>
    %c0_20 = arith.constant 0 : index
    %c0_21 = arith.constant 0 : index
    %20 = vector.load %arg9[%c0_20, %c0_21] : memref<1x384xf32, #tpu.memory_space<vmem>>, vector<1x384xf32>
    %cst_22 = arith.constant dense<0.000000e+00> : vector<1x22xf32>
    %21 = tpu.matmul %20, %14, %cst_22 {dimension_numbers = #tpu.dot_dimension_numbers<[1], [1], [0], [0], [0, 0, 1, 0], [], []>} : vector<1x384xf32>, vector<22x384xf32>, vector<1x22xf32> -> vector<1x22xf32>
    %22 = vector.broadcast %19 : vector<22x1xf32> to vector<22x22xf32>
    %23 = vector.broadcast %21 : vector<1x22xf32> to vector<22x22xf32>
    %24 = arith.addf %22, %23 : vector<22x22xf32>
    %cst_23 = arith.constant 0.000000e+00 : f32
    %25 = vector.broadcast %cst_23 : f32 to vector<22x22xf32>
    %26 = arith.cmpf ogt, %24, %25 : vector<22x22xf32>
    %cst_24 = arith.constant 2.000000e-01 : f32
    %27 = vector.broadcast %cst_24 : f32 to vector<22x22xf32>
    %28 = arith.mulf %27, %24 : vector<22x22xf32>
    %29 = arith.select %26, %24, %28 : vector<22x22xi1>, vector<22x22xf32>
    %c0_25 = arith.constant 0 : index
    %c0_26 = arith.constant 0 : index
    %30 = vector.load %arg10[%c0_25, %c0_26] : memref<22x22xf32, #tpu.memory_space<vmem>>, vector<22x22xf32>
    %cst_27 = arith.constant 0.000000e+00 : f32
    %31 = vector.broadcast %cst_27 : f32 to vector<22x22xf32>
    %32 = arith.cmpf ogt, %30, %31 : vector<22x22xf32>
    %cst_28 = arith.constant -9.000000e+15 : f32
    %33 = vector.broadcast %cst_28 : f32 to vector<22x22xf32>
    %34 = arith.select %32, %29, %33 : vector<22x22xi1>, vector<22x22xf32>
    %cst_29 = arith.constant dense<0xFF800000> : vector<22xf32>
    %35 = vector.multi_reduction <maximumf>, %34, %cst_29 [1] : vector<22x22xf32> to vector<22xf32>
    %36 = vector.shape_cast %35 : vector<22xf32> to vector<22x1xf32>
    %37 = vector.broadcast %36 : vector<22x1xf32> to vector<22x22xf32>
    %38 = arith.subf %34, %37 : vector<22x22xf32>
    %39 = math.exp %38 : vector<22x22xf32>
    %cst_30 = arith.constant dense<0.000000e+00> : vector<22xf32>
    %40 = vector.multi_reduction <add>, %39, %cst_30 [1] : vector<22x22xf32> to vector<22xf32>
    %41 = vector.shape_cast %40 : vector<22xf32> to vector<22x1xf32>
    %42 = tpu.reciprocal %41 : vector<22x1xf32> -> vector<22x1xf32>
    %43 = vector.broadcast %42 : vector<22x1xf32> to vector<22x22xf32>
    %44 = arith.mulf %39, %43 : vector<22x22xf32>
    %cst_31 = arith.constant dense<0.000000e+00> : vector<22x384xf32>
    %45 = tpu.matmul %44, %14, %cst_31 {dimension_numbers = #tpu.dot_dimension_numbers<[1], [0], [0], [1], [0, 0, 1, 1], [], []>} : vector<22x22xf32>, vector<22x384xf32>, vector<22x384xf32> -> vector<22x384xf32>
    %cst_32 = arith.constant 0.000000e+00 : f32
    %46 = vector.broadcast %cst_32 : f32 to vector<22x384xf32>
    %47 = arith.cmpf ogt, %45, %46 : vector<22x384xf32>
    %48 = math.exp %45 : vector<22x384xf32>
    %cst_33 = arith.constant 1.000000e+00 : f32
    %49 = vector.broadcast %cst_33 : f32 to vector<22x384xf32>
    %50 = arith.subf %48, %49 : vector<22x384xf32>
    %51 = arith.select %47, %45, %50 : vector<22x384xi1>, vector<22x384xf32>
    %c0_34 = arith.constant 0 : index
    %c0_35 = arith.constant 0 : index
    %52 = vector.load %arg11[%c0_34, %c0_35] : memref<22x384xf32, #tpu.memory_space<vmem>>, vector<22x384xf32>
    %53 = arith.mulf %51, %52 : vector<22x384xf32>
    %c0_36 = arith.constant 0 : index
    %c0_37 = arith.constant 0 : index
    %54 = vector.load %arg12[%c0_36, %c0_37] : memref<22x384xf32, #tpu.memory_space<vmem>>, vector<22x384xf32>
    %55 = arith.addf %53, %54 : vector<22x384xf32>
    %56 = math.tanh %55 : vector<22x384xf32>
    %c0_38 = arith.constant 0 : index
    %c0_39 = arith.constant 0 : index
    %c0_40 = arith.constant 0 : index
    %57 = vector.load %arg13[%c0_38, %c0_39, %c0_40] : memref<3x66x22xf32, #tpu.memory_space<vmem>>, vector<1x66x22xf32>
    %58 = vector.shape_cast %57 : vector<1x66x22xf32> to vector<66x22xf32>
    %59 = vector.extract_strided_slice %56 {offsets = [0, 0], sizes = [22, 128], strides = [1, 1]} : vector<22x384xf32> to vector<22x128xf32>
    %cst_41 = arith.constant dense<0.000000e+00> : vector<66x128xf32>
    %60 = tpu.matmul %58, %59, %cst_41 {dimension_numbers = #tpu.dot_dimension_numbers<[1], [0], [0], [1], [0, 0, 1, 1], [], []>} : vector<66x22xf32>, vector<22x128xf32>, vector<66x128xf32> -> vector<66x128xf32>
    %c1 = arith.constant 1 : index
    %c0_42 = arith.constant 0 : index
    %c0_43 = arith.constant 0 : index
    %61 = vector.load %arg13[%c1, %c0_42, %c0_43] : memref<3x66x22xf32, #tpu.memory_space<vmem>>, vector<1x66x22xf32>
    %62 = vector.shape_cast %61 : vector<1x66x22xf32> to vector<66x22xf32>
    %63 = vector.extract_strided_slice %56 {offsets = [0, 128], sizes = [22, 128], strides = [1, 1]} : vector<22x384xf32> to vector<22x128xf32>
    %cst_44 = arith.constant dense<0.000000e+00> : vector<66x128xf32>
    %64 = tpu.matmul %62, %63, %cst_44 {dimension_numbers = #tpu.dot_dimension_numbers<[1], [0], [0], [1], [0, 0, 1, 1], [], []>} : vector<66x22xf32>, vector<22x128xf32>, vector<66x128xf32> -> vector<66x128xf32>
    %65 = arith.addf %60, %64 : vector<66x128xf32>
    %c2 = arith.constant 2 : index
    %c0_45 = arith.constant 0 : index
    %c0_46 = arith.constant 0 : index
    %66 = vector.load %arg13[%c2, %c0_45, %c0_46] : memref<3x66x22xf32, #tpu.memory_space<vmem>>, vector<1x66x22xf32>
    %67 = vector.shape_cast %66 : vector<1x66x22xf32> to vector<66x22xf32>
    %68 = vector.extract_strided_slice %56 {offsets = [0, 256], sizes = [22, 128], strides = [1, 1]} : vector<22x384xf32> to vector<22x128xf32>
    %cst_47 = arith.constant dense<0.000000e+00> : vector<66x128xf32>
    %69 = tpu.matmul %67, %68, %cst_47 {dimension_numbers = #tpu.dot_dimension_numbers<[1], [0], [0], [1], [0, 0, 1, 1], [], []>} : vector<66x22xf32>, vector<22x128xf32>, vector<66x128xf32> -> vector<66x128xf32>
    %70 = arith.addf %65, %69 : vector<66x128xf32>
    %c0_48 = arith.constant 0 : index
    %c0_49 = arith.constant 0 : index
    %71 = vector.load %arg26[%c0_48, %c0_49] : memref<66x256xf32, #tpu.memory_space<vmem>>, vector<66x128xf32>
    tpu.vector_store %arg26[%c0_48, %c0_49], %70 {strides = array<i32>} : memref<66x256xf32, #tpu.memory_space<vmem>>, vector<66x128xf32>,
    %c0_50 = arith.constant 0 : index
    %c128 = arith.constant 128 : index
    %72 = vector.load %arg26[%c0_50, %c128] : memref<66x256xf32, #tpu.memory_space<vmem>>, vector<66x128xf32>
    tpu.vector_store %arg26[%c0_50, %c128], %10 {strides = array<i32>} : memref<66x256xf32, #tpu.memory_space<vmem>>, vector<66x128xf32>,
    %c0_51 = arith.constant 0 : index
    %c0_52 = arith.constant 0 : index
    %73 = vector.load %arg26[%c0_51, %c0_52] : memref<66x256xf32, #tpu.memory_space<vmem>>, vector<66x256xf32>
    %c0_53 = arith.constant 0 : index
    %c0_54 = arith.constant 0 : index
    %c0_55 = arith.constant 0 : index
    %74 = vector.load %arg14[%c0_53, %c0_54, %c0_55] : memref<1x256x256xf32, #tpu.memory_space<vmem>>, vector<1x256x256xf32>
    %75 = vector.shape_cast %74 : vector<1x256x256xf32> to vector<256x256xf32>
    %cst_56 = arith.constant dense<0.000000e+00> : vector<66x256xf32>
    %76 = tpu.matmul %73, %75, %cst_56 {dimension_numbers = #tpu.dot_dimension_numbers<[1], [0], [0], [1], [0, 0, 1, 1], [], []>} : vector<66x256xf32>, vector<256x256xf32>, vector<66x256xf32> -> vector<66x256xf32>
    %c0_57 = arith.constant 0 : index
    %c0_58 = arith.constant 0 : index
    %c0_59 = arith.constant 0 : index
    %77 = vector.load %arg15[%c0_57, %c0_58, %c0_59] : memref<1x66x66xf32, #tpu.memory_space<vmem>>, vector<1x66x66xf32>
    %78 = vector.shape_cast %77 : vector<1x66x66xf32> to vector<66x66xf32>
    %cst_60 = arith.constant dense<0.000000e+00> : vector<66x256xf32>
    %79 = tpu.matmul %78, %76, %cst_60 {dimension_numbers = #tpu.dot_dimension_numbers<[1], [0], [0], [1], [0, 0, 1, 1], [], []>} : vector<66x66xf32>, vector<66x256xf32>, vector<66x256xf32> -> vector<66x256xf32>
    %c0_61 = arith.constant 0 : index
    %c0_62 = arith.constant 0 : index
    %c0_63 = arith.constant 0 : index
    %80 = vector.load %arg16[%c0_61, %c0_62, %c0_63] : memref<1x66x256xf32, #tpu.memory_space<vmem>>, vector<1x66x256xf32>
    %81 = vector.shape_cast %80 : vector<1x66x256xf32> to vector<66x256xf32>
    %82 = arith.mulf %79, %81 : vector<66x256xf32>
    %c0_64 = arith.constant 0 : index
    %c0_65 = arith.constant 0 : index
    %c0_66 = arith.constant 0 : index
    %83 = vector.load %arg17[%c0_64, %c0_65, %c0_66] : memref<1x66x256xf32, #tpu.memory_space<vmem>>, vector<1x66x256xf32>
    %84 = vector.shape_cast %83 : vector<1x66x256xf32> to vector<66x256xf32>
    %85 = arith.addf %82, %84 : vector<66x256xf32>
    %86 = math.tanh %85 : vector<66x256xf32>
    %c0_67 = arith.constant 0 : index
    %c0_68 = arith.constant 0 : index
    %c0_69 = arith.constant 0 : index
    %87 = vector.load %arg18[%c0_67, %c0_68, %c0_69] : memref<1x256x256xf32, #tpu.memory_space<vmem>>, vector<1x256x256xf32>
    %88 = vector.shape_cast %87 : vector<1x256x256xf32> to vector<256x256xf32>
    %cst_70 = arith.constant dense<0.000000e+00> : vector<66x256xf32>
    %89 = tpu.matmul %86, %88, %cst_70 {dimension_numbers = #tpu.dot_dimension_numbers<[1], [0], [0], [1], [0, 0, 1, 1], [], []>} : vector<66x256xf32>, vector<256x256xf32>, vector<66x256xf32> -> vector<66x256xf32>
    %c0_71 = arith.constant 0 : index
    %c0_72 = arith.constant 0 : index
    %c0_73 = arith.constant 0 : index
    %90 = vector.load %arg19[%c0_71, %c0_72, %c0_73] : memref<1x66x66xf32, #tpu.memory_space<vmem>>, vector<1x66x66xf32>
    %91 = vector.shape_cast %90 : vector<1x66x66xf32> to vector<66x66xf32>
    %cst_74 = arith.constant dense<0.000000e+00> : vector<66x256xf32>
    %92 = tpu.matmul %91, %89, %cst_74 {dimension_numbers = #tpu.dot_dimension_numbers<[1], [0], [0], [1], [0, 0, 1, 1], [], []>} : vector<66x66xf32>, vector<66x256xf32>, vector<66x256xf32> -> vector<66x256xf32>
    %c0_75 = arith.constant 0 : index
    %c0_76 = arith.constant 0 : index
    %c0_77 = arith.constant 0 : index
    %93 = vector.load %arg20[%c0_75, %c0_76, %c0_77] : memref<1x66x256xf32, #tpu.memory_space<vmem>>, vector<1x66x256xf32>
    %94 = vector.shape_cast %93 : vector<1x66x256xf32> to vector<66x256xf32>
    %95 = arith.mulf %92, %94 : vector<66x256xf32>
    %c0_78 = arith.constant 0 : index
    %c0_79 = arith.constant 0 : index
    %c0_80 = arith.constant 0 : index
    %96 = vector.load %arg21[%c0_78, %c0_79, %c0_80] : memref<1x66x256xf32, #tpu.memory_space<vmem>>, vector<1x66x256xf32>
    %97 = vector.shape_cast %96 : vector<1x66x256xf32> to vector<66x256xf32>
    %98 = arith.addf %95, %97 : vector<66x256xf32>
    %99 = math.tanh %98 : vector<66x256xf32>
    %100 = arith.addf %99, %73 : vector<66x256xf32>
    %c0_81 = arith.constant 0 : index
    %c0_82 = arith.constant 0 : index
    %101 = vector.load %arg26[%c0_81, %c0_82] : memref<66x256xf32, #tpu.memory_space<vmem>>, vector<66x256xf32>
    tpu.vector_store %arg26[%c0_81, %c0_82], %100 {strides = array<i32>} : memref<66x256xf32, #tpu.memory_space<vmem>>, vector<66x256xf32>,
    %c0_83 = arith.constant 0 : index
    %c0_84 = arith.constant 0 : index
    %102 = vector.load %arg26[%c0_83, %c0_84] : memref<66x256xf32, #tpu.memory_space<vmem>>, vector<66x256xf32>
    %c0_85 = arith.constant 0 : index
    %c0_86 = arith.constant 0 : index
    %103 = vector.load %arg22[%c0_85, %c0_86] : memref<256x8xf32, #tpu.memory_space<vmem>>, vector<256x8xf32>
    %cst_87 = arith.constant dense<0.000000e+00> : vector<66x8xf32>
    %104 = tpu.matmul %102, %103, %cst_87 {dimension_numbers = #tpu.dot_dimension_numbers<[1], [0], [0], [1], [0, 0, 1, 1], [], []>} : vector<66x256xf32>, vector<256x8xf32>, vector<66x8xf32> -> vector<66x8xf32>
    %c0_88 = arith.constant 0 : index
    %c0_89 = arith.constant 0 : index
    %105 = vector.load %arg23[%c0_88, %c0_89] : memref<66x66xf32, #tpu.memory_space<vmem>>, vector<66x66xf32>
    %cst_90 = arith.constant dense<0.000000e+00> : vector<66x8xf32>
    %106 = tpu.matmul %105, %104, %cst_90 {dimension_numbers = #tpu.dot_dimension_numbers<[1], [0], [0], [1], [0, 0, 1, 1], [], []>} : vector<66x66xf32>, vector<66x8xf32>, vector<66x8xf32> -> vector<66x8xf32>
    %c0_91 = arith.constant 0 : index
    %c0_92 = arith.constant 0 : index
    %107 = vector.load %arg24[%c0_91, %c0_92] : memref<1x8xf32, #tpu.memory_space<vmem>>, vector<1x8xf32>
    %108 = vector.broadcast %107 : vector<1x8xf32> to vector<66x8xf32>
    %109 = arith.addf %106, %108 : vector<66x8xf32>
    %110 = arith.addf %109, %1 : vector<66x8xf32>
    %c0_93 = arith.constant 0 : index
    %c0_94 = arith.constant 0 : index
    %c0_95 = arith.constant 0 : index
    %111 = vector.load %arg25[%c0_93, %c0_94, %c0_95] : memref<1x66x8xf32, #tpu.memory_space<vmem>>, vector<1x66x8xf32>
    %112 = vector.shape_cast %111 : vector<1x66x8xf32> to vector<66x8xf32>
    %113 = vector.shape_cast %110 : vector<66x8xf32> to vector<1x66x8xf32>
    tpu.vector_store %arg25[%c0_93, %c0_94, %c0_95], %113 {strides = array<i32>} : memref<1x66x8xf32, #tpu.memory_space<vmem>>, vector<1x66x8xf32>,
    return
  }
  func.func @transform_0(%arg0: i32) -> (i32, i32, i32) {
    %c0_i32 = arith.constant 0 : i32
    %c0_i32_0 = arith.constant 0 : i32
    %c0_i32_1 = arith.constant 0 : i32
    return %arg0, %c0_i32, %c0_i32_0 : i32, i32, i32
  }
  func.func @transform_1(%arg0: i32) -> (i32, i32, i32) {
    %c0_i32 = arith.constant 0 : i32
    %c0_i32_0 = arith.constant 0 : i32
    %c0_i32_1 = arith.constant 0 : i32
    return %arg0, %c0_i32, %c0_i32_0 : i32, i32, i32
  }
  func.func @transform_2(%arg0: i32) -> (i32, i32) {
    %c0_i32 = arith.constant 0 : i32
    %c0_i32_0 = arith.constant 0 : i32
    %c0_i32_1 = arith.constant 0 : i32
    return %c0_i32, %c0_i32_0 : i32, i32
  }
  func.func @transform_3(%arg0: i32) -> (i32, i32) {
    %c0_i32 = arith.constant 0 : i32
    %c0_i32_0 = arith.constant 0 : i32
    %c0_i32_1 = arith.constant 0 : i32
    return %c0_i32, %c0_i32_0 : i32, i32
  }
  func.func @transform_4(%arg0: i32) -> (i32, i32) {
    %c0_i32 = arith.constant 0 : i32
    %c0_i32_0 = arith.constant 0 : i32
    %c0_i32_1 = arith.constant 0 : i32
    return %c0_i32, %c0_i32_0 : i32, i32
  }
  func.func @transform_5(%arg0: i32) -> (i32, i32) {
    %c0_i32 = arith.constant 0 : i32
    %c0_i32_0 = arith.constant 0 : i32
    %c0_i32_1 = arith.constant 0 : i32
    return %c0_i32, %c0_i32_0 : i32, i32
  }
  func.func @transform_6(%arg0: i32) -> (i32, i32) {
    %c0_i32 = arith.constant 0 : i32
    %c0_i32_0 = arith.constant 0 : i32
    %c0_i32_1 = arith.constant 0 : i32
    return %c0_i32, %c0_i32_0 : i32, i32
  }
  func.func @transform_7(%arg0: i32) -> (i32, i32) {
    %c0_i32 = arith.constant 0 : i32
    %c0_i32_0 = arith.constant 0 : i32
    %c0_i32_1 = arith.constant 0 : i32
    return %c0_i32, %c0_i32_0 : i32, i32
  }
  func.func @transform_8(%arg0: i32) -> (i32, i32) {
    %c0_i32 = arith.constant 0 : i32
    %c0_i32_0 = arith.constant 0 : i32
    %c0_i32_1 = arith.constant 0 : i32
    return %c0_i32, %c0_i32_0 : i32, i32
  }
  func.func @transform_9(%arg0: i32) -> (i32, i32) {
    %c0_i32 = arith.constant 0 : i32
    %c0_i32_0 = arith.constant 0 : i32
    %c0_i32_1 = arith.constant 0 : i32
    return %c0_i32, %c0_i32_0 : i32, i32
  }
  func.func @transform_10(%arg0: i32) -> (i32, i32) {
    %c0_i32 = arith.constant 0 : i32
    %c0_i32_0 = arith.constant 0 : i32
    %c0_i32_1 = arith.constant 0 : i32
    return %c0_i32, %c0_i32_0 : i32, i32
  }
  func.func @transform_11(%arg0: i32) -> (i32, i32) {
    %c0_i32 = arith.constant 0 : i32
    %c0_i32_0 = arith.constant 0 : i32
    %c0_i32_1 = arith.constant 0 : i32
    return %c0_i32, %c0_i32_0 : i32, i32
  }
  func.func @transform_12(%arg0: i32) -> (i32, i32, i32) {
    %c0_i32 = arith.constant 0 : i32
    %c0_i32_0 = arith.constant 0 : i32
    %c0_i32_1 = arith.constant 0 : i32
    %c0_i32_2 = arith.constant 0 : i32
    return %c0_i32, %c0_i32_0, %c0_i32_1 : i32, i32, i32
  }
  func.func @transform_13(%arg0: i32) -> (i32, i32, i32) {
    %c0_i32 = arith.constant 0 : i32
    %c0_i32_0 = arith.constant 0 : i32
    %c0_i32_1 = arith.constant 0 : i32
    %c0_i32_2 = arith.constant 0 : i32
    return %c0_i32, %c0_i32_0, %c0_i32_1 : i32, i32, i32
  }
  func.func @transform_14(%arg0: i32) -> (i32, i32, i32) {
    %c0_i32 = arith.constant 0 : i32
    %c0_i32_0 = arith.constant 0 : i32
    %c0_i32_1 = arith.constant 0 : i32
    %c0_i32_2 = arith.constant 0 : i32
    return %c0_i32, %c0_i32_0, %c0_i32_1 : i32, i32, i32
  }
  func.func @transform_15(%arg0: i32) -> (i32, i32, i32) {
    %c0_i32 = arith.constant 0 : i32
    %c0_i32_0 = arith.constant 0 : i32
    %c0_i32_1 = arith.constant 0 : i32
    %c0_i32_2 = arith.constant 0 : i32
    return %c0_i32, %c0_i32_0, %c0_i32_1 : i32, i32, i32
  }
  func.func @transform_16(%arg0: i32) -> (i32, i32, i32) {
    %c0_i32 = arith.constant 0 : i32
    %c0_i32_0 = arith.constant 0 : i32
    %c0_i32_1 = arith.constant 0 : i32
    %c0_i32_2 = arith.constant 0 : i32
    return %c0_i32, %c0_i32_0, %c0_i32_1 : i32, i32, i32
  }
  func.func @transform_17(%arg0: i32) -> (i32, i32, i32) {
    %c0_i32 = arith.constant 0 : i32
    %c0_i32_0 = arith.constant 0 : i32
    %c0_i32_1 = arith.constant 0 : i32
    %c0_i32_2 = arith.constant 0 : i32
    return %c0_i32, %c0_i32_0, %c0_i32_1 : i32, i32, i32
  }
  func.func @transform_18(%arg0: i32) -> (i32, i32, i32) {
    %c0_i32 = arith.constant 0 : i32
    %c0_i32_0 = arith.constant 0 : i32
    %c0_i32_1 = arith.constant 0 : i32
    %c0_i32_2 = arith.constant 0 : i32
    return %c0_i32, %c0_i32_0, %c0_i32_1 : i32, i32, i32
  }
  func.func @transform_19(%arg0: i32) -> (i32, i32, i32) {
    %c0_i32 = arith.constant 0 : i32
    %c0_i32_0 = arith.constant 0 : i32
    %c0_i32_1 = arith.constant 0 : i32
    %c0_i32_2 = arith.constant 0 : i32
    return %c0_i32, %c0_i32_0, %c0_i32_1 : i32, i32, i32
  }
  func.func @transform_20(%arg0: i32) -> (i32, i32, i32) {
    %c0_i32 = arith.constant 0 : i32
    %c0_i32_0 = arith.constant 0 : i32
    %c0_i32_1 = arith.constant 0 : i32
    %c0_i32_2 = arith.constant 0 : i32
    return %c0_i32, %c0_i32_0, %c0_i32_1 : i32, i32, i32
  }
  func.func @transform_21(%arg0: i32) -> (i32, i32) {
    %c0_i32 = arith.constant 0 : i32
    %c0_i32_0 = arith.constant 0 : i32
    %c0_i32_1 = arith.constant 0 : i32
    return %c0_i32, %c0_i32_0 : i32, i32
  }
  func.func @transform_22(%arg0: i32) -> (i32, i32) {
    %c0_i32 = arith.constant 0 : i32
    %c0_i32_0 = arith.constant 0 : i32
    %c0_i32_1 = arith.constant 0 : i32
    return %c0_i32, %c0_i32_0 : i32, i32
  }
  func.func @transform_23(%arg0: i32) -> (i32, i32) {
    %c0_i32 = arith.constant 0 : i32
    %c0_i32_0 = arith.constant 0 : i32
    %c0_i32_1 = arith.constant 0 : i32
    return %c0_i32, %c0_i32_0 : i32, i32
  }
  func.func @transform_24(%arg0: i32) -> (i32, i32, i32) {
    %c0_i32 = arith.constant 0 : i32
    %c0_i32_0 = arith.constant 0 : i32
    %c0_i32_1 = arith.constant 0 : i32
    return %arg0, %c0_i32, %c0_i32_0 : i32, i32, i32
  }
}

</mosaic_0001>

<bundles_post_ra>
// kernel: tpu_custom_call.1
= control target key start
LH: loop header
LB: loop body
LE: loop exit
PB: predicated region body
PF: predicated region fallthrough
CT: control target
= control target key end

     0   :  { %s6621_s0 = inlined_call_operand.vmem [shape: f32[2,66,8], index: 0, kind: input, shape index: {}]   ;;  %s6622_s1 = inlined_call_operand.vmem [shape: f32[2,22,24], index: 1, kind: input, shape index: {}]   ;;  %s6623_s2 = inlined_call_operand.vmem [shape: f32[66,66], index: 2, kind: input, shape index: {}]   ;;  %s6624_s3 = inlined_call_operand.hbm [shape: f32[8,128], index: 3, kind: input, shape index: {}]   ;;  %s6625_s4 = inlined_call_operand.vmem [shape: f32[66,128], index: 4, kind: input, shape index: {}]   ;;  %s6626_s5 = inlined_call_operand.vmem [shape: f32[66,128], index: 5, kind: input, shape index: {}]   ;;  %s6627_s6 = inlined_call_operand.vmem [shape: f32[24,384], index: 6, kind: input, shape index: {}]   ;;  %s6628_s7 = inlined_call_operand.hbm [shape: f32[1,384], index: 7, kind: input, shape index: {}]   ;;  %s6629_s8 = inlined_call_operand.hbm [shape: f32[1,384], index: 8, kind: input, shape index: {}]   ;;  %s6630_s9 = inlined_call_operand.hbm [shape: f32[22,22], index: 9, kind: input, shape index: {}]   ;;  %s6631_s10 = inlined_call_operand.vmem [shape: f32[22,384], index: 10, kind: input, shape index: {}]   ;;  %s6632_s11 = inlined_call_operand.vmem [shape: f32[22,384], index: 11, kind: input, shape index: {}]   ;;  %s6633_s12 = inlined_call_operand.vmem [shape: f32[3,66,22], index: 12, kind: input, shape index: {}]   ;;  %s6634_s13 = inlined_call_operand.vmem [shape: f32[1,256,256], index: 13, kind: input, shape index: {}]   ;;  %s6635_s14 = inlined_call_operand.vmem [shape: f32[1,66,66], index: 14, kind: input, shape index: {}]   ;;  %s6636_s15 = inlined_call_operand.vmem [shape: f32[1,66,256], index: 15, kind: input, shape index: {}]   ;;  %s6637_s16 = inlined_call_operand.vmem [shape: f32[1,66,256], index: 16, kind: input, shape index: {}]   ;;  %s6638_s17 = inlined_call_operand.vmem [shape: f32[1,256,256], index: 17, kind: input, shape index: {}]   ;;  %s6639_s18 = inlined_call_operand.vmem [shape: f32[1,66,66], index: 18, kind: input, shape index: {}]   ;;  %s6640_s19 = inlined_call_operand.vmem [shape: f32[1,66,256], index: 19, kind: input, shape index: {}]   ;;  %s6641_s20 = inlined_call_operand.vmem [shape: f32[1,66,256], index: 20, kind: input, shape index: {}]   ;;  %s6642_s21 = inlined_call_operand.vmem [shape: f32[256,8], index: 21, kind: input, shape index: {}]   ;;  %s6643_s22 = inlined_call_operand.vmem [shape: f32[66,66], index: 22, kind: input, shape index: {}]   ;;  %s6644_s23 = inlined_call_operand.vmem [shape: f32[1,8], index: 23, kind: input, shape index: {}]   ;;  %s6645_s24 = inlined_call_operand.vmem [shape: f32[2,66,8], index: 24, kind: output, shape index: {}]  }
   0x1   :  { %6659 = sst [smem:[#allocation14_spill]] %s6621_s0 }
   0x2   :  { %6660 = sst [smem:[#allocation15_spill]] %s6622_s1 }
   0x3   :  { %6661 = sst [smem:[#allocation16_spill]] %s6623_s2 }
   0x4   :  { %6662 = sst [smem:[#allocation17_spill]] %s6624_s3 }
   0x5   :  { %6663 = sst [smem:[#allocation18_spill]] %s6625_s4 }
   0x6   :  { %6664 = sst [smem:[#allocation19_spill]] %s6626_s5 }
   0x7   :  { %6665 = sst [smem:[#allocation20_spill]] %s6627_s6 }
   0x8   :  { %6666 = sst [smem:[#allocation21_spill]] %s6628_s7 }
   0x9   :  { %6667 = sst [smem:[#allocation22_spill]] %s6629_s8 }
   0xa   :  { %6668 = sst [smem:[#allocation23_spill]] %s6641_s20 }
   0xb   :  { %6669 = sst [smem:[#allocation24_spill]] %s6643_s22 }
   0xc   :  { %6670 = sst [smem:[#allocation25_spill]] %s6644_s23 }
   0xd   :  { %6671 = sst [smem:[#allocation26_spill]] %s6645_s24 }
   0xe   :  { %29 = vsyncpa [#allocation4], 0 }
   0xf   :  { %30 = vsyncpa [#allocation6], 0 }
  0x10   :  { %31 = vsyncpa [#allocation9], 0  ;;  %s5029_s5 = smov 0  }
  0x11 LB: > { %6672 = sst [smem:[#allocation13_spill]] %s4893_s5  ;;  %s4895_s26 = smov [#allocation5]   ;;  %s4893_s5 = sphi %s5029_s5, %s37_s5  }
  0x12   : > { %s618_s27 = sshll.u32 %s4895_s26, 4  ;;  %s5035_s28 = sadd.s32 4294967295, %s4893_s5   ;;  %s5040_s27 = int_to_ptr.vmem [resolvable:$true] %s618_s27 }
  0x13   : > { %p3713_p0 = scmp.ge.s32.totalorder %s4893_s5, 1  ;;  %p582_p1 = scmp.lt.s32.totalorder %s4893_s5, 3 }
  0x14   : > { %p4582_p2 = scmp.eq.s32.totalorder %s5035_s28, 0  ;;  %s4896_s2 = smov [#allocation3]  }
  0x15   : > { %p5042_p3 = pnand %p3713_p0, %p582_p1  ;;  %s598_s29 = sshll.u32 %s4896_s2, 4  ;;  %s5048_s29 = int_to_ptr.vmem [resolvable:$true] %s598_s29 }
  0x16   : > { %s4897_s0 = smov [#allocation7]   ;;  %s4898_s3 = smov [#allocation8]  }
  0x17   : > { %p4569_p4 = pneg %p5042_p3  ;;  %s629_s7 = sshll.u32 %s4897_s0, 4  ;;  %s5056_s7 = int_to_ptr.vmem [resolvable:$true] %s629_s7 }
  0x18   : > { %s639_s25 = sshll.u32 %s4898_s3, 4  ;;  %s6675_s1 = sld [smem:[#allocation21_spill]]  ;;  %s5058_s25 = int_to_ptr.vmem [resolvable:$true] %s639_s25 }
  0x19   : > { %p5052_p5 = pnand %p4582_p2, %p4569_p4 }
  0x1b   : > { %p5068_p7 = pneg %p5052_p5 }
  0x1e   : > { %s4763_s26 = scalar_lea.hbm %s6675_s1, 48 }
  0x1f   : > { %p4764_p6 = scmp.ne.s32.totalorder %s6675_s1, %s4763_s26  ;;  %p4770_p10 = scmp.lt.u32.totalorder %s4763_s26, %s6675_s1 }
  0x21   : > { %p4766_p8 = pnand %p5068_p7, %p4764_p6 }
  0x23   : > { %p4767_p9 = pneg %p4766_p8 }
  0x25   : > { %p4772_p11 = pnand %p4770_p10, %p4767_p9 }
  0x27   : > { %4775 = shalt.err (!%p4772_p11)
}
  0x28   : > { %s4776_s5 = scalar_lea.vmem %s5040_s27, 48  ;;  %s4783_s8 = scalar_lea.vmem %s5040_s27, 64 }
  0x29   : > { %p4777_p12 = scmp.ne.s32.totalorder %s5040_s27, %s4776_s5  ;;  %p4784_p1 = scmp.lt.s32.totalorder %s5040_s27, %s5040_s27 }
  0x2a   : > { %p4785_p4 = scmp.lt.s32.totalorder %s4783_s8, %s4776_s5 }
  0x2b   : > { %p4779_p13 = pnand %p4777_p12, %p5068_p7 }
  0x2c   : > { %p4786_p6 = por %p4785_p4, %p4784_p1 }
  0x2d   : > { %p4780_p0 = pneg %p4779_p13 }
  0x2f   : > { %p4787_p8 = pnand %p4786_p6, %p4780_p0 }
  0x31   : > { %4790 = shalt.err (!%p4787_p8)
}
  0x32   : > { %4575 = dma.hbm_to_vmem [thread:$0]  (!%p5052_p5), %s6675_s1, 48, %s5040_s27, [#allocation6]  }
  0x33   : > { %s6677_s3 = sld [smem:[#allocation17_spill]] }
  0x39   : > { %s4791_s23 = scalar_lea.hbm %s6677_s3, 128 }
  0x3a   : > { %p4792_p9 = scmp.ne.s32.totalorder %s6677_s3, %s4791_s23  ;;  %p4798_p12 = scmp.lt.u32.totalorder %s4791_s23, %s6677_s3 }
  0x3c   : > { %p4794_p10 = pnand %p4792_p9, %p5068_p7 }
  0x3e   : > { %p4795_p11 = pneg %p4794_p10 }
  0x40   : > { %p4800_p13 = pnand %p4798_p12, %p4795_p11 }
  0x42   : > { %4803 = shalt.err (!%p4800_p13)
}
  0x43   : > { %s4804_s27 = scalar_lea.vmem %s5048_s29, 128  ;;  %p4812_p6 = scmp.lt.s32.totalorder %s5048_s29, %s5048_s29 }
  0x44   : > { %p4805_p0 = scmp.ne.s32.totalorder %s5048_s29, %s4804_s27  ;;  %p4813_p8 = scmp.lt.s32.totalorder %s4804_s27, %s4804_s27 }
  0x46   : > { %p4807_p1 = pnand %p4805_p0, %p5068_p7  ;;  %p4814_p9 = por %p4813_p8, %p4812_p6 }
  0x48   : > { %p4808_p4 = pneg %p4807_p1 }
  0x4a   : > { %p4815_p10 = pnand %p4814_p9, %p4808_p4 }
  0x4c   : > { %4818 = shalt.err (!%p4815_p10)
}
  0x4d   : > { %4572 = dma.hbm_to_vmem [thread:$0]  (!%p5052_p5), %s6677_s3, 128, %s5048_s29, [#allocation4]  }
  0x4e   : > { %s6678_s4 = sld [smem:[#allocation22_spill]] }
  0x54   : > { %s4819_s26 = scalar_lea.hbm %s6678_s4, 48 }
  0x55   : > { %p4820_p11 = scmp.ne.s32.totalorder %s6678_s4, %s4819_s26  ;;  %p4826_p0 = scmp.lt.u32.totalorder %s4819_s26, %s6678_s4 }
  0x57   : > { %p4822_p12 = pnand %p4820_p11, %p5068_p7 }
  0x59   : > { %p4823_p13 = pneg %p4822_p12 }
  0x5b   : > { %p4828_p1 = pnand %p4826_p0, %p4823_p13 }
  0x5d   : > { %4831 = shalt.err (!%p4828_p1)
}
  0x5e   : > { %s4832_s29 = scalar_lea.vmem %s5056_s7, 48  ;;  %s4839_s20 = scalar_lea.vmem %s5056_s7, 64 }
  0x5f   : > { %p4833_p4 = scmp.ne.s32.totalorder %s5056_s7, %s4832_s29  ;;  %p4840_p9 = scmp.lt.s32.totalorder %s5056_s7, %s5056_s7 }
  0x60   : > { %p4841_p10 = scmp.lt.s32.totalorder %s4839_s20, %s4832_s29 }
  0x61   : > { %p4835_p6 = pnand %p4833_p4, %p5068_p7 }
  0x62   : > { %p4842_p11 = por %p4841_p10, %p4840_p9 }
  0x63   : > { %p4836_p8 = pneg %p4835_p6 }
  0x65   : > { %p4843_p12 = pnand %p4842_p11, %p4836_p8 }
  0x67   : > { %4846 = shalt.err (!%p4843_p12)
}
  0x68   : > { %4578 = dma.hbm_to_vmem [thread:$0]  (!%p5052_p5), %s6678_s4, 48, %s5056_s7, [#allocation6]  }
  0x69   : > { %s4847_s2 = scalar_lea.hbm %s6630_s9, 384 }
  0x6a   : > { %p4848_p13 = scmp.ne.s32.totalorder %s6630_s9, %s4847_s2  ;;  %p4854_p4 = scmp.lt.u32.totalorder %s4847_s2, %s6630_s9 }
  0x6c   : > { %p4850_p0 = pnand %p4848_p13, %p5068_p7 }
  0x6e   : > { %p4851_p1 = pneg %p4850_p0 }
  0x70   : > { %p4856_p6 = pnand %p4854_p4, %p4851_p1 }
  0x72   : > { %4859 = shalt.err (!%p4856_p6)
}
  0x73   : > { %s4860_s7 = scalar_lea.vmem %s5058_s25, 384  ;;  %p4868_p11 = scmp.lt.s32.totalorder %s5058_s25, %s5058_s25 }
  0x74   : > { %p4861_p8 = scmp.ne.s32.totalorder %s5058_s25, %s4860_s7  ;;  %p4869_p12 = scmp.lt.s32.totalorder %s4860_s7, %s4860_s7 }
  0x76   : > { %p4863_p9 = pnand %p4861_p8, %p5068_p7  ;;  %p4870_p13 = por %p4869_p12, %p4868_p11 }
  0x78   : > { %p4864_p10 = pneg %p4863_p9 }
  0x7a   : > { %p4871_p0 = pnand %p4870_p13, %p4864_p10 }
  0x7c   : > { %4874 = shalt.err (!%p4871_p0)
}
  0x7d   : > { %s4899_s20 = smov 128   ;;  %s4900_s22 = smov 8  }
  0x7e   : > { %4581 = dma.hbm_to_vmem [thread:$0]  (!%p5052_p5), %s6630_s9, 384, %s5058_s25, [#allocation9], %s4899_s20, %s4899_s20, %s4900_s22  }
  0x7f   : > { %713 = sbr.rel (%p5042_p3) target bundleno = 3202 (0xc82), region = 116 }
  0x86   : > { %4880 = dma.done.wait (%p4582_p2), [#allocation4], 128  }
  0x87   : > { %4882 = vsyncadd (%p4582_p2), [#allocation4], 4294967168 }
  0x88   : > { %4884 = dma.done.wait (%p4582_p2), [#allocation6], 96  }
  0x89   : > { %4886 = vsyncadd (%p4582_p2), [#allocation6], 4294967200 }
  0x8a   : > { %4888 = dma.done.wait (%p4582_p2), [#allocation9], 384  }
  0x8b   : > { %4890 = vsyncadd (%p4582_p2), [#allocation9], 4294966912  ;;  %p796_p3 = scmp.lt.s32.totalorder %s5035_s28, 1  ;;  %v4901_v0 = vmov 0.0|0.0   ;;  %v4902_v1 = vmov 0.0   ;;  %vm4903_vm0 = vmmov 0   ;;  %v1342_v58 = vlaneseq }
  0x8c   : > { %4267 = vmatprep.subr.bf16.mxu0 %v4901_v0  ;;  %4055 = vmatprep.subr.mxu1 %v4902_v1  ;;  %s6679_s0 = sld [smem:[#allocation14_spill]]  ;;  %vm857_vm1 = vcmask 1041408   ;;  %s6680_s8 = sld [smem:[#allocation16_spill]]  ;;  %vm829_vm2 = vcmask 539648   ;;  %v971_v24 = vld [vmem:[#allocation3] sm:$0xff]  ;;  %vm972_vm3 = vcmask 64512  }
  0x8d   : > { %s6693_s28 = smov (!%p796_p3, %s5035_s28), 1  ;;  %4028 = vmatprep.mubr.msk.f32.mxu0 %vm4903_vm0, %v4902_v1  ;;  %4057 = vmatprep.mubr.msk.f32.mxu1 %vm4903_vm0, %v4902_v1  ;;  %s6681_s24 = sld [smem:[#allocation20_spill]]  ;;  %vm1167_vm4 = vcmask 195584   ;;  %v5332_v59 = vshrl.u32 %v1342_v58, 7  ;;  %v5335_v61 = vld [vmem:[#allocation7] sm:$0x7] }
  0x8e   : > { %s6656_s6 = smul.u32 72, %s6693_s28  ;;  %4056 = vmatpush3.msra.mxu1 %v971_v24  ;;  %s6683_s25 = sld [smem:[#allocation18_spill]]  ;;  %vm1374_vm5 = vcmask 1045504   ;;  %vm1564_vm10 = vcmask 179200   ;;  %vm1571_vm13 = vcmask 177152  }
  0x8f   : > { %s4552_s23 = smul.u32 24, %s6693_s28  ;;  %v1348_v60 = vsub.s32 1, %v5332_v59  ;;  %v1352_v63 = vsub.s32 2, %v5332_v59  ;;  %s6684_s5 = sld [smem:[#allocation19_spill]] }
  0x90   : > { %s6686_s1 = sld [smem:[#allocation23_spill]]  ;;  %s6687_s22 = sld [smem:[#allocation24_spill]] }
  0x91   : > { %v1391_v62 = vrot.slane %v5335_v61, %v1348_v60  ;;  %s6689_s30 = smul.u32 72, %s6693_s28 }
  0x92   : > { %s5190_s26 = scalar_lea.vmem %s6679_s0, %s6656_s6  ;;  %v820_v15 = vld [vmem:[%s6680_s8] sm:$0xff]  ;;  %v821_v16 = vld [vmem:[%s6680_s8 + $0x8] sm:$0xff]  ;;  %v822_v17 = vld [vmem:[%s6680_s8 + $0x10] sm:$0xff]  ;;  %s6682_s0 = sld [smem:[#allocation15_spill]] }
  0x93   : > { %v811_v2 = vld [vmem:[%s5190_s26] sm:$0xff]  ;;  %v812_v3 = vld [vmem:[%s5190_s26 + $0x8] sm:$0xff]  ;;  %v813_v4 = vld [vmem:[%s5190_s26 + $0x10] sm:$0xff] }
  0x94   : > { %v4268_v5 = vpack.c.bf16 %v812_v3, %v811_v2  ;;  %v814_v6 = vld [vmem:[%s5190_s26 + $0x18] sm:$0xff]  ;;  %v815_v8 = vld [vmem:[%s5190_s26 + $0x20] sm:$0xff]  ;;  %v816_v9 = vld [vmem:[%s5190_s26 + $0x28] sm:$0xff]  ;;  %v5344_v2 = vrot.slane %v5335_v61, %v1352_v63 }
  0x95   : > { %v4271_v7 = vpack.c.bf16 %v814_v6, %v813_v4  ;;  %v4274_v10 = vpack.c.bf16 %v816_v9, %v815_v8  ;;  %v817_v11 = vld [vmem:[%s5190_s26 + $0x30] sm:$0xff]  ;;  %v818_v12 = vld [vmem:[%s5190_s26 + $0x38] sm:$0xff]  ;;  %v819_v14 = vld [vmem:[%s5190_s26 + $0x40] sm:$0x3]  ;;  %s6685_s27 = smov %s6684_s5 }
  0x96   : > { %4269 = vmatpush3.bf16.msra.mxu0 %v4268_v5  ;;  %v4277_v13 = vpack.c.bf16 %v818_v12, %v817_v11  ;;  %v823_v18 = vld [vmem:[%s6680_s8 + $0x18] sm:$0xff]  ;;  %v824_v19 = vld [vmem:[%s6680_s8 + $0x20] sm:$0xff]  ;;  %v825_v20 = vld [vmem:[%s6680_s8 + $0x28] sm:$0xff] }
  0x97   : > { %4270 = vmatprep.subr.bf16.mxu0 %v4901_v0  ;;  %v826_v21 = vld [vmem:[%s6680_s8 + $0x30] sm:$0xff]  ;;  %v827_v22 = vld [vmem:[%s6680_s8 + $0x38] sm:$0xff]  ;;  %v828_v23 = vld [vmem:[%s6680_s8 + $0x40] sm:$0x3] }
  0x98   : > { %v1159_v25 = vld [vmem:[%s6681_s24 + $0x8] sm:$0xff]  ;;  %v1162_v26 = vld [vmem:[%s6681_s24 + $0x20] sm:$0xff]  ;;  %v1161_v29 = vld [vmem:[%s6681_s24 + $0x18] sm:$0xff]  ;;  %s805_s2 = scalar_lea.vmem %s6682_s0, %s4552_s23  ;;  %s6688_s23 = sld [smem:[#allocation25_spill]] }
  0x99   : > { %v4279_v27 = vpack.c.bf16 %v1162_v26, %v1159_v25  ;;  %v1158_v28 = vld [vmem:[%s6681_s24] sm:$0xff]  ;;  %v1165_v32 = vld [vmem:[%s6681_s24 + $0x38] sm:$0xff]  ;;  %v1164_v34 = vld [vmem:[%s6681_s24 + $0x30] sm:$0xff] }
  0x9a   : > { %4272 = vmatpush3.bf16.msra.mxu0 %v4271_v7  ;;  %v4281_v30 = vpack.c.bf16 %v1161_v29, %v1158_v28  ;;  %v1160_v49 = vld [vmem:[%s6681_s24 + $0x10] sm:$0xff]  ;;  %v1163_v50 = vld [vmem:[%s6681_s24 + $0x28] sm:$0xff]  ;;  %v1155_v53 = vld [vmem:[%s805_s2] sm:$0xff] }
  0x9b   : > { %4273 = vmatprep.subr.bf16.mxu0 %v4901_v0  ;;  %4280 = vmatprep.subr.bf16.mxu1 %v4279_v27  ;;  %v4284_v54 = vpack.c.bf16 %v1163_v50, %v1160_v49  ;;  %v1156_v55 = vld [vmem:[%s805_s2 + $0x8] sm:$0xff]  ;;  %v1166_v56 = vld [vmem:[%s6681_s24 + $0x40] sm:$0xff]  ;;  %v1157_v57 = vld [vmem:[%s805_s2 + $0x10] sm:$0x3f]  ;;  %v5391_v49 = vsub.s32 0, %v5332_v59 }
  0x9c   : > { %v1111_v5 = vld [vmem:[%s6683_s25 + $0x8] sm:$0xff]  ;;  %v1132_v25 = vld [vmem:[%s6685_s27 + $0x20] sm:$0xff] }
  0x9d   : > { %v1129_v7 = vld [vmem:[%s6684_s5 + $0x8] sm:$0xff]  ;;  %v1118_v50 = vld [vmem:[%s6683_s25 + $0x40] sm:$0x3]  ;;  %s6690_s5 = sld [smem:[#allocation26_spill]] }
  0x9e   : > { %4275 = vmatpush3.bf16.msra.mxu0 %v4274_v10  ;;  %v1112_v10 = vld [vmem:[%s6683_s25 + $0x10] sm:$0xff]  ;;  %v1115_v28 = vld [vmem:[%s6683_s25 + $0x28] sm:$0xff] }
  0x9f   : > { %4276 = vmatprep.subr.bf16.mxu0 %v4901_v0 }
  0xa2   : > { %4278 = vmatpush3.bf16.msra.mxu0 %v4277_v13  ;;  %v1130_v13 = vld [vmem:[%s6685_s27 + $0x10] sm:$0xff] }
  0xa3   : > { %4026 = vmatprep.subr.mxu0 %v4902_v1 }
  0xa6   : > { %4027 = vmatpush3.msk.msra.mxu0 %vm857_vm1, %v819_v14 }
  0xa7   : > { %4029 = vmatmul.mubr.msk.f32.vlgmr.msra.gmra.mrb[0].mxu0 %vm829_vm2, %v820_v15 }
  0xa8   : > { %4031 = vmatprep.mubr.msk.f32.mxu0 %vm4903_vm0, %v4902_v1 }
  0xab   : > { %4032 = vmatmul.mubr.msk.f32.gmra.mrb[2].mxu0 %vm829_vm2, %v821_v16  ;;  %v1113_v16 = vld [vmem:[%s6683_s25 + $0x18] sm:$0xff] }
  0xac   : > { %4034 = vmatprep.mubr.msk.f32.mxu0 %vm4903_vm0, %v4902_v1 }
  0xaf   : > { %4035 = vmatmul.mubr.msk.f32.gmra.mrb[4].mxu0 %vm829_vm2, %v822_v17 }
  0xb0   : > { %4037 = vmatprep.mubr.msk.f32.mxu0 %vm4903_vm0, %v4902_v1 }
  0xb3   : > { %4038 = vmatmul.mubr.msk.f32.gmra.mrb[6].mxu0 %vm829_vm2, %v823_v18 }
  0xb4   : > { %4040 = vmatprep.mubr.msk.f32.mxu0 %vm4903_vm0, %v4902_v1 }
  0xb7   : > { %4041 = vmatmul.mubr.msk.f32.gmra.mrb[8].mxu0 %vm829_vm2, %v824_v19  ;;  %v1131_v19 = vld [vmem:[%s6685_s27 + $0x18] sm:$0xff] }
  0xb8   : > { %4043 = vmatprep.mubr.msk.f32.mxu0 %vm4903_vm0, %v4902_v1 }
  0xbb   : > { %4044 = vmatmul.mubr.msk.f32.gmra.mrb[10].mxu0 %vm829_vm2, %v825_v20 }
  0xbc   : > { %4046 = vmatprep.mubr.msk.f32.mxu0 %vm4903_vm0, %v4902_v1 }
  0xbf   : > { %4047 = vmatmul.mubr.msk.f32.gmra.mrb[12].mxu0 %vm829_vm2, %v826_v21 }
  0xc0   : > { %4049 = vmatprep.mubr.msk.f32.mxu0 %vm4903_vm0, %v4902_v1 }
  0xc3   : > { %4050 = vmatmul.mubr.msk.f32.gmra.mrb[14].mxu0 %vm829_vm2, %v827_v22  ;;  %v1114_v22 = vld [vmem:[%s6683_s25 + $0x20] sm:$0xff] }
  0xc4   : > { %4052 = vmatprep.mubr.msk.f32.mxu0 %vm4903_vm0, %v4902_v1 }
  0xc7   : > { %4053 = vmatmul.mubr.msk.f32.gmra.mrb[16].mxu0 %vm829_vm2, %v828_v23 }
  0xc8   : > { %1463 = vmatprep.mubr.f32.mxu0 %v1391_v62 }
 0x17a   : > { %v927_v31 = vpop.f32.mrb[0].mxu0 }
 0x17b   : > { %v4030_v33 = vpop.f32.mrb[1].mxu0  ;;  %4058 = vmatmul.mubr.msk.f32.vlgmr.msra.gmra.mrb[0].mxu1 %vm972_vm3, %v927_v31 }
 0x17c   : > { %4060 = vmatprep.mubr.msk.f32.mxu1 %vm4903_vm0, %v4902_v1  ;;  %4282 = vmatpush1.bf16.msra.mxu1 %v4281_v30 }
 0x17d   : > { %1181 = vmatprep.subr.mxu1 %v1165_v32  ;;  %v1133_v32 = vld [vmem:[%s6685_s27 + $0x28] sm:$0xff] }
 0x17e   : > { %v932_v35 = vpop.f32.mrb[2].mxu0 }
 0x17f   : > { %v4033_v36 = vpop.f32.mrb[3].mxu0  ;;  %4061 = vmatmul.mubr.msk.f32.gmra.mrb[2].mxu1 %vm972_vm3, %v932_v35  ;;  %v1116_v35 = vld [vmem:[%s6683_s25 + $0x30] sm:$0xff] }
 0x180   : > { %4063 = vmatprep.mubr.msk.f32.mxu1 %vm4903_vm0, %v4902_v1  ;;  %1182 = vmatpush1.msra.mxu1 %v1164_v34 }
 0x181   : > { %4283 = vmatprep.subr.bf16.mxu1 %v4901_v0 }
 0x182   : > { %v937_v37 = vpop.f32.mrb[4].mxu0 }
 0x183   : > { %v4036_v38 = vpop.f32.mrb[5].mxu0  ;;  %4064 = vmatmul.mubr.msk.f32.gmra.mrb[4].mxu1 %vm972_vm3, %v937_v37 }
 0x184   : > { %4066 = vmatprep.mubr.msk.f32.mxu1 %vm4903_vm0, %v4902_v1 }
 0x186   : > { %v942_v39 = vpop.f32.mrb[6].mxu0 }
 0x187   : > { %v4039_v40 = vpop.f32.mrb[7].mxu0  ;;  %4067 = vmatmul.mubr.msk.f32.gmra.mrb[6].mxu1 %vm972_vm3, %v942_v39  ;;  %v1134_v39 = vld [vmem:[%s6685_s27 + $0x30] sm:$0xff] }
 0x188   : > { %4069 = vmatprep.mubr.msk.f32.mxu1 %vm4903_vm0, %v4902_v1 }
 0x18a   : > { %v947_v41 = vpop.f32.mrb[8].mxu0 }
 0x18b   : > { %v4042_v42 = vpop.f32.mrb[9].mxu0  ;;  %4070 = vmatmul.mubr.msk.f32.gmra.mrb[8].mxu1 %vm972_vm3, %v947_v41 }
 0x18c   : > { %4072 = vmatprep.mubr.msk.f32.mxu1 %vm4903_vm0, %v4902_v1  ;;  %v1117_v42 = vld [vmem:[%s6683_s25 + $0x38] sm:$0xff] }
 0x18e   : > { %v952_v43 = vpop.f32.mrb[10].mxu0 }
 0x18f   : > { %v4045_v44 = vpop.f32.mrb[11].mxu0  ;;  %4073 = vmatmul.mubr.msk.f32.gmra.mrb[10].mxu1 %vm972_vm3, %v952_v43 }
 0x190   : > { %4075 = vmatprep.mubr.msk.f32.mxu1 %vm4903_vm0, %v4902_v1 }
 0x192   : > { %v957_v45 = vpop.f32.mrb[12].mxu0 }
 0x193   : > { %v4048_v46 = vpop.f32.mrb[13].mxu0  ;;  %4076 = vmatmul.mubr.msk.f32.gmra.mrb[12].mxu1 %vm972_vm3, %v957_v45 }
 0x194   : > { %4078 = vmatprep.mubr.msk.f32.mxu1 %vm4903_vm0, %v4902_v1  ;;  %v1135_v46 = vld [vmem:[%s6685_s27 + $0x38] sm:$0xff] }
 0x196   : > { %v962_v47 = vpop.f32.mrb[14].mxu0 }
 0x197   : > { %v4051_v48 = vpop.f32.mrb[15].mxu0  ;;  %4079 = vmatmul.mubr.msk.f32.gmra.mrb[14].mxu1 %vm972_vm3, %v962_v47 }
 0x198   : > { %4081 = vmatprep.mubr.msk.f32.mxu1 %vm4903_vm0, %v4902_v1 }
 0x19a   : > { %v967_v51 = vpop.f32.mrb[16].mxu0 }
 0x19b   : > { %v4054_v52 = vpop.f32.mrb[17].mxu0  ;;  %4082 = vmatmul.mubr.msk.f32.gmra.mrb[16].mxu1 %vm972_vm3, %v967_v51  ;;  %v1340_v51 = vld [vmem:[#allocation5] sm:$0x7] }
 0x19c   : > { %1241 = vmatprep.mubr.f32.mxu1 %v4902_v1  ;;  %v1345_v58 = vrot.slane %v1340_v51, %v5391_v49  ;;  %v1349_v62 = vrot.slane %v1340_v51, %v1348_v60 }
 0x19f   : > { %3746 = vmatmul.mubr.msk.f32.vlgmr.msra.gmra.mrb[18].mxu1 %vm1167_vm4, %v1155_v53 }
 0x1a0   : > { %1247 = vmatprep.mubr.f32.mxu1 %v4902_v1  ;;  %4285 = vmatpush3.bf16.msra.mxu1 %v4284_v54 }
 0x1a1   : > { %4088 = vmatprep.subr.mxu1 %v4902_v1 }
 0x1a3   : > { %3747 = vmatmul.mubr.msk.f32.gmra.mrb[20].mxu1 %vm1167_vm4, %v1156_v55 }
 0x1a4   : > { %1253 = vmatprep.mubr.f32.mxu1 %v4902_v1  ;;  %4089 = vmatpush3.msra.mxu1 %v1166_v56 }
 0x1a7   : > { %3748 = vmatmul.mubr.msk.f32.gmra.mrb[22].mxu1 %vm1167_vm4, %v1157_v57 }
 0x1a8   : > { %4090 = vmatprep.mubr.msk.f32.mxu1 %vm4903_vm0, %v4902_v1 }
 0x1ab   : > { %4091 = vmatmul.mubr.msk.f32.vlgmr.msra.gmra.mrb[24].mxu1 %vm1167_vm4, %v1155_v53 }
 0x1ac   : > { %4093 = vmatprep.mubr.msk.f32.mxu1 %vm4903_vm0, %v4902_v1 }
 0x1af   : > { %4094 = vmatmul.mubr.msk.f32.gmra.mrb[26].mxu1 %vm1167_vm4, %v1156_v55  ;;  %v1136_v55 = vld [vmem:[%s6685_s27 + $0x40] sm:$0x3] }
 0x1b0   : > { %4096 = vmatprep.mubr.msk.f32.mxu1 %vm4903_vm0, %v4902_v1 }
 0x1b3   : > { %4097 = vmatmul.mubr.msk.f32.gmra.mrb[28].mxu1 %vm1167_vm4, %v1157_v57 }
 0x1b4   : > { %1681 = vmatprep.mubr.f32.mxu1 %v4902_v1 }
 0x24e   : > { %v5346_v3 = vpop.f32.mrb[0].mxu1 }
 0x24f   : > { %v4059_v4 = vpop.f32.mrb[1].mxu1 }
 0x252   : > { %v1071_v6 = vpop.f32.mrb[2].mxu1 }
 0x253   : > { %v1120_v8 = vmul.f32 %v1111_v5, %v1071_v6  ;;  %v4062_v9 = vpop.f32.mrb[3].mxu1 }
 0x255   : > { %v1138_v11 = vadd.f32 %v1129_v7, %v1120_v8 }
 0x256   : > { %v1076_v12 = vpop.f32.mrb[4].mxu1 }
 0x257   : > { %4607 = vtanh.f32 %v1138_v11  ;;  %v1121_v14 = vmul.f32 %v1112_v10, %v1076_v12  ;;  %v4065_v15 = vpop.f32.mrb[5].mxu1 }
 0x259   : > { %v1139_v17 = vadd.f32 %v1130_v13, %v1121_v14 }
 0x25a   : > { %v1081_v18 = vpop.f32.mrb[6].mxu1 }
 0x25b   : > { %4609 = vtanh.f32 %v1139_v17  ;;  %v1122_v20 = vmul.f32 %v1113_v16, %v1081_v18  ;;  %v4068_v21 = vpop.f32.mrb[7].mxu1 }
 0x25d   : > { %v1140_v23 = vadd.f32 %v1131_v19, %v1122_v20 }
 0x25e   : > { %v1086_v24 = vpop.f32.mrb[8].mxu1 }
 0x25f   : > { %4611 = vtanh.f32 %v1140_v23  ;;  %v1123_v26 = vmul.f32 %v1114_v22, %v1086_v24  ;;  %v4071_v27 = vpop.f32.mrb[9].mxu1  ;;  %v1353_v22 = vrot.slane %v1340_v51, %v1352_v63  ;;  %v1557_v51 = vld [vmem:[#allocation8 + $0x10] sm:$0x3f] }
 0x260   : > { %vm1560_vm12 = vcmp.gt.f32.partialorder %v1557_v51, 0.0 }
 0x261   : > { %v4608_v29 = vpop.eup %4607  ;;  %v1141_v30 = vadd.f32 %v1132_v25, %v1123_v26 }
 0x262   : > { %2338 = vst [vmem:[#allocation2 + $0x18] sm:$0xff] %v4608_v29  ;;  %v1091_v31 = vpop.f32.mrb[10].mxu1 }
 0x263   : > { %4613 = vtanh.f32 %v1141_v30  ;;  %v1124_v33 = vmul.f32 %v1115_v28, %v1091_v31  ;;  %v4074_v34 = vpop.f32.mrb[11].mxu1  ;;  %v1387_v31 = vrot.slane %v5335_v61, %v5391_v49 }
 0x265   : > { %v4610_v36 = vpop.eup %4609  ;;  %v1142_v37 = vadd.f32 %v1133_v32, %v1124_v33 }
 0x266   : > { %2339 = vst [vmem:[#allocation2 + $0x28] sm:$0xff] %v4610_v36  ;;  %v1096_v38 = vpop.f32.mrb[12].mxu1 }
 0x267   : > { %4615 = vtanh.f32 %v1142_v37  ;;  %v1125_v40 = vmul.f32 %v1116_v35, %v1096_v38  ;;  %v4077_v41 = vpop.f32.mrb[13].mxu1 }
 0x269   : > { %v4612_v43 = vpop.eup %4611  ;;  %v1143_v44 = vadd.f32 %v1134_v39, %v1125_v40 }
 0x26a   : > { %2340 = vst [vmem:[#allocation2 + $0x38] sm:$0xff] %v4612_v43  ;;  %v1101_v45 = vpop.f32.mrb[14].mxu1 }
 0x26b   : > { %4617 = vtanh.f32 %v1143_v44  ;;  %v1126_v47 = vmul.f32 %v1117_v42, %v1101_v45  ;;  %v4080_v48 = vpop.f32.mrb[15].mxu1  ;;  %v1556_v44 = vld [vmem:[#allocation8 + $0x8] sm:$0xff]  ;;  %v1555_v45 = vld [vmem:[#allocation8] sm:$0xff] }
 0x26c   : > { %vm1559_vm6 = vcmp.gt.f32.partialorder %v1556_v44, 0.0  ;;  %vm1558_vm7 = vcmp.gt.f32.partialorder %v1555_v45, 0.0 }
 0x26d   : > { %v4614_v52 = vpop.eup %4613  ;;  %v1144_v53 = vadd.f32 %v1135_v46, %v1126_v47 }
 0x26e   : > { %2341 = vst [vmem:[#allocation2 + $0x48] sm:$0xff] %v4614_v52  ;;  %v1106_v54 = vpop.f32.mrb[16].mxu1 }
 0x26f   : > { %4619 = vtanh.f32 %v1144_v53  ;;  %v1127_v56 = vmul.f32 %v1118_v50, %v1106_v54  ;;  %v4083_v57 = vpop.f32.mrb[17].mxu1 }
 0x271   : > { %v4616_v4 = vpop.eup %4615  ;;  %v1145_v5 = vadd.f32 %v1136_v55, %v1127_v56 }
 0x272   : > { %2342 = vst [vmem:[#allocation2 + $0x58] sm:$0xff] %v4616_v4  ;;  %v1243_v6 = vpop.f32.mrb[18].mxu1 }
 0x273   : > { %4621 = vtanh.f32 %v1145_v5  ;;  %v1357_v7 = vmul.f32 %v1345_v58, %v1243_v6  ;;  %v1245_v8 = vpop.f32.mrb[19].mxu1 }
 0x274   : > { %v1358_v9 = vmul.f32 %v1349_v62, %v1245_v8 }
 0x275   : > { %v4618_v10 = vpop.eup %4617 }
 0x276   : > { %2343 = vst [vmem:[#allocation2 + $0x68] sm:$0xff] %v4618_v10  ;;  %v1249_v11 = vpop.f32.mrb[20].mxu1  ;;  %v1366_v12 = vadd.f32 %v1358_v9, %v1357_v7 }
 0x277   : > { %v1360_v13 = vmul.f32 %v1345_v58, %v1249_v11  ;;  %v4288_v14 = vpack.c.bf16 %v1249_v11, %v1243_v6  ;;  %v1251_v15 = vpop.f32.mrb[21].mxu1 }
 0x278   : > { %v1361_v16 = vmul.f32 %v1349_v62, %v1251_v15  ;;  %v4286_v17 = vpack.c.bf16 %v1251_v15, %v1245_v8 }
 0x279   : > { %v4620_v18 = vpop.eup %4619 }
 0x27a   : > { %2344 = vst [vmem:[#allocation2 + $0x78] sm:$0xff] %v4620_v18  ;;  %4287 = vmatprep.subr.bf16.mxu0 %v4286_v17  ;;  %4294 = vmatprep.subr.bf16.mxu1 %v4286_v17  ;;  %v1255_v60 = vpop.f32.mrb[22].mxu1  ;;  %v1370_v19 = vadd.f32 %v1361_v16, %v1360_v13 }
 0x27b   : > { %4289 = vmatpush1.bf16.xpose.msra.mxu0 %v4288_v14  ;;  %4296 = vmatpush1.bf16.msra.mxu1 %v4288_v14  ;;  %v1363_v20 = vmul.f32 %v1345_v58, %v1255_v60  ;;  %v1257_v21 = vpop.f32.mrb[23].mxu1 }
 0x27c   : > { %v1364_v23 = vmul.f32 %v1349_v62, %v1257_v21  ;;  %1403 = vmatprep.subr.mxu0 %v1257_v21  ;;  %3752 = vmatprep.subr.msk.mxu1 %vm1374_vm5, %v1257_v21 }
 0x27d   : > { %v4622_v24 = vpop.eup %4621  ;;  %v1375_v25 = vsel %vm1374_vm5, %v1363_v20, 0.0 }
 0x27e   : > { %2345 = vst [vmem:[#allocation2 + $0x88] sm:$0x3] %v4622_v24  ;;  %v1326_v26 = vpop.f32.mrb[24].mxu1  ;;  %v1376_v27 = vsel %vm1374_vm5, %v1364_v23, 0.0  ;;  %v1110_v23 = vld [vmem:[%s6683_s25] sm:$0xff] }
 0x27f   : > { %v1359_v28 = vmul.f32 %v1353_v22, %v1326_v26  ;;  %v4092_v29 = vpop.f32.mrb[25].mxu1  ;;  %3753 = vmatpush1.msk.msra.mxu1 %vm1374_vm5, %v1255_v60  ;;  %v1377_v30 = vadd.f32 %v1376_v27, %v1375_v25  ;;  %v1119_v24 = vmul.f32 %v1110_v23, %v5346_v3  ;;  %v1829_v23 = vld [vmem:[%s6631_s10 + $0x20] sm:$0xff] }
 0x280   : > { %4300 = vmatprep.subr.bf16.mxu1 %v4901_v0 }
 0x281   : > { %v1367_v59 = vadd.f32 %v1366_v12, %v1359_v28 }
 0x282   : > { %v1331_v63 = vpop.f32.mrb[26].mxu1 }
 0x283   : > { %v1362_v32 = vmul.f32 %v1353_v22, %v1331_v63  ;;  %v4291_v33 = vpack.c.bf16 %v1331_v63, %v1326_v26  ;;  %1404 = vmatpush1.xpose.msra.mxu0 %v1255_v60  ;;  %1368 = vadd.xlane.f32.xlu0 %v1367_v59  ;;  %v4095_v34 = vpop.f32.mrb[27].mxu1  ;;  %v1128_v26 = vld [vmem:[%s6685_s27] sm:$0xff] }
 0x284   : > { %4290 = vmatprep.subr.bf16.mxu0 %v4901_v0  ;;  %v1137_v27 = vadd.f32 %v1128_v26, %v1119_v24 }
 0x285   : > { %v1371_v35 = vadd.f32 %v1370_v19, %v1362_v32 }
 0x286   : > { %1464 = vmatmul.mubr.f32.vlgmr.msra.gmra.mrb[18].mxu0 %v1387_v31  ;;  %v1336_v36 = vpop.f32.mrb[28].mxu1 }
 0x287   : > { %4292 = vmatpush3.bf16.xpose.msra.mxu0 %v4291_v33  ;;  %1372 = vadd.xlane.f32.xlu0 %v1371_v35  ;;  %v1365_v37 = vmul.f32 %v1353_v22, %v1336_v36  ;;  %v4098_v38 = vpop.f32.mrb[29].mxu1 }
 0x288   : > { %4103 = vmatprep.subr.mxu0 %v4902_v1  ;;  %4105 = vmatprep.mubr.msk.f32.mxu0 %vm4903_vm0, %v4902_v1 }
 0x289   : > { %v1378_v61 = vsel %vm1374_vm5, %v1365_v37, 0.0 }
 0x28a   : > { %v1379_v39 = vadd.f32 %v1378_v61, %v1377_v30 }
 0x28c   : > { %1380 = vadd.xlane.f32.xlu1 %v1379_v39 }
 0x28f   : > { %4104 = vmatpush3.xpose.msra.mxu0 %v1336_v36 }
 0x290   : > { %4297 = vmatprep.subr.bf16.mxu0 %v4901_v0 }
 0x292   : > { %4106 = vmatmul.mubr.f32.vlgmr.msra.gmra.mrb[18].mxu0 %v5344_v2 }
 0x293   : > { %4299 = vmatpush3.bf16.msra.mxu0 %v4291_v33  ;;  %4114 = vmatprep.mubr.msk.f32.mxu0 %vm4903_vm0, %v4902_v1 }
 0x294   : > { %4112 = vmatprep.subr.mxu0 %v4902_v1 }
 0x297   : > { %4113 = vmatpush3.msk.msra.mxu0 %vm1374_vm5, %v1336_v36 }
 0x310   : > { %v1369_v40 = vpop.xlane.xlu0 %1368 }
 0x314   : > { %v1373_v46 = vpop.xlane.xlu0 %1372 }
 0x319   : > { %v1381_v47 = vpop.xlane.xlu1 %1380 }
 0x365   : > { %v1535_v41 = vpop.f32.mrb[18].mxu0 }
 0x366   : > { %v1542_v42 = vrot.slane %v1535_v41, %v5391_v49  ;;  %v4107_v43 = vpop.f32.mrb[19].mxu0 }
 0x368   : > { %v1543_v48 = vadd.f32 %v1542_v42, %v1369_v40  ;;  %v1544_v50 = vadd.f32 %v1542_v42, %v1373_v46  ;;  %v1545_v2 = vadd.f32 %v1542_v42, %v1381_v47 }
 0x36a   : > { %vm1547_vm8 = vcmp.gt.f32.partialorder %v1544_v50, 0.0  ;;  %v1550_v52 = vmul.f32 0.2, %v1544_v50  ;;  %vm1546_vm9 = vcmp.gt.f32.partialorder %v1543_v48, 0.0  ;;  %v1549_v53 = vmul.f32 0.2, %v1543_v48 }
 0x36b   : > { %vm1548_vm11 = vcmp.gt.f32.partialorder %v1545_v2, 0.0  ;;  %v1551_v54 = vmul.f32 0.2, %v1545_v2 }
 0x36c   : > { %v1553_v55 = vsel %vm1547_vm8, %v1544_v50, %v1550_v52  ;;  %v1552_v49 = vsel %vm1546_vm9, %v1543_v48, %v1549_v53 }
 0x36d   : > { %v1562_v56 = vsel %vm1559_vm6, %v1553_v55, -9e+15  ;;  %v1561_v57 = vsel %vm1558_vm7, %v1552_v49, -9e+15  ;;  %v1554_v58 = vsel %vm1548_vm11, %v1545_v2, %v1551_v54  ;;  %v1825_v54 = vld [vmem:[%s6631_s10] sm:$0xff] }
 0x36e   : > { %v1568_v62 = vsel %vm1564_vm10, %v1562_v56, -inf  ;;  %v1565_v4 = vsel %vm1564_vm10, %v1561_v57, -inf  ;;  %v1563_v5 = vsel %vm1560_vm12, %v1554_v58, -9e+15  ;;  %v1843_v58 = vld [vmem:[%s6632_s11] sm:$0xff] }
 0x36f   : > { %1569 = vmax.xlane.f32.xlu0 %v1568_v62  ;;  %1566 = vmax.xlane.f32.xlu1 %v1565_v4  ;;  %v1572_v6 = vsel %vm1571_vm13, %v1563_v5, -inf  ;;  %v1826_v4 = vld [vmem:[%s6631_s10 + $0x8] sm:$0xff] }
 0x373   : > { %1573 = vmax.xlane.f32.xlu1 %v1572_v6 }
 0x3fc   : > { %v1570_v7 = vpop.xlane.xlu0 %1569  ;;  %v1567_v8 = vpop.xlane.xlu1 %1566 }
 0x3fd   : > { %v1576_v9 = vsub.f32 %v1562_v56, %v1570_v7  ;;  %v1575_v10 = vsub.f32 %v1561_v57, %v1567_v8  ;;  %v1827_v56 = vld [vmem:[%s6631_s10 + $0x10] sm:$0xff] }
 0x3fe   : > { %v1845_v8 = vld [vmem:[%s6632_s11 + $0x10] sm:$0xff] }
 0x3ff   : > { %v1580_v11 = vmul.f32 1.442695, %v1576_v9  ;;  %v1578_v12 = vmul.f32 1.442695, %v1575_v10 }
 0x400   : > { %v1574_v13 = vpop.xlane.xlu1 %1573 }
 0x401   : > { %4623 = vpow2.f32 %v1580_v11  ;;  %v1577_v14 = vsub.f32 %v1563_v5, %v1574_v13 }
 0x402   : > { %4625 = vpow2.f32 %v1578_v12  ;;  %v1844_v12 = vld [vmem:[%s6632_s11 + $0x8] sm:$0xff] }
 0x403   : > { %v1582_v15 = vmul.f32 1.442695, %v1577_v14  ;;  %v1828_v14 = vld [vmem:[%s6631_s10 + $0x18] sm:$0xff] }
 0x405   : > { %4627 = vpow2.f32 %v1582_v15 }
 0x40b   : > { %v4624_v16 = vpop.eup %4623 }
 0x40c   : > { %v4626_v17 = vpop.eup %4625  ;;  %v1587_v18 = vsel %vm1564_vm10, %v4624_v16, 0.0 }
 0x40d   : > { %1588 = vadd.xlane.f32.xlu1 %v1587_v18  ;;  %v1584_v60 = vsel %vm1564_vm10, %v4626_v17, 0.0 }
 0x40e   : > { %1585 = vadd.xlane.f32.xlu0 %v1584_v60  ;;  %v1830_v60 = vld [vmem:[%s6631_s10 + $0x28] sm:$0xff] }
 0x40f   : > { %v4628_v19 = vpop.eup %4627 }
 0x410   : > { %v1590_v20 = vsel %vm1571_vm13, %v4628_v19, 0.0 }
 0x412   : > { %1591 = vadd.xlane.f32.xlu0 %v1590_v20 }
 0x49a   : > { %v1589_v22 = vpop.xlane.xlu1 %1588 }
 0x49b   : > { %v1586_v21 = vpop.xlane.xlu0 %1585 }
 0x49c   : > { %4629 = vrcp.f32 %v1586_v21  ;;  %v1846_v21 = vld [vmem:[%s6632_s11 + $0x18] sm:$0xff] }
 0x49d   : > { %4631 = vrcp.f32 %v1589_v22 }
 0x49f   : > { %v1592_v25 = vpop.xlane.xlu0 %1591 }
 0x4a0   : > { %4633 = vrcp.f32 %v1592_v25 }
 0x4a1   : > { %4635 = vtanh.f32 %v1137_v27 }
 0x4a6   : > { %v4630_v28 = vpop.eup %4629 }
 0x4a7   : > { %v1596_v29 = vmul.f32 %v4630_v28, %v4626_v17  ;;  %v4632_v30 = vpop.eup %4631  ;;  %v1848_v28 = vld [vmem:[%s6632_s11 + $0x28] sm:$0xff] }
 0x4a8   : > { %v1597_v3 = vmul.f32 %v4632_v30, %v4624_v16  ;;  %v2367_v30 = vld [vmem:[%s6634_s13 + $0x18] sm:$0xff] }
 0x4a9   : > { %3754 = vmatmul.mubr.msk.f32.vlgmr.msra.gmra.mrb[30].mxu1 %vm1564_vm10, %v1596_v29  ;;  %4115 = vmatmul.mubr.msk.f32.vlgmr.msra.gmra.mrb[20].mxu0 %vm1564_vm10, %v1596_v29  ;;  %v2365_v29 = vld [vmem:[%s6634_s13 + $0x8] sm:$0xff] }
 0x4aa   : > { %1687 = vmatprep.mubr.f32.mxu1 %v4902_v1  ;;  %4117 = vmatprep.mubr.msk.f32.mxu0 %vm4903_vm0, %v4902_v1  ;;  %v4634_v59 = vpop.eup %4633 }
 0x4ab   : > { %v1598_v63 = vmul.f32 %v4634_v59, %v4628_v19  ;;  %v5446_v31 = vpop.eup %4635 }
 0x4ad   : > { %3755 = vmatmul.mubr.msk.f32.gmra.mrb[32].mxu1 %vm1564_vm10, %v1597_v3  ;;  %4118 = vmatmul.mubr.msk.f32.gmra.mrb[22].mxu0 %vm1564_vm10, %v1597_v3 }
 0x4ae   : > { %1693 = vmatprep.mubr.f32.mxu1 %v4902_v1  ;;  %4120 = vmatprep.mubr.msk.f32.mxu0 %vm4903_vm0, %v4902_v1 }
 0x4b1   : > { %3756 = vmatmul.mubr.msk.f32.gmra.mrb[34].mxu1 %vm1564_vm10, %v1598_v63  ;;  %4121 = vmatmul.mubr.msk.f32.gmra.mrb[24].mxu0 %vm1564_vm10, %v1598_v63  ;;  %v1847_v63 = vld [vmem:[%s6632_s11 + $0x20] sm:$0xff] }
 0x4b2   : > { %2492 = vmatprep.mubr.f32.mxu0 %v5446_v31  ;;  %4129 = vmatprep.mubr.msk.f32.mxu1 %vm4903_vm0, %v4902_v1 }
 0x57c   : > { %v1683_v32 = vpop.f32.mrb[30].mxu1  ;;  %v1766_v33 = vpop.f32.mrb[20].mxu0 }
 0x57d   : > { %v1789_v34 = vmul.f32 1.442695, %v1683_v32  ;;  %v1793_v35 = vmul.f32 1.442695, %v1766_v33  ;;  %v1685_v36 = vpop.f32.mrb[31].mxu1  ;;  %v4116_v37 = vpop.f32.mrb[21].mxu0 }
 0x57e   : > { %v1791_v38 = vmul.f32 1.442695, %v1685_v36  ;;  %vm1780_vm14 = vcmp.gt.f32.partialorder %v1683_v32, 0.0  ;;  %vm1782_vm15 = vcmp.gt.f32.partialorder %v1766_v33, 0.0  ;;  %vm1781_vm4 = vcmp.gt.f32.partialorder %v1685_v36, 0.0  ;;  %v2366_v37 = vld [vmem:[%s6634_s13 + $0x10] sm:$0xff] }
 0x57f   : > { %4637 = vpow2.f32 %v1789_v34 }
 0x580   : > { %4639 = vpow2.f32 %v1793_v35  ;;  %v1689_v61 = vpop.f32.mrb[32].mxu1  ;;  %v1771_v39 = vpop.f32.mrb[22].mxu0 }
 0x581   : > { %4641 = vpow2.f32 %v1791_v38  ;;  %v1795_v40 = vmul.f32 1.442695, %v1689_v61  ;;  %v1691_v41 = vpop.f32.mrb[33].mxu1  ;;  %v4119_v42 = vpop.f32.mrb[23].mxu0  ;;  %v1799_v43 = vmul.f32 1.442695, %v1771_v39 }
 0x582   : > { %v1797_v44 = vmul.f32 1.442695, %v1691_v41  ;;  %vm1783_vm6 = vcmp.gt.f32.partialorder %v1689_v61, 0.0  ;;  %vm1785_vm7 = vcmp.gt.f32.partialorder %v1771_v39, 0.0  ;;  %vm1784_vm8 = vcmp.gt.f32.partialorder %v1691_v41, 0.0  ;;  %v2371_v42 = vld [vmem:[%s6634_s13 + $0x38] sm:$0xff] }
 0x583   : > { %4643 = vpow2.f32 %v1795_v40  ;;  %v4309_v40 = vpack.c.bf16 %v2367_v30, %v2365_v29  ;;  %v2387_v29 = vld [vmem:[%s6634_s13 + $0xb8] sm:$0xff]  ;;  %v2384_v30 = vld [vmem:[%s6634_s13 + $0xa0] sm:$0xff] }
 0x584   : > { %4645 = vpow2.f32 %v1799_v43  ;;  %v5453_v45 = vpop.f32.mrb[34].mxu1  ;;  %v5455_v46 = vpop.f32.mrb[24].mxu0 }
 0x585   : > { %4647 = vpow2.f32 %v1797_v44  ;;  %v1801_v47 = vmul.f32 1.442695, %v5453_v45  ;;  %v5458_v48 = vpop.f32.mrb[35].mxu1  ;;  %v4122_v50 = vpop.f32.mrb[25].mxu0  ;;  %v2368_v44 = vld [vmem:[%s6634_s13 + $0x20] sm:$0xff]  ;;  %4310 = vmatprep.subr.bf16.mxu0 %v4309_v40  ;;  %vm1786_vm11 = vcmp.gt.f32.partialorder %v5453_v45, 0.0 }
 0x586   : > { %v1803_v2 = vmul.f32 1.442695, %v5458_v48  ;;  %vm1787_vm9 = vcmp.gt.f32.partialorder %v5458_v48, 0.0  ;;  %v2393_v40 = vld [vmem:[%s6634_s13 + $0xe8] sm:$0xff]  ;;  %vm1788_vm12 = vcmp.gt.f32.partialorder %v5455_v46, 0.0 }
 0x587   : > { %4649 = vpow2.f32 %v1801_v47  ;;  %v2370_v47 = vld [vmem:[%s6634_s13 + $0x30] sm:$0xff] }
 0x588   : > { %4651 = vpow2.f32 %v1803_v2  ;;  %v1850_v2 = vld [vmem:[%s6632_s11 + $0x38] sm:$0x3f] }
 0x589   : > { %v4638_v51 = vpop.eup %4637 }
 0x58a   : > { %v4640_v52 = vpop.eup %4639  ;;  %v3761_v53 = vadd.f32 -1.0, %v4638_v51 }
 0x58b   : > { %v4642_v55 = vpop.eup %4641  ;;  %v3763_v49 = vadd.f32 -1.0, %v4640_v52  ;;  %v2373_v52 = vld [vmem:[%s6634_s13 + $0x48] sm:$0xff] }
 0x58c   : > { %v1816_v57 = vsel %vm1780_vm14, %v1683_v32, %v3761_v53  ;;  %v3762_v62 = vadd.f32 -1.0, %v4642_v55  ;;  %v2375_v53 = vld [vmem:[%s6634_s13 + $0x58] sm:$0xff] }
 0x58d   : > { %v4644_v5 = vpop.eup %4643  ;;  %v1834_v6 = vmul.f32 %v1825_v54, %v1816_v57  ;;  %v1818_v7 = vsel %vm1782_vm15, %v1766_v33, %v3763_v49  ;;  %v1831_v49 = vld [vmem:[%s6631_s10 + $0x30] sm:$0x3f] }
 0x58e   : > { %v4646_v9 = vpop.eup %4645  ;;  %v1836_v10 = vmul.f32 %v1827_v56, %v1818_v7  ;;  %v1817_v11 = vsel %vm1781_vm4, %v1685_v36, %v3762_v62  ;;  %v3764_v13 = vadd.f32 -1.0, %v4644_v5  ;;  %v2364_v36 = vld [vmem:[%s6634_s13] sm:$0xff]  ;;  %v4315_v56 = vpack.c.bf16 %v2370_v47, %v2368_v44  ;;  %v2379_v5 = vld [vmem:[%s6634_s13 + $0x78] sm:$0xff] }
 0x58f   : > { %v4648_v15 = vpop.eup %4647  ;;  %v1852_v16 = vadd.f32 %v1843_v58, %v1834_v6  ;;  %v1835_v17 = vmul.f32 %v1826_v4, %v1817_v11  ;;  %v3766_v18 = vadd.f32 -1.0, %v4646_v9  ;;  %v4311_v51 = vpack.c.bf16 %v2366_v37, %v2364_v36  ;;  %v2372_v62 = vld [vmem:[%s6634_s13 + $0x40] sm:$0xff]  ;;  %v2374_v4 = vld [vmem:[%s6634_s13 + $0x50] sm:$0xff] }
 0x590   : > { %v1854_v19 = vadd.f32 %v1845_v8, %v1836_v10  ;;  %v1819_v20 = vsel %vm1783_vm6, %v1689_v61, %v3764_v13  ;;  %v3765_v22 = vadd.f32 -1.0, %v4648_v15  ;;  %v4317_v58 = vpack.c.bf16 %v2375_v53, %v2373_v52  ;;  %v1849_v8 = vld [vmem:[%s6632_s11 + $0x30] sm:$0x3f]  ;;  %v2381_v15 = vld [vmem:[%s6634_s13 + $0x88] sm:$0xff]  ;;  %v2392_v47 = vld [vmem:[%s6634_s13 + $0xe0] sm:$0xff] }
 0x591   : > { %v4650_v24 = vpop.eup %4649  ;;  %v1853_v25 = vadd.f32 %v1844_v12, %v1835_v17  ;;  %v1837_v26 = vmul.f32 %v1828_v14, %v1819_v20  ;;  %v1821_v27 = vsel %vm1785_vm7, %v1771_v39, %v3766_v18  ;;  %4653 = vtanh.f32 %v1852_v16  ;;  %v1832_v39 = vld [vmem:[%s6631_s10 + $0x38] sm:$0x3f]  ;;  %4312 = vmatpush1.bf16.msra.mxu0 %v4311_v51  ;;  %v2376_v12 = vld [vmem:[%s6634_s13 + $0x60] sm:$0xff]  ;;  %v2378_v13 = vld [vmem:[%s6634_s13 + $0x70] sm:$0xff] }
 0x592   : > { %v1839_v3 = vmul.f32 %v1830_v60, %v1821_v27  ;;  %v1820_v59 = vsel %vm1784_vm8, %v1691_v41, %v3765_v22  ;;  %v4652_v32 = vpop.eup %4651  ;;  %4655 = vtanh.f32 %v1854_v19  ;;  %v3767_v35 = vadd.f32 -1.0, %v4650_v24  ;;  %v2369_v41 = vld [vmem:[%s6634_s13 + $0x28] sm:$0xff]  ;;  %v2383_v16 = vld [vmem:[%s6634_s13 + $0x98] sm:$0xff]  ;;  %v2380_v24 = vld [vmem:[%s6634_s13 + $0x80] sm:$0xff] }
 0x593   : > { %v1855_v33 = vadd.f32 %v1846_v21, %v1837_v26  ;;  %v1838_v34 = vmul.f32 %v1829_v23, %v1820_v59  ;;  %4657 = vtanh.f32 %v1853_v25  ;;  %v3768_v61 = vadd.f32 -1.0, %v4652_v32  ;;  %v2382_v25 = vld [vmem:[%s6634_s13 + $0x90] sm:$0xff]  ;;  %v3770_v59 = vld [vmem:[%s6633_s12 + $0x48] sm:$0xff]  ;;  %v2391_v32 = vld [vmem:[%s6634_s13 + $0xd8] sm:$0xff] }
 0x594   : > { %v1857_v38 = vadd.f32 %v1848_v28, %v1839_v3  ;;  %v4313_v55 = vpack.c.bf16 %v2371_v42, %v2369_v41  ;;  %v4319_v9 = vpack.c.bf16 %v2374_v4, %v2372_v62  ;;  %v4323_v20 = vpack.c.bf16 %v2378_v13, %v2376_v12  ;;  %v2385_v28 = vld [vmem:[%s6634_s13 + $0xa8] sm:$0xff]  ;;  %v2386_v3 = vld [vmem:[%s6634_s13 + $0xb0] sm:$0xff]  ;;  %v2395_v41 = vld [vmem:[%s6634_s13 + $0xf8] sm:$0xff] }
 0x595   : > { %4659 = vtanh.f32 %v1855_v33  ;;  %v1856_v43 = vadd.f32 %v1847_v63, %v1838_v34  ;;  %v1823_v50 = vsel %vm1787_vm9, %v5458_v48, %v3768_v61  ;;  %v1822_v48 = vsel %vm1786_vm11, %v5453_v45, %v3767_v35  ;;  %v2377_v45 = vld [vmem:[%s6634_s13 + $0x68] sm:$0xff]  ;;  %v2390_v61 = vld [vmem:[%s6634_s13 + $0xd0] sm:$0xff]  ;;  %v2399_v52 = vld [vmem:[%s6634_s13 + $0x118] sm:$0xff] }
 0x596   : > { %4661 = vtanh.f32 %v1857_v38  ;;  %v1841_v54 = vmul.f32 %v1832_v39, %v1823_v50  ;;  %4314 = vmatprep.subr.bf16.mxu0 %v4313_v55  ;;  %v1840_v6 = vmul.f32 %v1831_v49, %v1822_v48  ;;  %v4321_v11 = vpack.c.bf16 %v2379_v5, %v2377_v45  ;;  %v2389_v63 = vld [vmem:[%s6634_s13 + $0xc8] sm:$0xff]  ;;  %v2388_v38 = vld [vmem:[%s6634_s13 + $0xc0] sm:$0xff]  ;;  %v3771_v39 = vld [vmem:[%s6633_s12 + $0x50] sm:$0xff] }
 0x597   : > { %4663 = vtanh.f32 %v1856_v43  ;;  %4316 = vmatpush1.bf16.msra.mxu0 %v4315_v56  ;;  %v4325_v23 = vpack.c.bf16 %v2383_v16, %v2381_v15  ;;  %v4327_v27 = vpack.c.bf16 %v2382_v25, %v2380_v24  ;;  %v1805_v34 = vmul.f32 1.442695, %v5455_v46  ;;  %v2394_v50 = vld [vmem:[%s6634_s13 + $0xf0] sm:$0xff]  ;;  %v2397_v51 = vld [vmem:[%s6634_s13 + $0x108] sm:$0xff]  ;;  %v2396_v55 = vld [vmem:[%s6634_s13 + $0x100] sm:$0xff] }
 0x598   : > { %v1859_v57 = vadd.f32 %v1850_v2, %v1841_v54  ;;  %4318 = vmatprep.subr.bf16.mxu0 %v4317_v58  ;;  %v1858_v18 = vadd.f32 %v1849_v8, %v1840_v6  ;;  %v4329_v35 = vpack.c.bf16 %v2387_v29, %v2385_v28  ;;  %v4331_v36 = vpack.c.bf16 %v2386_v3, %v2384_v30  ;;  %v3772_v2 = vld [vmem:[%s6633_s12 + $0x58] sm:$0xff]  ;;  %v2398_v48 = vld [vmem:[%s6634_s13 + $0x110] sm:$0xff]  ;;  %v3773_v49 = vld [vmem:[%s6633_s12 + $0x60] sm:$0xff] }
 0x599   : > { %v4333_v37 = vpack.c.bf16 %v2391_v32, %v2389_v63  ;;  %v4335_v42 = vpack.c.bf16 %v2390_v61, %v2388_v38  ;;  %v4337_v44 = vpack.c.bf16 %v2395_v41, %v2393_v40  ;;  %v4339_v53 = vpack.c.bf16 %v2394_v50, %v2392_v47  ;;  %v2401_v56 = vld [vmem:[%s6634_s13 + $0x128] sm:$0xff]  ;;  %v2400_v45 = vld [vmem:[%s6634_s13 + $0x120] sm:$0xff]  ;;  %v2402_v5 = vld [vmem:[%s6634_s13 + $0x130] sm:$0xff] }
 0x59a   : > { %4665 = vtanh.f32 %v1859_v57  ;;  %v4341_v54 = vpack.c.bf16 %v2399_v52, %v2397_v51  ;;  %v2403_v57 = vld [vmem:[%s6634_s13 + $0x138] sm:$0xff]  ;;  %v4343_v58 = vpack.c.bf16 %v2398_v48, %v2396_v55  ;;  %v3774_v6 = vld [vmem:[%s6633_s12 + $0x68] sm:$0xff]  ;;  %v2404_v13 = vld [vmem:[%s6634_s13 + $0x140] sm:$0xff] }
 0x59b   : > { %v4654_v7 = vpop.eup %4653  ;;  %4320 = vmatpush1.bf16.msra.mxu0 %v4319_v9  ;;  %4667 = vtanh.f32 %v1858_v18  ;;  %v4345_v4 = vpack.c.bf16 %v2403_v57, %v2401_v56  ;;  %v2407_v8 = vld [vmem:[%s6634_s13 + $0x158] sm:$0xff]  ;;  %v3775_v15 = vld [vmem:[%s6633_s12 + $0x70] sm:$0xff]  ;;  %v2409_v16 = vld [vmem:[%s6634_s13 + $0x168] sm:$0xff] }
 0x59c   : > { %v5555_v10 = vpop.eup %4655  ;;  %4322 = vmatprep.subr.bf16.mxu0 %v4321_v11  ;;  %4669 = vpow2.f32 %v1805_v34  ;;  %v4347_v11 = vpack.c.bf16 %v2402_v5, %v2400_v45  ;;  %v2410_v24 = vld [vmem:[%s6634_s13 + $0x170] sm:$0xff]  ;;  %v2413_v25 = vld [vmem:[%s6634_s13 + $0x188] sm:$0xff]  ;;  %v1851_v28 = vld [vmem:[%s6632_s11 + $0x40] sm:$0x3f] }
 0x59d   : > { %v4658_v14 = vpop.eup %4657  ;;  %v2412_v3 = vld [vmem:[%s6634_s13 + $0x180] sm:$0xff]  ;;  %v2417_v32 = vld [vmem:[%s6634_s13 + $0x1a8] sm:$0xff]  ;;  %v2418_v38 = vld [vmem:[%s6634_s13 + $0x1b0] sm:$0xff] }
 0x59e   : > { %v3777_v63 = vld [vmem:[%s6633_s12 + $0x80] sm:$0xff]  ;;  %v3778_v61 = vld [vmem:[%s6633_s12 + $0x88] sm:$0x3]  ;;  %v1877_v47 = vld [vmem:[%s6633_s12 + $0x38] sm:$0xff] }
 0x59f   : > { %v4660_v17 = vpop.eup %4659  ;;  %4324 = vmatpush1.bf16.msra.mxu0 %v4323_v20  ;;  %v1870_v40 = vld [vmem:[%s6633_s12] sm:$0xff]  ;;  %v1871_v41 = vld [vmem:[%s6633_s12 + $0x8] sm:$0xff]  ;;  %v3800_v51 = vld [vmem:[%s6633_s12 + $0x98] sm:$0xff] }
 0x5a0   : > { %v5569_v60 = vpop.eup %4661  ;;  %v4304_v19 = vpack.c.bf16 %v4660_v17, %v4654_v7  ;;  %4326 = vmatprep.subr.bf16.mxu0 %v4325_v23  ;;  %v2405_v7 = vld [vmem:[%s6634_s13 + $0x148] sm:$0xff]  ;;  %v2411_v17 = vld [vmem:[%s6634_s13 + $0x178] sm:$0xff]  ;;  %v2408_v23 = vld [vmem:[%s6634_s13 + $0x160] sm:$0xff] }
 0x5a1   : > { %v4664_v21 = vpop.eup %4663  ;;  %v4307_v22 = vpack.c.bf16 %v5569_v60, %v5555_v10  ;;  %v4349_v12 = vpack.c.bf16 %v2407_v8, %v2405_v7  ;;  %v4355_v29 = vpack.c.bf16 %v2410_v24, %v2408_v23  ;;  %v1872_v10 = vld [vmem:[%s6633_s12 + $0x10] sm:$0xff]  ;;  %v1873_v60 = vld [vmem:[%s6633_s12 + $0x18] sm:$0xff]  ;;  %v1878_v50 = vld [vmem:[%s6633_s12 + $0x40] sm:$0x3] }
 0x5a2   : > { %v4301_v26 = vpack.c.bf16 %v4664_v21, %v4658_v14  ;;  %v2406_v14 = vld [vmem:[%s6634_s13 + $0x150] sm:$0xff]  ;;  %v4353_v21 = vpack.c.bf16 %v2411_v17, %v2409_v16  ;;  %v3801_v52 = vld [vmem:[%s6633_s12 + $0xa0] sm:$0xff]  ;;  %v3804_v55 = vld [vmem:[%s6633_s12 + $0xb8] sm:$0xff] }
 0x5a3   : > { %4328 = vmatpush1.bf16.msra.mxu0 %v4327_v27  ;;  %v4351_v20 = vpack.c.bf16 %v2406_v14, %v2404_v13  ;;  %v3805_v48 = vld [vmem:[%s6633_s12 + $0xc0] sm:$0xff]  ;;  %v3807_v56 = vld [vmem:[%s6633_s12 + $0xd0] sm:$0x3]  ;;  %v2421_v57 = vld [vmem:[%s6634_s13 + $0x1c8] sm:$0xff] }
 0x5a4   : > { %4302 = vmatpush3.bf16.msra.mxu1 %v4301_v26  ;;  %v4666_v33 = vpop.eup %4665  ;;  %4330 = vmatprep.subr.bf16.mxu0 %v4329_v35  ;;  %v2415_v26 = vld [vmem:[%s6634_s13 + $0x198] sm:$0xff]  ;;  %v2422_v45 = vld [vmem:[%s6634_s13 + $0x1d0] sm:$0xff] }
 0x5a5   : > { %4127 = vmatprep.subr.mxu1 %v4902_v1  ;;  %v4668_v43 = vpop.eup %4667  ;;  %v4357_v30 = vpack.c.bf16 %v2415_v26, %v2413_v25  ;;  %v2427_v7 = vld [vmem:[%s6634_s13 + $0x1f8] sm:$0xff] }
 0x5a6   : > { %v4670_v62 = vpop.eup %4669 }
 0x5a7   : > { %4332 = vmatpush1.bf16.msra.mxu0 %v4331_v36  ;;  %v3769_v9 = vadd.f32 -1.0, %v4670_v62 }
 0x5a8   : > { %4128 = vmatpush3.msk.msra.mxu1 %vm1374_vm5, %v4666_v33  ;;  %4334 = vmatprep.subr.bf16.mxu0 %v4333_v37  ;;  %v2419_v33 = vld [vmem:[%s6634_s13 + $0x1b8] sm:$0xff]  ;;  %v2416_v37 = vld [vmem:[%s6634_s13 + $0x1a0] sm:$0xff] }
 0x5a9   : > { %4130 = vmatmul.mubr.msk.f32.vlgmr.msra.gmra.mrb[36].mxu1 %vm1564_vm10, %v3770_v59  ;;  %4303 = vmatprep.subr.bf16.mxu1 %v4901_v0  ;;  %v1824_v18 = vsel %vm1788_vm12, %v5455_v46, %v3769_v9  ;;  %v3776_v46 = vld [vmem:[%s6633_s12 + $0x78] sm:$0xff]  ;;  %v2414_v59 = vld [vmem:[%s6634_s13 + $0x190] sm:$0xff]  ;;  %v4361_v36 = vpack.c.bf16 %v2419_v33, %v2417_v32  ;;  %v2424_v9 = vld [vmem:[%s6634_s13 + $0x1e0] sm:$0xff] }
 0x5aa   : > { %4305 = vmatpush3.bf16.msra.mxu1 %v4304_v19  ;;  %4132 = vmatprep.mubr.msk.f32.mxu1 %vm4903_vm0, %v4902_v1  ;;  %v1833_v19 = vld [vmem:[%s6631_s10 + $0x40] sm:$0x3f]  ;;  %v4359_v35 = vpack.c.bf16 %v2414_v59, %v2412_v3 }
 0x5ab   : > { %4160 = vmatprep.subr.mxu1 %v4902_v1  ;;  %4336 = vmatpush1.bf16.msra.mxu0 %v4335_v42  ;;  %v1842_v27 = vmul.f32 %v1833_v19, %v1824_v18  ;;  %v2351_v18 = vld [vmem:[#allocation2 + $0x28] sm:$0xff] }
 0x5ac   : > { %4338 = vmatprep.subr.bf16.mxu0 %v4337_v44  ;;  %v1876_v44 = vld [vmem:[%s6633_s12 + $0x30] sm:$0xff] }
 0x5ad   : > { %4133 = vmatmul.mubr.msk.f32.gmra.mrb[38].mxu1 %vm1564_vm10, %v3771_v39  ;;  %v1860_v34 = vadd.f32 %v1851_v28, %v1842_v27  ;;  %v4363_v39 = vpack.c.bf16 %v2418_v38, %v2416_v37  ;;  %v2357_v27 = vld [vmem:[#allocation2 + $0x58] sm:$0xff]  ;;  %v2799_v38 = vld [vmem:[%s6638_s17 + $0x8] sm:$0xff] }
 0x5ae   : > { %4161 = vmatpush3.msk.msra.mxu1 %vm1374_vm5, %v4668_v43  ;;  %4135 = vmatprep.mubr.msk.f32.mxu1 %vm4903_vm0, %v4902_v1  ;;  %v1875_v43 = vld [vmem:[%s6633_s12 + $0x28] sm:$0xff] }
 0x5af   : > { %4306 = vmatprep.subr.bf16.mxu1 %v4901_v0  ;;  %4340 = vmatpush1.bf16.msra.mxu0 %v4339_v53  ;;  %4671 = vtanh.f32 %v1860_v34  ;;  %v3802_v53 = vld [vmem:[%s6633_s12 + $0xa8] sm:$0xff] }
 0x5b0   : > { %4342 = vmatprep.subr.bf16.mxu0 %v4341_v54  ;;  %v3803_v54 = vld [vmem:[%s6633_s12 + $0xb0] sm:$0xff]  ;;  %v2363_v34 = vld [vmem:[#allocation2 + $0x88] sm:$0x3] }
 0x5b1   : > { %4136 = vmatmul.mubr.msk.f32.gmra.mrb[40].mxu1 %vm1564_vm10, %v3772_v2  ;;  %v3799_v2 = vld [vmem:[%s6633_s12 + $0x90] sm:$0xff] }
 0x5b2   : > { %4138 = vmatprep.mubr.msk.f32.mxu1 %vm4903_vm0, %v4902_v1 }
 0x5b3   : > { %4344 = vmatpush1.bf16.msra.mxu0 %v4343_v58  ;;  %v2423_v58 = vld [vmem:[%s6634_s13 + $0x1d8] sm:$0xff] }
 0x5b4   : > { %4346 = vmatprep.subr.bf16.mxu0 %v4345_v4  ;;  %v4365_v62 = vpack.c.bf16 %v2423_v58, %v2421_v57  ;;  %v2420_v4 = vld [vmem:[%s6634_s13 + $0x1c0] sm:$0xff]  ;;  %v2812_v57 = vld [vmem:[%s6638_s17 + $0x70] sm:$0xff]  ;;  %v2815_v58 = vld [vmem:[%s6638_s17 + $0x88] sm:$0xff] }
 0x5b5   : > { %4139 = vmatmul.mubr.msk.f32.gmra.mrb[42].mxu1 %vm1564_vm10, %v3773_v49  ;;  %v3806_v49 = vld [vmem:[%s6633_s12 + $0xc8] sm:$0xff]  ;;  %v4367_v5 = vpack.c.bf16 %v2422_v45, %v2420_v4 }
 0x5b6   : > { %4141 = vmatprep.mubr.msk.f32.mxu1 %vm4903_vm0, %v4902_v1 }
 0x5b7   : > { %4348 = vmatpush1.bf16.msra.mxu0 %v4347_v11  ;;  %v2426_v11 = vld [vmem:[%s6634_s13 + $0x1f0] sm:$0xff] }
 0x5b8   : > { %4350 = vmatprep.subr.bf16.mxu0 %v4349_v12  ;;  %v4371_v12 = vpack.c.bf16 %v2426_v11, %v2424_v9 }
 0x5b9   : > { %4142 = vmatmul.mubr.msk.f32.gmra.mrb[44].mxu1 %vm1564_vm10, %v3774_v6  ;;  %v4672_v42 = vpop.eup %4671  ;;  %v2425_v6 = vld [vmem:[%s6634_s13 + $0x1e8] sm:$0xff] }
 0x5ba   : > { %4144 = vmatprep.mubr.msk.f32.mxu1 %vm4903_vm0, %v4902_v1  ;;  %v4369_v8 = vpack.c.bf16 %v2427_v7, %v2425_v6  ;;  %v2816_v6 = vld [vmem:[%s6638_s17 + $0x90] sm:$0xff]  ;;  %v2819_v7 = vld [vmem:[%s6638_s17 + $0xa8] sm:$0xff] }
 0x5bb   : > { %4352 = vmatpush1.bf16.msra.mxu0 %v4351_v20 }
 0x5bc   : > { %4354 = vmatprep.subr.bf16.mxu0 %v4353_v21  ;;  %v2353_v21 = vld [vmem:[#allocation2 + $0x38] sm:$0xff] }
 0x5bd   : > { %4145 = vmatmul.mubr.msk.f32.gmra.mrb[46].mxu1 %vm1564_vm10, %v3775_v15  ;;  %v2349_v15 = vld [vmem:[#allocation2 + $0x18] sm:$0xff] }
 0x5be   : > { %4147 = vmatprep.mubr.msk.f32.mxu1 %vm4903_vm0, %v4902_v1 }
 0x5bf   : > { %4356 = vmatpush1.bf16.msra.mxu0 %v4355_v29 }
 0x5c0   : > { %4358 = vmatprep.subr.bf16.mxu0 %v4357_v30  ;;  %v2359_v30 = vld [vmem:[#allocation2 + $0x68] sm:$0xff] }
 0x5c1   : > { %4148 = vmatmul.mubr.msk.f32.gmra.mrb[48].mxu1 %vm1564_vm10, %v3776_v46  ;;  %v2355_v46 = vld [vmem:[#allocation2 + $0x48] sm:$0xff] }
 0x5c2   : > { %4150 = vmatprep.mubr.msk.f32.mxu1 %vm4903_vm0, %v4902_v1 }
 0x5c3   : > { %4360 = vmatpush1.bf16.msra.mxu0 %v4359_v35 }
 0x5c4   : > { %4362 = vmatprep.subr.bf16.mxu0 %v4361_v36 }
 0x5c5   : > { %4151 = vmatmul.mubr.msk.f32.gmra.mrb[50].mxu1 %vm1564_vm10, %v3777_v63  ;;  %v2361_v63 = vld [vmem:[#allocation2 + $0x78] sm:$0xff] }
 0x5c6   : > { %4153 = vmatprep.mubr.msk.f32.mxu1 %vm4903_vm0, %v4902_v1 }
 0x5c7   : > { %4364 = vmatpush1.bf16.msra.mxu0 %v4363_v39  ;;  %v2798_v39 = vld [vmem:[%s6638_s17] sm:$0xff] }
 0x5c8   : > { %4366 = vmatprep.subr.bf16.mxu0 %v4365_v62  ;;  %v2817_v62 = vld [vmem:[%s6638_s17 + $0x98] sm:$0xff] }
 0x5c9   : > { %4154 = vmatmul.mubr.msk.f32.gmra.mrb[52].mxu1 %vm1564_vm10, %v3778_v61  ;;  %v2801_v61 = vld [vmem:[%s6638_s17 + $0x18] sm:$0xff]  ;;  %v4405_v45 = vpack.c.bf16 %v2817_v62, %v2815_v58 }
 0x5ca   : > { %4162 = vmatprep.mubr.msk.f32.mxu1 %vm4903_vm0, %v4902_v1 }
 0x5cb   : > { %4368 = vmatpush1.bf16.msra.mxu0 %v4367_v5  ;;  %v2814_v5 = vld [vmem:[%s6638_s17 + $0x80] sm:$0xff] }
 0x5cc   : > { %4370 = vmatprep.subr.bf16.mxu0 %v4369_v8  ;;  %v2821_v8 = vld [vmem:[%s6638_s17 + $0xb8] sm:$0xff]  ;;  %v4407_v9 = vpack.c.bf16 %v2816_v6, %v2814_v5 }
 0x5cd   : > { %4163 = vmatmul.mubr.msk.f32.vlgmr.msra.gmra.mrb[36].mxu1 %vm1564_vm10, %v1870_v40  ;;  %v4389_v40 = vpack.c.bf16 %v2801_v61, %v2799_v38  ;;  %v4409_v11 = vpack.c.bf16 %v2821_v8, %v2819_v7  ;;  %v2835_v38 = vld [vmem:[%s6638_s17 + $0x128] sm:$0xff]  ;;  %v2837_v61 = vld [vmem:[%s6638_s17 + $0x138] sm:$0xff] }
 0x5ce   : > { %4308 = vmatpush3.bf16.msra.mxu1 %v4307_v22  ;;  %4165 = vmatprep.mubr.msk.f32.mxu1 %vm4903_vm0, %v4902_v1  ;;  %v1874_v22 = vld [vmem:[%s6633_s12 + $0x20] sm:$0xff] }
 0x5cf   : > { %4193 = vmatprep.subr.mxu1 %v4902_v1  ;;  %4372 = vmatpush1.bf16.msra.mxu0 %v4371_v12  ;;  %v2818_v12 = vld [vmem:[%s6638_s17 + $0xa0] sm:$0xff] }
 0x5d1   : > { %4166 = vmatmul.mubr.msk.f32.gmra.mrb[38].mxu1 %vm1564_vm10, %v1871_v41  ;;  %v2800_v41 = vld [vmem:[%s6638_s17 + $0x10] sm:$0xff] }
 0x5d2   : > { %4194 = vmatpush3.msk.msra.mxu1 %vm1374_vm5, %v4672_v42  ;;  %4168 = vmatprep.mubr.msk.f32.mxu1 %vm4903_vm0, %v4902_v1  ;;  %v2803_v42 = vld [vmem:[%s6638_s17 + $0x28] sm:$0xff] }
 0x5d3   : > { %4390 = vmatprep.subr.bf16.mxu1 %v4389_v40  ;;  %v4425_v40 = vpack.c.bf16 %v2837_v61, %v2835_v38  ;;  %v2555_v38 = vld [vmem:[%s6635_s14 + $0x40] sm:$0x3]  ;;  %v2847_v61 = vld [vmem:[%s6638_s17 + $0x188] sm:$0xff] }
 0x5d5   : > { %4169 = vmatmul.mubr.msk.f32.gmra.mrb[40].mxu1 %vm1564_vm10, %v1872_v10  ;;  %v2805_v10 = vld [vmem:[%s6638_s17 + $0x38] sm:$0xff] }
 0x5d6   : > { %4171 = vmatprep.mubr.msk.f32.mxu1 %vm4903_vm0, %v4902_v1 }
 0x5d9   : > { %4172 = vmatmul.mubr.msk.f32.gmra.mrb[42].mxu1 %vm1564_vm10, %v1873_v60  ;;  %v4391_v60 = vpack.c.bf16 %v2800_v41, %v2798_v39  ;;  %v2834_v41 = vld [vmem:[%s6638_s17 + $0x120] sm:$0xff] }
 0x5da   : > { %4174 = vmatprep.mubr.msk.f32.mxu1 %vm4903_vm0, %v4902_v1 }
 0x5dd   : > { %4175 = vmatmul.mubr.msk.f32.gmra.mrb[44].mxu1 %vm1564_vm10, %v1874_v22  ;;  %v4393_v22 = vpack.c.bf16 %v2805_v10, %v2803_v42  ;;  %v2836_v42 = vld [vmem:[%s6638_s17 + $0x130] sm:$0xff]  ;;  %v2839_v10 = vld [vmem:[%s6638_s17 + $0x148] sm:$0xff] }
 0x5de   : > { %4177 = vmatprep.mubr.msk.f32.mxu1 %vm4903_vm0, %v4902_v1 }
 0x5e1   : > { %4178 = vmatmul.mubr.msk.f32.gmra.mrb[46].mxu1 %vm1564_vm10, %v1875_v43  ;;  %v2802_v43 = vld [vmem:[%s6638_s17 + $0x20] sm:$0xff] }
 0x5e2   : > { %4180 = vmatprep.mubr.msk.f32.mxu1 %vm4903_vm0, %v4902_v1 }
 0x5e5   : > { %4181 = vmatmul.mubr.msk.f32.gmra.mrb[48].mxu1 %vm1564_vm10, %v1876_v44  ;;  %v2804_v44 = vld [vmem:[%s6638_s17 + $0x30] sm:$0xff] }
 0x5e6   : > { %4183 = vmatprep.mubr.msk.f32.mxu1 %vm4903_vm0, %v4902_v1 }
 0x5e9   : > { %4184 = vmatmul.mubr.msk.f32.gmra.mrb[50].mxu1 %vm1564_vm10, %v1877_v47  ;;  %v2807_v47 = vld [vmem:[%s6638_s17 + $0x48] sm:$0xff] }
 0x5ea   : > { %4186 = vmatprep.mubr.msk.f32.mxu1 %vm4903_vm0, %v4902_v1 }
 0x5ed   : > { %4187 = vmatmul.mubr.msk.f32.gmra.mrb[52].mxu1 %vm1564_vm10, %v1878_v50  ;;  %v2809_v50 = vld [vmem:[%s6638_s17 + $0x58] sm:$0xff] }
 0x5ee   : > { %4195 = vmatprep.mubr.msk.f32.mxu1 %vm4903_vm0, %v4902_v1 }
 0x5f1   : > { %4196 = vmatmul.mubr.msk.f32.vlgmr.msra.gmra.mrb[36].mxu1 %vm1564_vm10, %v3799_v2  ;;  %v4395_v2 = vpack.c.bf16 %v2804_v44, %v2802_v43  ;;  %v2838_v44 = vld [vmem:[%s6638_s17 + $0x140] sm:$0xff] }
 0x5f2   : > { %4198 = vmatprep.mubr.msk.f32.mxu1 %vm4903_vm0, %v4902_v1  ;;  %4392 = vmatpush1.bf16.msra.mxu1 %v4391_v60  ;;  %v2841_v60 = vld [vmem:[%s6638_s17 + $0x158] sm:$0xff] }
 0x5f3   : > { %4394 = vmatprep.subr.bf16.mxu1 %v4393_v22  ;;  %v4427_v22 = vpack.c.bf16 %v2836_v42, %v2834_v41  ;;  %v4429_v43 = vpack.c.bf16 %v2841_v60, %v2839_v10  ;;  %v2846_v41 = vld [vmem:[%s6638_s17 + $0x180] sm:$0xff]  ;;  %v2848_v42 = vld [vmem:[%s6638_s17 + $0x190] sm:$0xff]  ;;  %v2851_v60 = vld [vmem:[%s6638_s17 + $0x1a8] sm:$0xff] }
 0x5f4   : > { %v4439_v10 = vpack.c.bf16 %v2848_v42, %v2846_v41  ;;  %v2750_v42 = vld [vmem:[%s6637_s16 + $0x30] sm:$0xff] }
 0x5f5   : > { %4199 = vmatmul.mubr.msk.f32.gmra.mrb[38].mxu1 %vm1564_vm10, %v3800_v51  ;;  %v4397_v51 = vpack.c.bf16 %v2809_v50, %v2807_v47  ;;  %v2840_v47 = vld [vmem:[%s6638_s17 + $0x150] sm:$0xff]  ;;  %v2843_v50 = vld [vmem:[%s6638_s17 + $0x168] sm:$0xff] }
 0x5f6   : > { %4201 = vmatprep.mubr.msk.f32.mxu1 %vm4903_vm0, %v4902_v1  ;;  %4396 = vmatpush1.bf16.msra.mxu1 %v4395_v2  ;;  %v2845_v2 = vld [vmem:[%s6638_s17 + $0x178] sm:$0xff] }
 0x5f7   : > { %4398 = vmatprep.subr.bf16.mxu1 %v4397_v51  ;;  %v4431_v51 = vpack.c.bf16 %v2840_v47, %v2838_v44  ;;  %v2850_v44 = vld [vmem:[%s6638_s17 + $0x1a0] sm:$0xff]  ;;  %v2852_v47 = vld [vmem:[%s6638_s17 + $0x1b0] sm:$0xff] }
 0x5f9   : > { %4202 = vmatmul.mubr.msk.f32.gmra.mrb[40].mxu1 %vm1564_vm10, %v3801_v52  ;;  %v2806_v52 = vld [vmem:[%s6638_s17 + $0x40] sm:$0xff] }
 0x5fa   : > { %4204 = vmatprep.mubr.msk.f32.mxu1 %vm4903_vm0, %v4902_v1 }
 0x5fd   : > { %4205 = vmatmul.mubr.msk.f32.gmra.mrb[42].mxu1 %vm1564_vm10, %v3802_v53  ;;  %v2808_v53 = vld [vmem:[%s6638_s17 + $0x50] sm:$0xff] }
 0x5fe   : > { %4207 = vmatprep.mubr.msk.f32.mxu1 %vm4903_vm0, %v4902_v1 }
 0x601   : > { %4208 = vmatmul.mubr.msk.f32.gmra.mrb[44].mxu1 %vm1564_vm10, %v3803_v54  ;;  %v2811_v54 = vld [vmem:[%s6638_s17 + $0x68] sm:$0xff] }
 0x602   : > { %4210 = vmatprep.mubr.msk.f32.mxu1 %vm4903_vm0, %v4902_v1 }
 0x605   : > { %4211 = vmatmul.mubr.msk.f32.gmra.mrb[46].mxu1 %vm1564_vm10, %v3804_v55  ;;  %v2813_v55 = vld [vmem:[%s6638_s17 + $0x78] sm:$0xff] }
 0x606   : > { %4213 = vmatprep.mubr.msk.f32.mxu1 %vm4903_vm0, %v4902_v1 }
 0x609   : > { %4214 = vmatmul.mubr.msk.f32.gmra.mrb[48].mxu1 %vm1564_vm10, %v3805_v48  ;;  %v4399_v48 = vpack.c.bf16 %v2808_v53, %v2806_v52  ;;  %v4433_v52 = vpack.c.bf16 %v2845_v2, %v2843_v50  ;;  %v2842_v53 = vld [vmem:[%s6638_s17 + $0x160] sm:$0xff]  ;;  %v4443_v50 = vpack.c.bf16 %v2852_v47, %v2850_v44  ;;  %v2855_v2 = vld [vmem:[%s6638_s17 + $0x1c8] sm:$0xff] }
 0x60a   : > { %4216 = vmatprep.mubr.msk.f32.mxu1 %vm4903_vm0, %v4902_v1  ;;  %v2716_v44 = vld [vmem:[%s6636_s15 + $0x40] sm:$0xff] }
 0x60b   : > { %4400 = vmatpush1.bf16.msra.mxu1 %v4399_v48 }
 0x60d   : > { %4217 = vmatmul.mubr.msk.f32.gmra.mrb[50].mxu1 %vm1564_vm10, %v3806_v49  ;;  %v4401_v49 = vpack.c.bf16 %v2813_v55, %v2811_v54  ;;  %v2844_v54 = vld [vmem:[%s6638_s17 + $0x170] sm:$0xff] }
 0x60e   : > { %4219 = vmatprep.mubr.msk.f32.mxu1 %vm4903_vm0, %v4902_v1  ;;  %v4435_v55 = vpack.c.bf16 %v2844_v54, %v2842_v53  ;;  %v2854_v53 = vld [vmem:[%s6638_s17 + $0x1c0] sm:$0xff]  ;;  %v2856_v54 = vld [vmem:[%s6638_s17 + $0x1d0] sm:$0xff] }
 0x60f   : > { %4402 = vmatprep.subr.bf16.mxu1 %v4401_v49 }
 0x611   : > { %4220 = vmatmul.mubr.msk.f32.gmra.mrb[52].mxu1 %vm1564_vm10, %v3807_v56  ;;  %v2810_v56 = vld [vmem:[%s6638_s17 + $0x60] sm:$0xff] }
 0x612   : > { %v4403_v4 = vpack.c.bf16 %v2812_v57, %v2810_v56 }
 0x614   : > { %4404 = vmatpush1.bf16.msra.mxu1 %v4403_v4 }
 0x615   : > { %4406 = vmatprep.subr.bf16.mxu1 %v4405_v45 }
 0x618   : > { %4408 = vmatpush1.bf16.msra.mxu1 %v4407_v9 }
 0x619   : > { %4410 = vmatprep.subr.bf16.mxu1 %v4409_v11 }
 0x6c4   : > { %v5891_v13 = vpop.f32.mrb[36].mxu1 }
 0x6c5   : > { %v4197_v14 = vpop.f32.mrb[37].mxu1  ;;  %2493 = vmatmul.mubr.f32.vlgmr.msra.gmra.mrb[26].mxu0 %v5891_v13 }
 0x6c6   : > { %2498 = vmatprep.mubr.f32.mxu0 %v2349_v15  ;;  %v2820_v14 = vld [vmem:[%s6638_s17 + $0xb0] sm:$0xff]  ;;  %v2823_v15 = vld [vmem:[%s6638_s17 + $0xc8] sm:$0xff] }
 0x6c8   : > { %v5894_v16 = vpop.f32.mrb[38].mxu1 }
 0x6c9   : > { %v4200_v17 = vpop.f32.mrb[39].mxu1  ;;  %2499 = vmatmul.mubr.f32.gmra.mrb[28].mxu0 %v5894_v16 }
 0x6ca   : > { %2504 = vmatprep.mubr.f32.mxu0 %v2351_v18  ;;  %v2825_v17 = vld [vmem:[%s6638_s17 + $0xd8] sm:$0xff]  ;;  %v4411_v18 = vpack.c.bf16 %v2820_v14, %v2818_v12 }
 0x6cc   : > { %v5897_v19 = vpop.f32.mrb[40].mxu1  ;;  %4412 = vmatpush1.bf16.msra.mxu1 %v4411_v18 }
 0x6cd   : > { %v4203_v20 = vpop.f32.mrb[41].mxu1  ;;  %2505 = vmatmul.mubr.f32.gmra.mrb[30].mxu0 %v5897_v19 }
 0x6ce   : > { %2510 = vmatprep.mubr.f32.mxu0 %v2353_v21  ;;  %v4413_v20 = vpack.c.bf16 %v2825_v17, %v2823_v15  ;;  %v2822_v21 = vld [vmem:[%s6638_s17 + $0xc0] sm:$0xff] }
 0x6d0   : > { %v5900_v23 = vpop.f32.mrb[42].mxu1  ;;  %4414 = vmatprep.subr.bf16.mxu1 %v4413_v20 }
 0x6d1   : > { %v4206_v24 = vpop.f32.mrb[43].mxu1  ;;  %2511 = vmatmul.mubr.f32.gmra.mrb[32].mxu0 %v5900_v23 }
 0x6d2   : > { %2516 = vmatprep.mubr.f32.mxu0 %v2355_v46  ;;  %v2824_v24 = vld [vmem:[%s6638_s17 + $0xd0] sm:$0xff]  ;;  %v2827_v46 = vld [vmem:[%s6638_s17 + $0xe8] sm:$0xff] }
 0x6d4   : > { %v5903_v25 = vpop.f32.mrb[44].mxu1 }
 0x6d5   : > { %v4209_v26 = vpop.f32.mrb[45].mxu1  ;;  %2517 = vmatmul.mubr.f32.gmra.mrb[34].mxu0 %v5903_v25 }
 0x6d6   : > { %2522 = vmatprep.mubr.f32.mxu0 %v2357_v27  ;;  %v2829_v26 = vld [vmem:[%s6638_s17 + $0xf8] sm:$0xff]  ;;  %v4415_v27 = vpack.c.bf16 %v2824_v24, %v2822_v21 }
 0x6d8   : > { %v5906_v28 = vpop.f32.mrb[46].mxu1  ;;  %4416 = vmatpush1.bf16.msra.mxu1 %v4415_v27 }
 0x6d9   : > { %v4212_v29 = vpop.f32.mrb[47].mxu1  ;;  %2523 = vmatmul.mubr.f32.gmra.mrb[36].mxu0 %v5906_v28 }
 0x6da   : > { %2528 = vmatprep.mubr.f32.mxu0 %v2359_v30  ;;  %v4417_v29 = vpack.c.bf16 %v2829_v26, %v2827_v46  ;;  %v2826_v30 = vld [vmem:[%s6638_s17 + $0xe0] sm:$0xff] }
 0x6dc   : > { %v5909_v3 = vpop.f32.mrb[48].mxu1  ;;  %4418 = vmatprep.subr.bf16.mxu1 %v4417_v29 }
 0x6dd   : > { %v4215_v59 = vpop.f32.mrb[49].mxu1  ;;  %2529 = vmatmul.mubr.f32.gmra.mrb[38].mxu0 %v5909_v3 }
 0x6de   : > { %2534 = vmatprep.mubr.f32.mxu0 %v2361_v63  ;;  %v2828_v59 = vld [vmem:[%s6638_s17 + $0xf0] sm:$0xff]  ;;  %v2831_v63 = vld [vmem:[%s6638_s17 + $0x108] sm:$0xff] }
 0x6e0   : > { %v5912_v32 = vpop.f32.mrb[50].mxu1 }
 0x6e1   : > { %v4218_v33 = vpop.f32.mrb[51].mxu1  ;;  %2535 = vmatmul.mubr.f32.gmra.mrb[40].mxu0 %v5912_v32 }
 0x6e2   : > { %2540 = vmatprep.mubr.f32.mxu0 %v2363_v34  ;;  %v2833_v33 = vld [vmem:[%s6638_s17 + $0x118] sm:$0xff]  ;;  %v4419_v34 = vpack.c.bf16 %v2828_v59, %v2826_v30  ;;  %v2547_v30 = vld [vmem:[%s6635_s14] sm:$0xff]  ;;  %v2548_v59 = vld [vmem:[%s6635_s14 + $0x8] sm:$0xff] }
 0x6e4   : > { %v2315_v35 = vpop.f32.mrb[52].mxu1  ;;  %4420 = vmatpush1.bf16.msra.mxu1 %v4419_v34  ;;  %v2551_v34 = vld [vmem:[%s6635_s14 + $0x20] sm:$0xff] }
 0x6e5   : > { %2336 = vst [vmem:[#allocation2 + $0x80] sm:$0x3] %v2315_v35  ;;  %v4221_v36 = vpop.f32.mrb[53].mxu1  ;;  %v4421_v35 = vpack.c.bf16 %v2833_v33, %v2831_v63  ;;  %v2549_v63 = vld [vmem:[%s6635_s14 + $0x10] sm:$0xff]  ;;  %v2550_v33 = vld [vmem:[%s6635_s14 + $0x18] sm:$0xff] }
 0x6e6   : > { %v2830_v36 = vld [vmem:[%s6638_s17 + $0x100] sm:$0xff] }
 0x6e7   : > { %4422 = vmatprep.subr.bf16.mxu1 %v4421_v35  ;;  %v2552_v35 = vld [vmem:[%s6635_s14 + $0x28] sm:$0xff] }
 0x6ec   : > { %v2362_v37 = vld [vmem:[#allocation2 + $0x80] sm:$0x3] }
 0x6ed   : > { %2541 = vmatmul.mubr.f32.gmra.mrb[42].mxu0 %v2362_v37  ;;  %v2832_v37 = vld [vmem:[%s6638_s17 + $0x110] sm:$0xff] }
 0x6ee   : > { %2653 = vmatprep.mubr.f32.mxu0 %v4902_v1  ;;  %v4423_v39 = vpack.c.bf16 %v2832_v37, %v2830_v36  ;;  %v2553_v36 = vld [vmem:[%s6635_s14 + $0x30] sm:$0xff]  ;;  %v2554_v37 = vld [vmem:[%s6635_s14 + $0x38] sm:$0xff] }
 0x6f0   : > { %4424 = vmatpush1.bf16.msra.mxu1 %v4423_v39  ;;  %v2849_v39 = vld [vmem:[%s6638_s17 + $0x198] sm:$0xff] }
 0x6f1   : > { %4426 = vmatprep.subr.bf16.mxu1 %v4425_v40  ;;  %v4437_v40 = vpack.c.bf16 %v2849_v39, %v2847_v61  ;;  %v2715_v39 = vld [vmem:[%s6636_s15 + $0x38] sm:$0xff] }
 0x6f4   : > { %4428 = vmatpush1.bf16.msra.mxu1 %v4427_v22  ;;  %v2853_v22 = vld [vmem:[%s6638_s17 + $0x1b8] sm:$0xff] }
 0x6f5   : > { %4430 = vmatprep.subr.bf16.mxu1 %v4429_v43  ;;  %v4441_v43 = vpack.c.bf16 %v2853_v22, %v2851_v60  ;;  %v2751_v22 = vld [vmem:[%s6637_s16 + $0x38] sm:$0xff] }
 0x6f8   : > { %4432 = vmatpush1.bf16.msra.mxu1 %v4431_v51  ;;  %v2857_v51 = vld [vmem:[%s6638_s17 + $0x1d8] sm:$0xff] }
 0x6f9   : > { %4434 = vmatprep.subr.bf16.mxu1 %v4433_v52  ;;  %v4445_v52 = vpack.c.bf16 %v2857_v51, %v2855_v2 }
 0x6fc   : > { %4436 = vmatpush1.bf16.msra.mxu1 %v4435_v55  ;;  %v4447_v55 = vpack.c.bf16 %v2856_v54, %v2854_v53  ;;  %v2752_v53 = vld [vmem:[%s6637_s16 + $0x40] sm:$0xff] }
 0x6fd   : > { %4438 = vmatprep.subr.bf16.mxu1 %v4437_v40 }
 0x700   : > { %4440 = vmatpush1.bf16.msra.mxu1 %v4439_v10 }
 0x701   : > { %4442 = vmatprep.subr.bf16.mxu1 %v4441_v43 }
 0x704   : > { %4444 = vmatpush1.bf16.msra.mxu1 %v4443_v50  ;;  %v2717_v50 = vld [vmem:[%s6636_s15 + $0x48] sm:$0xff] }
 0x705   : > { %4446 = vmatprep.subr.bf16.mxu1 %v4445_v52 }
 0x708   : > { %4448 = vmatpush1.bf16.msra.mxu1 %v4447_v55 }
 0x798   : > { %v2494_v48 = vpop.f32.mrb[26].mxu0 }
 0x799   : > { %v2496_v49 = vpop.f32.mrb[27].mxu0 }
 0x79c   : > { %v2500_v56 = vpop.f32.mrb[28].mxu0 }
 0x79d   : > { %v4375_v57 = vpack.c.bf16 %v2500_v56, %v2494_v48  ;;  %v2502_v58 = vpop.f32.mrb[29].mxu0  ;;  %v2859_v48 = vld [vmem:[%s6638_s17 + $0x1e8] sm:$0xff] }
 0x79e   : > { %v4373_v62 = vpack.c.bf16 %v2502_v58, %v2496_v49  ;;  %v2861_v49 = vld [vmem:[%s6638_s17 + $0x1f8] sm:$0xff]  ;;  %v2860_v58 = vld [vmem:[%s6638_s17 + $0x1f0] sm:$0xff] }
 0x79f   : > { %v4449_v56 = vpack.c.bf16 %v2861_v49, %v2859_v48  ;;  %v2753_v49 = vld [vmem:[%s6637_s16 + $0x48] sm:$0xff] }
 0x7a0   : > { %v2506_v4 = vpop.f32.mrb[30].mxu0  ;;  %4374 = vmatprep.subr.bf16.mxu0 %v4373_v62 }
 0x7a1   : > { %v2508_v45 = vpop.f32.mrb[31].mxu0  ;;  %4376 = vmatpush1.bf16.msra.mxu0 %v4375_v57  ;;  %v2858_v57 = vld [vmem:[%s6638_s17 + $0x1e0] sm:$0xff]  ;;  %4450 = vmatprep.subr.bf16.mxu1 %v4449_v56 }
 0x7a2   : > { %v4451_v62 = vpack.c.bf16 %v2860_v58, %v2858_v57  ;;  %v2718_v57 = vld [vmem:[%s6636_s15 + $0x50] sm:$0xff] }
 0x7a4   : > { %v2512_v5 = vpop.f32.mrb[32].mxu0  ;;  %4452 = vmatpush1.bf16.msra.mxu1 %v4451_v62  ;;  %v2719_v62 = vld [vmem:[%s6636_s15 + $0x58] sm:$0xff] }
 0x7a5   : > { %v4379_v6 = vpack.c.bf16 %v2512_v5, %v2506_v4  ;;  %v2514_v7 = vpop.f32.mrb[33].mxu0  ;;  %4501 = vmatprep.subr.bf16.mxu1 %v4901_v0  ;;  %v2708_v4 = vld [vmem:[%s6636_s15] sm:$0xff] }
 0x7a6   : > { %v4377_v8 = vpack.c.bf16 %v2514_v7, %v2508_v45  ;;  %v2709_v45 = vld [vmem:[%s6636_s15 + $0x8] sm:$0xff] }
 0x7a8   : > { %v2518_v9 = vpop.f32.mrb[34].mxu0  ;;  %4378 = vmatprep.subr.bf16.mxu0 %v4377_v8 }
 0x7a9   : > { %v2520_v11 = vpop.f32.mrb[35].mxu0  ;;  %4380 = vmatpush1.bf16.msra.mxu0 %v4379_v6  ;;  %v2744_v6 = vld [vmem:[%s6637_s16] sm:$0xff] }
 0x7ac   : > { %v2524_v12 = vpop.f32.mrb[36].mxu0 }
 0x7ad   : > { %v4383_v14 = vpack.c.bf16 %v2524_v12, %v2518_v9  ;;  %v2526_v15 = vpop.f32.mrb[37].mxu0  ;;  %v2745_v9 = vld [vmem:[%s6637_s16 + $0x8] sm:$0xff]  ;;  %v2710_v12 = vld [vmem:[%s6636_s15 + $0x10] sm:$0xff] }
 0x7ae   : > { %v4381_v17 = vpack.c.bf16 %v2526_v15, %v2520_v11  ;;  %v2711_v15 = vld [vmem:[%s6636_s15 + $0x18] sm:$0xff] }
 0x7b0   : > { %v2530_v18 = vpop.f32.mrb[38].mxu0  ;;  %4382 = vmatprep.subr.bf16.mxu0 %v4381_v17 }
 0x7b1   : > { %v2532_v20 = vpop.f32.mrb[39].mxu0  ;;  %4384 = vmatpush1.bf16.msra.mxu0 %v4383_v14 }
 0x7b4   : > { %v2536_v21 = vpop.f32.mrb[40].mxu0 }
 0x7b5   : > { %v4387_v24 = vpack.c.bf16 %v2536_v21, %v2530_v18  ;;  %v2538_v46 = vpop.f32.mrb[41].mxu0 }
 0x7b6   : > { %v4385_v26 = vpack.c.bf16 %v2538_v46, %v2532_v20  ;;  %v2746_v20 = vld [vmem:[%s6637_s16 + $0x10] sm:$0xff]  ;;  %v2747_v46 = vld [vmem:[%s6637_s16 + $0x18] sm:$0xff] }
 0x7b8   : > { %4386 = vmatprep.subr.bf16.mxu0 %v4385_v26 }
 0x7b9   : > { %4388 = vmatpush1.bf16.msra.mxu0 %v4387_v24 }
 0x7c0   : > { %v2542_v27 = vpop.f32.mrb[42].mxu0 }
 0x7c1   : > { %v2544_v29 = vpop.f32.mrb[43].mxu0 }
 0x7c2   : > { %3818 = vmatprep.subr.msk.mxu0 %vm857_vm1, %v2544_v29 }
 0x7c3   : > { %3819 = vmatpush1.msk.msra.mxu0 %vm857_vm1, %v2542_v27  ;;  %v2712_v27 = vld [vmem:[%s6636_s15 + $0x20] sm:$0xff] }
 0x7c4   : > { %3820 = vmatmul.mubr.msk.f32.vlgmr.msra.gmra.mrb[44].mxu0 %vm829_vm2, %v2547_v30  ;;  %v2713_v30 = vld [vmem:[%s6636_s15 + $0x28] sm:$0xff] }
 0x7c5   : > { %2659 = vmatprep.mubr.f32.mxu0 %v4902_v1 }
 0x7c8   : > { %3821 = vmatmul.mubr.msk.f32.gmra.mrb[46].mxu0 %vm829_vm2, %v2548_v59 }
 0x7c9   : > { %2665 = vmatprep.mubr.f32.mxu0 %v4902_v1 }
 0x7cc   : > { %3822 = vmatmul.mubr.msk.f32.gmra.mrb[48].mxu0 %vm829_vm2, %v2549_v63 }
 0x7cd   : > { %2671 = vmatprep.mubr.f32.mxu0 %v4902_v1 }
 0x7d0   : > { %3823 = vmatmul.mubr.msk.f32.gmra.mrb[50].mxu0 %vm829_vm2, %v2550_v33  ;;  %v2748_v33 = vld [vmem:[%s6637_s16 + $0x20] sm:$0xff] }
 0x7d1   : > { %2677 = vmatprep.mubr.f32.mxu0 %v4902_v1 }
 0x7d4   : > { %3824 = vmatmul.mubr.msk.f32.gmra.mrb[52].mxu0 %vm829_vm2, %v2551_v34 }
 0x7d5   : > { %2683 = vmatprep.mubr.f32.mxu0 %v4902_v1 }
 0x7d8   : > { %3825 = vmatmul.mubr.msk.f32.gmra.mrb[54].mxu0 %vm829_vm2, %v2552_v35 }
 0x7d9   : > { %2689 = vmatprep.mubr.f32.mxu0 %v4902_v1 }
 0x7dc   : > { %3826 = vmatmul.mubr.msk.f32.gmra.mrb[56].mxu0 %vm829_vm2, %v2553_v36  ;;  %v2749_v36 = vld [vmem:[%s6637_s16 + $0x28] sm:$0xff] }
 0x7dd   : > { %2695 = vmatprep.mubr.f32.mxu0 %v4902_v1 }
 0x7e0   : > { %3827 = vmatmul.mubr.msk.f32.gmra.mrb[58].mxu0 %vm829_vm2, %v2554_v37 }
 0x7e1   : > { %2701 = vmatprep.mubr.f32.mxu0 %v4902_v1 }
 0x7e4   : > { %3828 = vmatmul.mubr.msk.f32.gmra.mrb[60].mxu0 %vm829_vm2, %v2555_v38  ;;  %v2714_v38 = vld [vmem:[%s6636_s15 + $0x30] sm:$0xff] }
 0x7e5   : > { %3087 = vmatprep.mubr.f32.mxu0 %v4902_v1 }
 0x897   : > { %v2655_v5 = vpop.f32.mrb[44].mxu0 }
 0x898   : > { %v2726_v7 = vmul.f32 %v2708_v4, %v2655_v5  ;;  %v2657_v8 = vpop.f32.mrb[45].mxu0 }
 0x899   : > { %v2727_v11 = vmul.f32 %v2709_v45, %v2657_v8 }
 0x89a   : > { %v2762_v14 = vadd.f32 %v2744_v6, %v2726_v7  ;;  %v2754_v6 = vld [vmem:[%s6637_s16 + $0x50] sm:$0xff] }
 0x89b   : > { %v2763_v17 = vadd.f32 %v2745_v9, %v2727_v11  ;;  %v2661_v18 = vpop.f32.mrb[46].mxu0  ;;  %v2755_v11 = vld [vmem:[%s6637_s16 + $0x58] sm:$0xff] }
 0x89c   : > { %v2728_v21 = vmul.f32 %v2710_v12, %v2661_v18  ;;  %v2663_v24 = vpop.f32.mrb[47].mxu0 }
 0x89d   : > { %4673 = vtanh.f32 %v2763_v17  ;;  %v2729_v26 = vmul.f32 %v2711_v15, %v2663_v24  ;;  %v2721_v17 = vld [vmem:[%s6636_s15 + $0x68] sm:$0xff]  ;;  %v2756_v24 = vld [vmem:[%s6637_s16 + $0x60] sm:$0xff] }
 0x89e   : > { %4675 = vtanh.f32 %v2762_v14  ;;  %v2764_v29 = vadd.f32 %v2746_v20, %v2728_v21  ;;  %v2720_v14 = vld [vmem:[%s6636_s15 + $0x60] sm:$0xff] }
 0x89f   : > { %v2765_v59 = vadd.f32 %v2747_v46, %v2729_v26  ;;  %v2667_v63 = vpop.f32.mrb[48].mxu0 }
 0x8a0   : > { %v2730_v34 = vmul.f32 %v2712_v27, %v2667_v63  ;;  %v2669_v35 = vpop.f32.mrb[49].mxu0 }
 0x8a1   : > { %4677 = vtanh.f32 %v2765_v59  ;;  %v2731_v37 = vmul.f32 %v2713_v30, %v2669_v35  ;;  %v2722_v59 = vld [vmem:[%s6636_s15 + $0x70] sm:$0xff] }
 0x8a2   : > { %4679 = vtanh.f32 %v2764_v29  ;;  %v2766_v61 = vadd.f32 %v2748_v33, %v2730_v34  ;;  %v2757_v29 = vld [vmem:[%s6637_s16 + $0x68] sm:$0xff]  ;;  %v2723_v33 = vld [vmem:[%s6636_s15 + $0x78] sm:$0xff] }
 0x8a3   : > { %v2767_v40 = vadd.f32 %v2749_v36, %v2731_v37  ;;  %v2673_v41 = vpop.f32.mrb[50].mxu0  ;;  %v2758_v37 = vld [vmem:[%s6637_s16 + $0x70] sm:$0xff] }
 0x8a4   : > { %v2732_v10 = vmul.f32 %v2714_v38, %v2673_v41  ;;  %v2675_v60 = vpop.f32.mrb[51].mxu0 }
 0x8a5   : > { %4681 = vtanh.f32 %v2767_v40  ;;  %v2733_v43 = vmul.f32 %v2715_v39, %v2675_v60  ;;  %v2759_v40 = vld [vmem:[%s6637_s16 + $0x78] sm:$0xff]  ;;  %v2725_v60 = vld [vmem:[%s6636_s15 + $0x88] sm:$0x3] }
 0x8a6   : > { %4683 = vtanh.f32 %v2766_v61  ;;  %v2768_v47 = vadd.f32 %v2750_v42, %v2732_v10  ;;  %v2724_v42 = vld [vmem:[%s6636_s15 + $0x80] sm:$0x3] }
 0x8a7   : > { %v4674_v2 = vpop.eup %4673  ;;  %v2769_v51 = vadd.f32 %v2751_v22, %v2733_v43  ;;  %v2679_v52 = vpop.f32.mrb[52].mxu0 }
 0x8a8   : > { %v4676_v54 = vpop.eup %4675  ;;  %v2734_v55 = vmul.f32 %v2716_v44, %v2679_v52  ;;  %v2681_v48 = vpop.f32.mrb[53].mxu0  ;;  %2926 = vmatprep.mubr.f32.mxu1 %v4674_v2  ;;  %v2761_v52 = vld [vmem:[%s6637_s16 + $0x88] sm:$0x3] }
 0x8a9   : > { %4685 = vtanh.f32 %v2769_v51  ;;  %v2735_v56 = vmul.f32 %v2717_v50, %v2681_v48  ;;  %2927 = vmatmul.mubr.f32.vlgmr.msra.gmra.mrb[54].mxu1 %v4676_v54 }
 0x8aa   : > { %4687 = vtanh.f32 %v2768_v47  ;;  %v2770_v58 = vadd.f32 %v2752_v53, %v2734_v55  ;;  %v2760_v47 = vld [vmem:[%s6637_s16 + $0x80] sm:$0x3] }
 0x8ab   : > { %v4678_v4 = vpop.eup %4677  ;;  %v2771_v45 = vadd.f32 %v2753_v49, %v2735_v56  ;;  %v2685_v5 = vpop.f32.mrb[54].mxu0 }
 0x8ac   : > { %v4680_v7 = vpop.eup %4679  ;;  %v2736_v8 = vmul.f32 %v2718_v57, %v2685_v5  ;;  %v2687_v9 = vpop.f32.mrb[55].mxu0  ;;  %2932 = vmatprep.mubr.f32.mxu1 %v4678_v4 }
 0x8ad   : > { %4689 = vtanh.f32 %v2771_v45  ;;  %v2737_v12 = vmul.f32 %v2719_v62, %v2687_v9  ;;  %2933 = vmatmul.mubr.f32.gmra.mrb[56].mxu1 %v4680_v7 }
 0x8ae   : > { %4691 = vtanh.f32 %v2770_v58  ;;  %v2772_v15 = vadd.f32 %v2754_v6, %v2736_v8 }
 0x8af   : > { %v4682_v18 = vpop.eup %4681  ;;  %v2773_v20 = vadd.f32 %v2755_v11, %v2737_v12  ;;  %v2691_v21 = vpop.f32.mrb[56].mxu0 }
 0x8b0   : > { %v4684_v46 = vpop.eup %4683  ;;  %v2738_v26 = vmul.f32 %v2720_v14, %v2691_v21  ;;  %v2693_v27 = vpop.f32.mrb[57].mxu0  ;;  %2938 = vmatprep.mubr.f32.mxu1 %v4682_v18 }
 0x8b1   : > { %4693 = vtanh.f32 %v2773_v20  ;;  %v2739_v30 = vmul.f32 %v2721_v17, %v2693_v27  ;;  %2939 = vmatmul.mubr.f32.gmra.mrb[58].mxu1 %v4684_v46 }
 0x8b2   : > { %4695 = vtanh.f32 %v2772_v15  ;;  %v2774_v63 = vadd.f32 %v2756_v24, %v2738_v26 }
 0x8b3   : > { %v4686_v34 = vpop.eup %4685  ;;  %v2775_v35 = vadd.f32 %v2757_v29, %v2739_v30  ;;  %v2697_v36 = vpop.f32.mrb[58].mxu0 }
 0x8b4   : > { %v4688_v38 = vpop.eup %4687  ;;  %v2740_v61 = vmul.f32 %v2722_v59, %v2697_v36  ;;  %v2699_v39 = vpop.f32.mrb[59].mxu0  ;;  %2944 = vmatprep.mubr.f32.mxu1 %v4686_v34  ;;  %v3302_v36 = vld [vmem:[%s6642_s21 + $0x80] sm:$0xff] }
 0x8b5   : > { %4697 = vtanh.f32 %v2775_v35  ;;  %v2741_v41 = vmul.f32 %v2723_v33, %v2699_v39  ;;  %2945 = vmatmul.mubr.f32.gmra.mrb[60].mxu1 %v4688_v38  ;;  %v3287_v39 = vld [vmem:[%s6642_s21 + $0x8] sm:$0xff] }
 0x8b6   : > { %4699 = vtanh.f32 %v2774_v63  ;;  %v2776_v10 = vadd.f32 %v2758_v37, %v2740_v61  ;;  %v3303_v37 = vld [vmem:[%s6642_s21 + $0x88] sm:$0xff]  ;;  %v3286_v61 = vld [vmem:[%s6642_s21] sm:$0xff] }
 0x8b7   : > { %v4690_v22 = vpop.eup %4689  ;;  %v2777_v43 = vadd.f32 %v2759_v40, %v2741_v41  ;;  %v2703_v44 = vpop.f32.mrb[60].mxu0  ;;  %v4469_v41 = vpack.c.bf16 %v3303_v37, %v3302_v36  ;;  %v3316_v36 = vld [vmem:[%s6642_s21 + $0xf0] sm:$0xff]  ;;  %v3317_v37 = vld [vmem:[%s6642_s21 + $0xf8] sm:$0xff] }
 0x8b8   : > { %v4692_v50 = vpop.eup %4691  ;;  %2950 = vmatprep.mubr.f32.mxu1 %v4690_v22  ;;  %v2742_v2 = vmul.f32 %v2724_v42, %v2703_v44  ;;  %v2705_v51 = vpop.f32.mrb[61].mxu0  ;;  %v2981_v42 = vld [vmem:[%s6639_s18] sm:$0xff]  ;;  %v2983_v22 = vld [vmem:[%s6639_s18 + $0x10] sm:$0xff] }
 0x8b9   : > { %4701 = vtanh.f32 %v2777_v43  ;;  %2951 = vmatmul.mubr.f32.gmra.mrb[62].mxu1 %v4692_v50  ;;  %v2743_v53 = vmul.f32 %v2725_v60, %v2705_v51  ;;  %v2982_v60 = vld [vmem:[%s6639_s18 + $0x8] sm:$0xff]  ;;  %v2984_v43 = vld [vmem:[%s6639_s18 + $0x18] sm:$0xff]  ;;  %v2985_v44 = vld [vmem:[%s6639_s18 + $0x20] sm:$0xff] }
 0x8ba   : > { %4703 = vtanh.f32 %v2776_v10  ;;  %v2778_v54 = vadd.f32 %v2760_v47, %v2742_v2  ;;  %v4471_v10 = vpack.c.bf16 %v3287_v39, %v3286_v61  ;;  %v2986_v47 = vld [vmem:[%s6639_s18 + $0x28] sm:$0xff]  ;;  %v2987_v50 = vld [vmem:[%s6639_s18 + $0x30] sm:$0xff]  ;;  %v2988_v2 = vld [vmem:[%s6639_s18 + $0x38] sm:$0xff] }
 0x8bb   : > { %v4694_v55 = vpop.eup %4693  ;;  %v2779_v48 = vadd.f32 %v2761_v52, %v2743_v53  ;;  %v2989_v51 = vld [vmem:[%s6639_s18 + $0x40] sm:$0x3]  ;;  %v3304_v52 = vld [vmem:[%s6642_s21 + $0x90] sm:$0xff]  ;;  %v3305_v53 = vld [vmem:[%s6642_s21 + $0x98] sm:$0xff] }
 0x8bc   : > { %v4696_v49 = vpop.eup %4695  ;;  %4705 = vtanh.f32 %v2778_v54  ;;  %2956 = vmatprep.mubr.f32.mxu1 %v4694_v55  ;;  %v4473_v54 = vpack.c.bf16 %v3305_v53, %v3304_v52  ;;  %v3288_v55 = vld [vmem:[%s6642_s21 + $0x10] sm:$0xff]  ;;  %v3301_v39 = vld [vmem:[%s6642_s21 + $0x78] sm:$0xff] }
 0x8bd   : > { %4707 = vtanh.f32 %v2779_v48  ;;  %2957 = vmatmul.mubr.f32.gmra.mrb[64].mxu1 %v4696_v49  ;;  %v3289_v48 = vld [vmem:[%s6642_s21 + $0x18] sm:$0xff]  ;;  %v3300_v61 = vld [vmem:[%s6642_s21 + $0x70] sm:$0xff] }
 0x8be   : > { %v4475_v49 = vpack.c.bf16 %v3289_v48, %v3288_v55 }
 0x8bf   : > { %v4698_v56 = vpop.eup %4697 }
 0x8c0   : > { %v4700_v57 = vpop.eup %4699  ;;  %2962 = vmatprep.mubr.f32.mxu1 %v4698_v56  ;;  %v3306_v56 = vld [vmem:[%s6642_s21 + $0xa0] sm:$0xff] }
 0x8c1   : > { %2963 = vmatmul.mubr.f32.gmra.mrb[66].mxu1 %v4700_v57  ;;  %v3307_v57 = vld [vmem:[%s6642_s21 + $0xa8] sm:$0xff] }
 0x8c3   : > { %v4702_v58 = vpop.eup %4701 }
 0x8c4   : > { %v4704_v62 = vpop.eup %4703  ;;  %2968 = vmatprep.mubr.f32.mxu1 %v4702_v58  ;;  %v4477_v58 = vpack.c.bf16 %v3307_v57, %v3306_v56  ;;  %v3146_v57 = vld [vmem:[%s6640_s19 + $0x20] sm:$0xff] }
 0x8c5   : > { %2969 = vmatmul.mubr.f32.gmra.mrb[68].mxu1 %v4704_v62  ;;  %v3290_v62 = vld [vmem:[%s6642_s21 + $0x20] sm:$0xff] }
 0x8c6   : > { %v4706_v4 = vpop.eup %4705 }
 0x8c7   : > { %v4708_v45 = vpop.eup %4707 }
 0x8c8   : > { %2974 = vmatprep.mubr.f32.mxu1 %v4708_v45 }
 0x8c9   : > { %2975 = vmatmul.mubr.f32.gmra.mrb[70].mxu1 %v4706_v4  ;;  %v3291_v4 = vld [vmem:[%s6642_s21 + $0x28] sm:$0xff] }
 0x8ca   : > { %4240 = vmatprep.mubr.msk.f32.mxu1 %vm4903_vm0, %v4902_v1  ;;  %v4479_v45 = vpack.c.bf16 %v3291_v4, %v3290_v62  ;;  %v3147_v62 = vld [vmem:[%s6640_s19 + $0x28] sm:$0xff] }
 0x97c   : > { %v2928_v5 = vpop.f32.mrb[54].mxu1 }
 0x97d   : > { %v2930_v6 = vpop.f32.mrb[55].mxu1 }
 0x980   : > { %v2934_v7 = vpop.f32.mrb[56].mxu1 }
 0x981   : > { %v4455_v8 = vpack.c.bf16 %v2934_v7, %v2928_v5  ;;  %v2936_v9 = vpop.f32.mrb[57].mxu1  ;;  %v3308_v5 = vld [vmem:[%s6642_s21 + $0xb0] sm:$0xff] }
 0x982   : > { %v4453_v11 = vpack.c.bf16 %v2936_v9, %v2930_v6  ;;  %v3309_v6 = vld [vmem:[%s6642_s21 + $0xb8] sm:$0xff] }
 0x983   : > { %v4481_v7 = vpack.c.bf16 %v3309_v6, %v3308_v5  ;;  %v3293_v9 = vld [vmem:[%s6642_s21 + $0x38] sm:$0xff]  ;;  %v3182_v5 = vld [vmem:[%s6686_s1 + $0x20] sm:$0xff] }
 0x984   : > { %4454 = vmatprep.subr.bf16.mxu0 %v4453_v11  ;;  %v2940_v12 = vpop.f32.mrb[58].mxu1 }
 0x985   : > { %4456 = vmatpush1.bf16.msra.mxu0 %v4455_v8  ;;  %v2942_v14 = vpop.f32.mrb[59].mxu1  ;;  %v3292_v8 = vld [vmem:[%s6642_s21 + $0x30] sm:$0xff] }
 0x986   : > { %v4483_v11 = vpack.c.bf16 %v3293_v9, %v3292_v8  ;;  %v3183_v8 = vld [vmem:[%s6686_s1 + $0x28] sm:$0xff] }
 0x988   : > { %v2946_v15 = vpop.f32.mrb[60].mxu1 }
 0x989   : > { %v4459_v17 = vpack.c.bf16 %v2946_v15, %v2940_v12  ;;  %v2948_v18 = vpop.f32.mrb[61].mxu1  ;;  %v3310_v12 = vld [vmem:[%s6642_s21 + $0xc0] sm:$0xff] }
 0x98a   : > { %v4457_v20 = vpack.c.bf16 %v2948_v18, %v2942_v14  ;;  %v3311_v14 = vld [vmem:[%s6642_s21 + $0xc8] sm:$0xff] }
 0x98b   : > { %v4485_v15 = vpack.c.bf16 %v3311_v14, %v3310_v12  ;;  %v3295_v18 = vld [vmem:[%s6642_s21 + $0x48] sm:$0xff]  ;;  %v3149_v14 = vld [vmem:[%s6640_s19 + $0x38] sm:$0xff] }
 0x98c   : > { %v2952_v21 = vpop.f32.mrb[62].mxu1  ;;  %4458 = vmatprep.subr.bf16.mxu0 %v4457_v20 }
 0x98d   : > { %v2954_v24 = vpop.f32.mrb[63].mxu1  ;;  %4460 = vmatpush1.bf16.msra.mxu0 %v4459_v17  ;;  %v3294_v17 = vld [vmem:[%s6642_s21 + $0x40] sm:$0xff] }
 0x98e   : > { %v4487_v20 = vpack.c.bf16 %v3295_v18, %v3294_v17  ;;  %v3184_v18 = vld [vmem:[%s6686_s1 + $0x30] sm:$0xff] }
 0x990   : > { %v2958_v46 = vpop.f32.mrb[64].mxu1 }
 0x991   : > { %v4463_v26 = vpack.c.bf16 %v2958_v46, %v2952_v21  ;;  %v2960_v27 = vpop.f32.mrb[65].mxu1  ;;  %v3312_v21 = vld [vmem:[%s6642_s21 + $0xd0] sm:$0xff] }
 0x992   : > { %v4461_v29 = vpack.c.bf16 %v2960_v27, %v2954_v24  ;;  %v3313_v24 = vld [vmem:[%s6642_s21 + $0xd8] sm:$0xff] }
 0x993   : > { %v4489_v46 = vpack.c.bf16 %v3313_v24, %v3312_v21  ;;  %v3297_v27 = vld [vmem:[%s6642_s21 + $0x58] sm:$0xff] }
 0x994   : > { %v2964_v30 = vpop.f32.mrb[66].mxu1  ;;  %4462 = vmatprep.subr.bf16.mxu0 %v4461_v29  ;;  %v3185_v24 = vld [vmem:[%s6686_s1 + $0x38] sm:$0xff] }
 0x995   : > { %v2966_v59 = vpop.f32.mrb[67].mxu1  ;;  %4464 = vmatpush1.bf16.msra.mxu0 %v4463_v26  ;;  %v3296_v26 = vld [vmem:[%s6642_s21 + $0x50] sm:$0xff] }
 0x996   : > { %v4491_v29 = vpack.c.bf16 %v3297_v27, %v3296_v26  ;;  %v3150_v26 = vld [vmem:[%s6640_s19 + $0x40] sm:$0xff] }
 0x998   : > { %v2970_v63 = vpop.f32.mrb[68].mxu1 }
 0x999   : > { %v4467_v33 = vpack.c.bf16 %v2970_v63, %v2964_v30  ;;  %v2972_v34 = vpop.f32.mrb[69].mxu1  ;;  %v3314_v30 = vld [vmem:[%s6642_s21 + $0xe0] sm:$0xff] }
 0x99a   : > { %v4465_v35 = vpack.c.bf16 %v2972_v34, %v2966_v59  ;;  %v3315_v59 = vld [vmem:[%s6642_s21 + $0xe8] sm:$0xff] }
 0x99b   : > { %v4493_v63 = vpack.c.bf16 %v3315_v59, %v3314_v30  ;;  %v3299_v34 = vld [vmem:[%s6642_s21 + $0x68] sm:$0xff] }
 0x99c   : > { %4466 = vmatprep.subr.bf16.mxu0 %v4465_v35  ;;  %v2976_v38 = vpop.f32.mrb[70].mxu1  ;;  %v3151_v30 = vld [vmem:[%s6640_s19 + $0x48] sm:$0xff] }
 0x99d   : > { %4468 = vmatpush1.bf16.msra.mxu0 %v4467_v33  ;;  %v2978_v40 = vpop.f32.mrb[71].mxu1  ;;  %v3298_v33 = vld [vmem:[%s6642_s21 + $0x60] sm:$0xff] }
 0x99e   : > { %3829 = vmatprep.subr.msk.mxu0 %vm857_vm1, %v2978_v40  ;;  %v4495_v35 = vpack.c.bf16 %v3299_v34, %v3298_v33  ;;  %v4499_v40 = vpack.c.bf16 %v3301_v39, %v3300_v61  ;;  %v3187_v61 = vld [vmem:[%s6686_s1 + $0x48] sm:$0xff] }
 0x9a1   : > { %3830 = vmatpush1.msk.msra.mxu0 %vm857_vm1, %v2976_v38  ;;  %v4497_v38 = vpack.c.bf16 %v3317_v37, %v3316_v36 }
 0x9a2   : > { %3831 = vmatmul.mubr.msk.f32.vlgmr.msra.gmra.mrb[62].mxu0 %vm829_vm2, %v2981_v42  ;;  %4470 = vmatprep.subr.bf16.mxu0 %v4469_v41  ;;  %v3142_v41 = vld [vmem:[%s6640_s19] sm:$0xff]  ;;  %v3143_v42 = vld [vmem:[%s6640_s19 + $0x8] sm:$0xff] }
 0x9a3   : > { %3093 = vmatprep.mubr.f32.mxu0 %v4902_v1  ;;  %4472 = vmatpush3.bf16.msra.mxu0 %v4471_v10 }
 0x9a4   : > { %4474 = vmatprep.subr.bf16.mxu0 %v4473_v54  ;;  %v3180_v54 = vld [vmem:[%s6686_s1 + $0x10] sm:$0xff] }
 0x9a6   : > { %3832 = vmatmul.mubr.msk.f32.gmra.mrb[64].mxu0 %vm829_vm2, %v2982_v60  ;;  %v3178_v60 = vld [vmem:[%s6686_s1] sm:$0xff] }
 0x9a7   : > { %3099 = vmatprep.mubr.f32.mxu0 %v4902_v1  ;;  %4476 = vmatpush3.bf16.msra.mxu0 %v4475_v49  ;;  %v3181_v49 = vld [vmem:[%s6686_s1 + $0x18] sm:$0xff] }
 0x9a8   : > { %4478 = vmatprep.subr.bf16.mxu0 %v4477_v58 }
 0x9aa   : > { %3833 = vmatmul.mubr.msk.f32.gmra.mrb[66].mxu0 %vm829_vm2, %v2983_v22 }
 0x9ab   : > { %3105 = vmatprep.mubr.f32.mxu0 %v4902_v1  ;;  %4480 = vmatpush3.bf16.msra.mxu0 %v4479_v45 }
 0x9ac   : > { %4482 = vmatprep.subr.bf16.mxu0 %v4481_v7 }
 0x9ae   : > { %3834 = vmatmul.mubr.msk.f32.gmra.mrb[68].mxu0 %vm829_vm2, %v2984_v43 }
 0x9af   : > { %3111 = vmatprep.mubr.f32.mxu0 %v4902_v1  ;;  %4484 = vmatpush3.bf16.msra.mxu0 %v4483_v11  ;;  %v3148_v11 = vld [vmem:[%s6640_s19 + $0x30] sm:$0xff] }
 0x9b0   : > { %4486 = vmatprep.subr.bf16.mxu0 %v4485_v15 }
 0x9b2   : > { %3835 = vmatmul.mubr.msk.f32.gmra.mrb[70].mxu0 %vm829_vm2, %v2985_v44  ;;  %v3179_v44 = vld [vmem:[%s6686_s1 + $0x8] sm:$0xff] }
 0x9b3   : > { %3117 = vmatprep.mubr.f32.mxu0 %v4902_v1  ;;  %4488 = vmatpush3.bf16.msra.mxu0 %v4487_v20 }
 0x9b4   : > { %4490 = vmatprep.subr.bf16.mxu0 %v4489_v46 }
 0x9b6   : > { %3836 = vmatmul.mubr.msk.f32.gmra.mrb[72].mxu0 %vm829_vm2, %v2986_v47 }
 0x9b7   : > { %3123 = vmatprep.mubr.f32.mxu0 %v4902_v1  ;;  %4492 = vmatpush3.bf16.msra.mxu0 %v4491_v29 }
 0x9b8   : > { %4494 = vmatprep.subr.bf16.mxu0 %v4493_v63 }
 0x9ba   : > { %3837 = vmatmul.mubr.msk.f32.gmra.mrb[74].mxu0 %vm829_vm2, %v2987_v50  ;;  %v3144_v50 = vld [vmem:[%s6640_s19 + $0x10] sm:$0xff] }
 0x9bb   : > { %3129 = vmatprep.mubr.f32.mxu0 %v4902_v1  ;;  %4496 = vmatpush3.bf16.msra.mxu0 %v4495_v35  ;;  %v3186_v35 = vld [vmem:[%s6686_s1 + $0x40] sm:$0xff] }
 0x9bc   : > { %4498 = vmatprep.subr.bf16.mxu0 %v4497_v38 }
 0x9be   : > { %3838 = vmatmul.mubr.msk.f32.gmra.mrb[76].mxu0 %vm829_vm2, %v2988_v2 }
 0x9bf   : > { %3135 = vmatprep.mubr.f32.mxu0 %v4902_v1  ;;  %4500 = vmatpush3.bf16.msra.mxu0 %v4499_v40 }
 0x9c2   : > { %3839 = vmatmul.mubr.msk.f32.gmra.mrb[78].mxu0 %vm829_vm2, %v2989_v51  ;;  %v3145_v51 = vld [vmem:[%s6640_s19 + $0x18] sm:$0xff] }
 0xa75   : > { %v3089_v10 = vpop.f32.mrb[62].mxu0 }
 0xa76   : > { %v3160_v22 = vmul.f32 %v3142_v41, %v3089_v10  ;;  %v3091_v43 = vpop.f32.mrb[63].mxu0 }
 0xa77   : > { %v3161_v47 = vmul.f32 %v3143_v42, %v3091_v43  ;;  %v3153_v42 = vld [vmem:[%s6640_s19 + $0x58] sm:$0xff]  ;;  %v3188_v43 = vld [vmem:[%s6686_s1 + $0x50] sm:$0xff] }
 0xa78   : > { %v3196_v2 = vadd.f32 %v3178_v60, %v3160_v22 }
 0xa79   : > { %v3197_v52 = vadd.f32 %v3179_v44, %v3161_v47  ;;  %v3095_v53 = vpop.f32.mrb[64].mxu0  ;;  %v4745_v44 = vld [vmem:[#allocation2 + $0x18] sm:$0xff] }
 0xa7a   : > { %4709 = vtanh.f32 %v3196_v2  ;;  %v3162_v55 = vmul.f32 %v3144_v50, %v3095_v53  ;;  %v3097_v48 = vpop.f32.mrb[65].mxu0 }
 0xa7b   : > { %4711 = vtanh.f32 %v3197_v52  ;;  %v3163_v56 = vmul.f32 %v3145_v51, %v3097_v48  ;;  %v3189_v51 = vld [vmem:[%s6686_s1 + $0x58] sm:$0xff] }
 0xa7c   : > { %v3198_v58 = vadd.f32 %v3180_v54, %v3162_v55  ;;  %v3155_v55 = vld [vmem:[%s6640_s19 + $0x68] sm:$0xff] }
 0xa7d   : > { %v3199_v4 = vadd.f32 %v3181_v49, %v3163_v56  ;;  %v3101_v45 = vpop.f32.mrb[66].mxu0 }
 0xa7e   : > { %4713 = vtanh.f32 %v3198_v58  ;;  %v3164_v6 = vmul.f32 %v3146_v57, %v3101_v45  ;;  %v3103_v7 = vpop.f32.mrb[67].mxu0  ;;  %v3190_v58 = vld [vmem:[%s6686_s1 + $0x60] sm:$0xff] }
 0xa7f   : > { %4715 = vtanh.f32 %v3199_v4  ;;  %v3165_v9 = vmul.f32 %v3147_v62, %v3103_v7  ;;  %v4746_v62 = vld [vmem:[#allocation2 + $0x28] sm:$0xff] }
 0xa80   : > { %v3200_v12 = vadd.f32 %v3182_v5, %v3164_v6  ;;  %v3191_v6 = vld [vmem:[%s6686_s1 + $0x68] sm:$0xff] }
 0xa81   : > { %v3201_v15 = vadd.f32 %v3183_v8, %v3165_v9  ;;  %v3107_v17 = vpop.f32.mrb[68].mxu0 }
 0xa82   : > { %4717 = vtanh.f32 %v3200_v12  ;;  %v3166_v20 = vmul.f32 %v3148_v11, %v3107_v17  ;;  %v3109_v21 = vpop.f32.mrb[69].mxu0  ;;  %v3157_v11 = vld [vmem:[%s6640_s19 + $0x78] sm:$0xff] }
 0xa83   : > { %4719 = vtanh.f32 %v3201_v15  ;;  %v3167_v46 = vmul.f32 %v3149_v14, %v3109_v21 }
 0xa84   : > { %v4710_v27 = vpop.eup %4709  ;;  %v3202_v29 = vadd.f32 %v3184_v18, %v3166_v20  ;;  %v3192_v18 = vld [vmem:[%s6686_s1 + $0x70] sm:$0xff]  ;;  %v4747_v20 = vld [vmem:[#allocation2 + $0x38] sm:$0xff] }
 0xa85   : > { %v4712_v59 = vpop.eup %4711  ;;  %v3232_v63 = vadd.f32 %v4710_v27, %v5891_v13  ;;  %v3203_v33 = vadd.f32 %v3185_v24, %v3167_v46  ;;  %v3113_v34 = vpop.f32.mrb[70].mxu0  ;;  %v3152_v13 = vld [vmem:[%s6640_s19 + $0x50] sm:$0xff] }
 0xa86   : > { %v3233_v36 = vadd.f32 %v4712_v59, %v5446_v31  ;;  %4721 = vtanh.f32 %v3202_v29  ;;  %v3168_v37 = vmul.f32 %v3150_v26, %v3113_v34  ;;  %v3115_v38 = vpop.f32.mrb[71].mxu0  ;;  %v3193_v26 = vld [vmem:[%s6686_s1 + $0x78] sm:$0xff]  ;;  %v3159_v59 = vld [vmem:[%s6640_s19 + $0x88] sm:$0x3] }
 0xa87   : > { %4723 = vtanh.f32 %v3203_v33  ;;  %v3169_v39 = vmul.f32 %v3151_v30, %v3115_v38 }
 0xa88   : > { %v4714_v40 = vpop.eup %4713  ;;  %v3204_v41 = vadd.f32 %v3186_v35, %v3168_v37  ;;  %3382 = vmatprep.mubr.f32.mxu0 %v3233_v36  ;;  %v3194_v36 = vld [vmem:[%s6686_s1 + $0x80] sm:$0x3]  ;;  %v4748_v37 = vld [vmem:[#allocation2 + $0x48] sm:$0xff] }
 0xa89   : > { %v4716_v31 = vpop.eup %4715  ;;  %v3234_v10 = vadd.f32 %v4714_v40, %v5894_v16  ;;  %v3205_v60 = vadd.f32 %v3187_v61, %v3169_v39  ;;  %v3119_v22 = vpop.f32.mrb[72].mxu0  ;;  %3383 = vmatmul.mubr.f32.vlgmr.msra.gmra.mrb[80].mxu0 %v3232_v63  ;;  %v3154_v16 = vld [vmem:[%s6640_s19 + $0x60] sm:$0xff] }
 0xa8a   : > { %v3235_v47 = vadd.f32 %v4745_v44, %v4716_v31  ;;  %4725 = vtanh.f32 %v3204_v41  ;;  %v3170_v50 = vmul.f32 %v3152_v13, %v3119_v22  ;;  %v3121_v2 = vpop.f32.mrb[73].mxu0  ;;  %v3195_v13 = vld [vmem:[%s6686_s1 + $0x88] sm:$0x3]  ;;  %s6590_s1 = scalar_lea.vmem %s6690_s5, %s6689_s30 }
 0xa8b   : > { %4727 = vtanh.f32 %v3205_v60  ;;  %v3171_v52 = vmul.f32 %v3153_v42, %v3121_v2  ;;  %v4749_v60 = vld [vmem:[#allocation2 + $0x58] sm:$0xff] }
 0xa8c   : > { %v4718_v53 = vpop.eup %4717  ;;  %3253 = vst [vmem:[#allocation2 + $0x18] sm:$0xff] %v3235_v47  ;;  %v3206_v54 = vadd.f32 %v3188_v43, %v3170_v50  ;;  %3387 = vmatprep.mubr.f32.mxu0 %v3235_v47  ;;  %v4750_v50 = vld [vmem:[#allocation2 + $0x68] sm:$0xff] }
 0xa8d   : > { %v4720_v48 = vpop.eup %4719  ;;  %v3236_v49 = vadd.f32 %v4718_v53, %v5897_v19  ;;  %v3207_v56 = vadd.f32 %v3189_v51, %v3171_v52  ;;  %v3125_v57 = vpop.f32.mrb[74].mxu0  ;;  %3388 = vmatmul.mubr.f32.gmra.mrb[82].mxu0 %v3234_v10  ;;  %v3156_v19 = vld [vmem:[%s6640_s19 + $0x70] sm:$0xff] }
 0xa8e   : > { %v3237_v4 = vadd.f32 %v4746_v62, %v4720_v48  ;;  %4729 = vtanh.f32 %v3206_v54  ;;  %v3172_v45 = vmul.f32 %v3154_v16, %v3125_v57  ;;  %v3127_v5 = vpop.f32.mrb[75].mxu0  ;;  %v4751_v16 = vld [vmem:[#allocation2 + $0x78] sm:$0xff]  ;;  %v4752_v48 = vld [vmem:[#allocation2 + $0x80] sm:$0x3] }
 0xa8f   : > { %4731 = vtanh.f32 %v3207_v56  ;;  %v3173_v7 = vmul.f32 %v3155_v55, %v3127_v5 }
 0xa90   : > { %v4722_v8 = vpop.eup %4721  ;;  %3255 = vst [vmem:[#allocation2 + $0x28] sm:$0xff] %v3237_v4  ;;  %v3208_v9 = vadd.f32 %v3190_v58, %v3172_v45  ;;  %3392 = vmatprep.mubr.f32.mxu0 %v3237_v4 }
 0xa91   : > { %v4724_v12 = vpop.eup %4723  ;;  %v3238_v14 = vadd.f32 %v4722_v8, %v5900_v23  ;;  %v3209_v15 = vadd.f32 %v3191_v6, %v3173_v7  ;;  %v3131_v17 = vpop.f32.mrb[76].mxu0  ;;  %3393 = vmatmul.mubr.f32.gmra.mrb[84].mxu0 %v3236_v49  ;;  %v3158_v23 = vld [vmem:[%s6640_s19 + $0x80] sm:$0x3] }
 0xa92   : > { %v3239_v21 = vadd.f32 %v4747_v20, %v4724_v12  ;;  %4733 = vtanh.f32 %v3208_v9  ;;  %v3174_v24 = vmul.f32 %v3156_v19, %v3131_v17  ;;  %v3133_v46 = vpop.f32.mrb[77].mxu0 }
 0xa93   : > { %4735 = vtanh.f32 %v3209_v15  ;;  %v3175_v27 = vmul.f32 %v3157_v11, %v3133_v46 }
 0xa94   : > { %v4726_v29 = vpop.eup %4725  ;;  %3257 = vst [vmem:[#allocation2 + $0x38] sm:$0xff] %v3239_v21  ;;  %v3210_v30 = vadd.f32 %v3192_v18, %v3174_v24  ;;  %3397 = vmatprep.mubr.f32.mxu0 %v3239_v21 }
 0xa95   : > { %v4728_v63 = vpop.eup %4727  ;;  %v3240_v33 = vadd.f32 %v4726_v29, %v5903_v25  ;;  %v3211_v34 = vadd.f32 %v3193_v26, %v3175_v27  ;;  %v3137_v35 = vpop.f32.mrb[78].mxu0  ;;  %3398 = vmatmul.mubr.f32.gmra.mrb[86].mxu0 %v3238_v14 }
 0xa96   : > { %v3241_v38 = vadd.f32 %v4748_v37, %v4728_v63  ;;  %4737 = vtanh.f32 %v3210_v30  ;;  %v3176_v61 = vmul.f32 %v3158_v23, %v3137_v35  ;;  %v3139_v39 = vpop.f32.mrb[79].mxu0  ;;  %v3428_v37 = vld [vmem:[%s6687_s22] sm:$0xff] }
 0xa97   : > { %4739 = vtanh.f32 %v3211_v34  ;;  %v3177_v40 = vmul.f32 %v3159_v59, %v3139_v39  ;;  %v3432_v39 = vld [vmem:[%s6687_s22 + $0x20] sm:$0xff] }
 0xa98   : > { %v4730_v41 = vpop.eup %4729  ;;  %3259 = vst [vmem:[#allocation2 + $0x48] sm:$0xff] %v3241_v38  ;;  %v3212_v25 = vadd.f32 %v3194_v36, %v3176_v61  ;;  %3402 = vmatprep.mubr.f32.mxu0 %v3241_v38  ;;  %v3430_v38 = vld [vmem:[%s6687_s22 + $0x10] sm:$0xff]  ;;  %v3431_v61 = vld [vmem:[%s6687_s22 + $0x18] sm:$0xff] }
 0xa99   : > { %v4732_v42 = vpop.eup %4731  ;;  %v3242_v31 = vadd.f32 %v4730_v41, %v5906_v28  ;;  %v3213_v10 = vadd.f32 %v3195_v13, %v3177_v40  ;;  %3403 = vmatmul.mubr.f32.gmra.mrb[88].mxu0 %v3240_v33  ;;  %v3433_v13 = vld [vmem:[%s6687_s22 + $0x28] sm:$0xff]  ;;  %v3434_v40 = vld [vmem:[%s6687_s22 + $0x30] sm:$0xff]  ;;  %v3435_v41 = vld [vmem:[%s6687_s22 + $0x38] sm:$0xff] }
 0xa9a   : > { %v3243_v22 = vadd.f32 %v4749_v60, %v4732_v42  ;;  %4741 = vtanh.f32 %v3212_v25  ;;  %v3436_v25 = vld [vmem:[%s6687_s22 + $0x40] sm:$0x3] }
 0xa9b   : > { %4743 = vtanh.f32 %v3213_v10  ;;  %v3840_v42 = vld [vmem:[%s6688_s23] ss:$0 sm:$0xff] }
 0xa9c   : > { %v4734_v43 = vpop.eup %4733  ;;  %3261 = vst [vmem:[#allocation2 + $0x58] sm:$0xff] %v3243_v22  ;;  %3407 = vmatprep.mubr.f32.mxu0 %v3243_v22 }
 0xa9d   : > { %v4736_v44 = vpop.eup %4735  ;;  %v3244_v47 = vadd.f32 %v4734_v43, %v5909_v3  ;;  %3408 = vmatmul.mubr.f32.gmra.mrb[90].mxu0 %v3242_v31  ;;  %v4753_v3 = vld [vmem:[#allocation2 + $0x88] sm:$0x3] }
 0xa9e   : > { %v3245_v2 = vadd.f32 %v4750_v50, %v4736_v44  ;;  %v4755_v50 = vld [vmem:[%s5190_s26 + $0x8] sm:$0xff] }
 0xaa0   : > { %v4738_v51 = vpop.eup %4737  ;;  %3263 = vst [vmem:[#allocation2 + $0x68] sm:$0xff] %v3245_v2  ;;  %3412 = vmatprep.mubr.f32.mxu0 %v3245_v2 }
 0xaa1   : > { %v4740_v52 = vpop.eup %4739  ;;  %v3246_v28 = vadd.f32 %v4738_v51, %v5912_v32  ;;  %3413 = vmatmul.mubr.f32.gmra.mrb[92].mxu0 %v3244_v47 }
 0xaa2   : > { %v3247_v53 = vadd.f32 %v4751_v16, %v4740_v52  ;;  %v4756_v16 = vld [vmem:[%s5190_s26 + $0x10] sm:$0xff] }
 0xaa4   : > { %v4742_v54 = vpop.eup %4741  ;;  %3265 = vst [vmem:[#allocation2 + $0x78] sm:$0xff] %v3247_v53  ;;  %3417 = vmatprep.mubr.f32.mxu0 %v3247_v53 }
 0xaa5   : > { %v4744_v55 = vpop.eup %4743  ;;  %v3248_v49 = vadd.f32 %v4752_v48, %v4742_v54  ;;  %3418 = vmatmul.mubr.f32.gmra.mrb[94].mxu0 %v3246_v28 }
 0xaa6   : > { %v3249_v56 = vadd.f32 %v4753_v3, %v4744_v55 }
 0xaa7   : > { %3266 = vst [vmem:[#allocation2 + $0x80] sm:$0x3] %v3248_v49  ;;  %v4757_v49 = vld [vmem:[%s5190_s26 + $0x18] sm:$0xff] }
 0xaa8   : > { %3267 = vst [vmem:[#allocation2 + $0x88] sm:$0x3] %v3249_v56 }
 0xaae   : > { %v3284_v58 = vld [vmem:[#allocation2 + $0x80] sm:$0x3] }
 0xaaf   : > { %v3285_v57 = vld [vmem:[#allocation2 + $0x88] sm:$0x3] }
 0xab0   : > { %3422 = vmatprep.mubr.f32.mxu0 %v3285_v57 }
 0xab1   : > { %3423 = vmatmul.mubr.f32.gmra.mrb[96].mxu0 %v3284_v58 }
 0xb5c   : > { %v3965_v62 = vpop.f32.mrb[80].mxu0 }
 0xb5d   : > { %v3966_v32 = vpop.f32.mrb[81].mxu0 }
 0xb5e   : > { %v3967_v4 = vadd.f32 %v3966_v32, %v3965_v62  ;;  %v4758_v62 = vld [vmem:[%s5190_s26 + $0x20] sm:$0xff] }
 0xb60   : > { %v3968_v45 = vpop.f32.mrb[82].mxu0 }
 0xb61   : > { %v3969_v5 = vpop.f32.mrb[83].mxu0 }
 0xb62   : > { %v3970_v6 = vadd.f32 %v3969_v5, %v3968_v45 }
 0xb64   : > { %v4502_v7 = vpack.c.bf16 %v3970_v6, %v3967_v4  ;;  %v3971_v19 = vpop.f32.mrb[84].mxu0  ;;  %v4759_v6 = vld [vmem:[%s5190_s26 + $0x28] sm:$0xff] }
 0xb65   : > { %v3972_v8 = vpop.f32.mrb[85].mxu0 }
 0xb66   : > { %v3973_v9 = vadd.f32 %v3972_v8, %v3971_v19  ;;  %4503 = vmatpush3.bf16.msra.mxu1 %v4502_v7 }
 0xb67   : > { %4504 = vmatprep.subr.bf16.mxu1 %v4901_v0 }
 0xb68   : > { %v3974_v11 = vpop.f32.mrb[86].mxu0 }
 0xb69   : > { %v3975_v12 = vpop.f32.mrb[87].mxu0 }
 0xb6a   : > { %v3976_v14 = vadd.f32 %v3975_v12, %v3974_v11  ;;  %v4760_v11 = vld [vmem:[%s5190_s26 + $0x30] sm:$0xff] }
 0xb6c   : > { %v4505_v15 = vpack.c.bf16 %v3976_v14, %v3973_v9  ;;  %v3977_v17 = vpop.f32.mrb[88].mxu0 }
 0xb6d   : > { %v3978_v18 = vpop.f32.mrb[89].mxu0 }
 0xb6e   : > { %v3979_v20 = vadd.f32 %v3978_v18, %v3977_v17  ;;  %4506 = vmatpush3.bf16.msra.mxu1 %v4505_v15  ;;  %v4761_v18 = vld [vmem:[%s5190_s26 + $0x38] sm:$0xff] }
 0xb6f   : > { %4507 = vmatprep.subr.bf16.mxu1 %v4901_v0 }
 0xb70   : > { %v3980_v21 = vpop.f32.mrb[90].mxu0 }
 0xb71   : > { %v3981_v24 = vpop.f32.mrb[91].mxu0 }
 0xb72   : > { %v3982_v46 = vadd.f32 %v3981_v24, %v3980_v21 }
 0xb74   : > { %v4508_v26 = vpack.c.bf16 %v3982_v46, %v3979_v20  ;;  %v3983_v27 = vpop.f32.mrb[92].mxu0 }
 0xb75   : > { %v3984_v23 = vpop.f32.mrb[93].mxu0 }
 0xb76   : > { %v3985_v29 = vadd.f32 %v3984_v23, %v3983_v27  ;;  %4509 = vmatpush3.bf16.msra.mxu1 %v4508_v26  ;;  %v4762_v26 = vld [vmem:[%s5190_s26 + $0x40] sm:$0x3] }
 0xb77   : > { %4510 = vmatprep.subr.bf16.mxu1 %v4901_v0  ;;  %v3429_v0 = vld [vmem:[%s6687_s22 + $0x8] sm:$0xff] }
 0xb78   : > { %v3986_v30 = vpop.f32.mrb[94].mxu0 }
 0xb79   : > { %v3987_v59 = vpop.f32.mrb[95].mxu0 }
 0xb7a   : > { %v3988_v63 = vadd.f32 %v3987_v59, %v3986_v30 }
 0xb7c   : > { %v4511_v33 = vpack.c.bf16 %v3988_v63, %v3985_v29 }
 0xb7e   : > { %4512 = vmatpush3.bf16.msra.mxu1 %v4511_v33 }
 0xb7f   : > { %4238 = vmatprep.subr.mxu1 %v4902_v1 }
 0xb84   : > { %v3989_v34 = vpop.f32.mrb[96].mxu0 }
 0xb85   : > { %v3990_v35 = vpop.f32.mrb[97].mxu0 }
 0xb86   : > { %v3991_v36 = vadd.f32 %v3990_v35, %v3989_v34 }
 0xb88   : > { %4239 = vmatpush3.msk.msra.mxu1 %vm857_vm1, %v3991_v36 }
 0xb89   : > { %4241 = vmatmul.mubr.msk.f32.vlgmr.msra.gmra.mrb[72].mxu1 %vm829_vm2, %v3428_v37 }
 0xb8a   : > { %4243 = vmatprep.mubr.msk.f32.mxu1 %vm4903_vm0, %v4902_v1 }
 0xb8d   : > { %4244 = vmatmul.mubr.msk.f32.gmra.mrb[74].mxu1 %vm829_vm2, %v3429_v0 }
 0xb8e   : > { %4246 = vmatprep.mubr.msk.f32.mxu1 %vm4903_vm0, %v4902_v1 }
 0xb91   : > { %4247 = vmatmul.mubr.msk.f32.gmra.mrb[76].mxu1 %vm829_vm2, %v3430_v38 }
 0xb92   : > { %4249 = vmatprep.mubr.msk.f32.mxu1 %vm4903_vm0, %v4902_v1 }
 0xb95   : > { %4250 = vmatmul.mubr.msk.f32.gmra.mrb[78].mxu1 %vm829_vm2, %v3431_v61 }
 0xb96   : > { %4252 = vmatprep.mubr.msk.f32.mxu1 %vm4903_vm0, %v4902_v1 }
 0xb99   : > { %4253 = vmatmul.mubr.msk.f32.gmra.mrb[80].mxu1 %vm829_vm2, %v3432_v39 }
 0xb9a   : > { %4255 = vmatprep.mubr.msk.f32.mxu1 %vm4903_vm0, %v4902_v1 }
 0xb9d   : > { %4256 = vmatmul.mubr.msk.f32.gmra.mrb[82].mxu1 %vm829_vm2, %v3433_v13 }
 0xb9e   : > { %4258 = vmatprep.mubr.msk.f32.mxu1 %vm4903_vm0, %v4902_v1 }
 0xba1   : > { %4259 = vmatmul.mubr.msk.f32.gmra.mrb[84].mxu1 %vm829_vm2, %v3434_v40 }
 0xba2   : > { %4261 = vmatprep.mubr.msk.f32.mxu1 %vm4903_vm0, %v4902_v1 }
 0xba5   : > { %4262 = vmatmul.mubr.msk.f32.gmra.mrb[86].mxu1 %vm829_vm2, %v3435_v41 }
 0xba6   : > { %4264 = vmatprep.mubr.msk.f32.mxu1 %vm4903_vm0, %v4902_v1  ;;  %v4754_v1 = vld [vmem:[%s5190_s26] sm:$0xff]  ;;  %vm3601_vm0 = vcmask 58368  }
 0xba9   : > { %4265 = vmatmul.mubr.msk.f32.gmra.mrb[88].mxu1 %vm829_vm2, %v3436_v25 }
 0xc5c   : > { %v3540_v31 = vpop.f32.mrb[72].mxu1 }
 0xc5d   : > { %v3541_v10 = vadd.f32 %v3840_v42, %v3540_v31  ;;  %v4242_v60 = vpop.f32.mrb[73].mxu1 }
 0xc5f   : > { %v3584_v22 = vadd.f32 %v4754_v1, %v3541_v10 }
 0xc60   : > { %v3545_v43 = vpop.f32.mrb[74].mxu1 }
 0xc61   : > { %3593 = vst.msk [vmem:[%s6590_s1] sm:$0xff] %vm972_vm3, %v3584_v22  ;;  %v3546_v44 = vadd.f32 %v3840_v42, %v3545_v43  ;;  %v4245_v47 = vpop.f32.mrb[75].mxu1 }
 0xc63   : > { %v3585_v2 = vadd.f32 %v4755_v50, %v3546_v44 }
 0xc64   : > { %v3550_v51 = vpop.f32.mrb[76].mxu1 }
 0xc65   : > { %3594 = vst.msk [vmem:[%s6590_s1 + $0x8] sm:$0xff] %vm972_vm3, %v3585_v2  ;;  %v3551_v52 = vadd.f32 %v3840_v42, %v3550_v51  ;;  %v4248_v28 = vpop.f32.mrb[77].mxu1 }
 0xc67   : > { %v3586_v53 = vadd.f32 %v4756_v16, %v3551_v52 }
 0xc68   : > { %v3555_v54 = vpop.f32.mrb[78].mxu1 }
 0xc69   : > { %3595 = vst.msk [vmem:[%s6590_s1 + $0x10] sm:$0xff] %vm972_vm3, %v3586_v53  ;;  %v3556_v55 = vadd.f32 %v3840_v42, %v3555_v54  ;;  %v4251_v48 = vpop.f32.mrb[79].mxu1 }
 0xc6b   : > { %v3587_v3 = vadd.f32 %v4757_v49, %v3556_v55 }
 0xc6c   : > { %v3560_v56 = vpop.f32.mrb[80].mxu1 }
 0xc6d   : > { %3596 = vst.msk [vmem:[%s6590_s1 + $0x18] sm:$0xff] %vm972_vm3, %v3587_v3  ;;  %v3561_v57 = vadd.f32 %v3840_v42, %v3560_v56  ;;  %v4254_v58 = vpop.f32.mrb[81].mxu1 }
 0xc6f   : > { %v3588_v32 = vadd.f32 %v4758_v62, %v3561_v57 }
 0xc70   : > { %v3565_v4 = vpop.f32.mrb[82].mxu1 }
 0xc71   : > { %3597 = vst.msk [vmem:[%s6590_s1 + $0x20] sm:$0xff] %vm972_vm3, %v3588_v32  ;;  %v3566_v45 = vadd.f32 %v3840_v42, %v3565_v4  ;;  %v4257_v5 = vpop.f32.mrb[83].mxu1 }
 0xc73   : > { %v3589_v7 = vadd.f32 %v4759_v6, %v3566_v45 }
 0xc74   : > { %v3570_v19 = vpop.f32.mrb[84].mxu1 }
 0xc75   : > { %3598 = vst.msk [vmem:[%s6590_s1 + $0x28] sm:$0xff] %vm972_vm3, %v3589_v7  ;;  %v3571_v8 = vadd.f32 %v3840_v42, %v3570_v19  ;;  %v4260_v9 = vpop.f32.mrb[85].mxu1 }
 0xc77   : > { %v3590_v12 = vadd.f32 %v4760_v11, %v3571_v8 }
 0xc78   : > { %v3575_v14 = vpop.f32.mrb[86].mxu1 }
 0xc79   : > { %3599 = vst.msk [vmem:[%s6590_s1 + $0x30] sm:$0xff] %vm972_vm3, %v3590_v12  ;;  %v3576_v15 = vadd.f32 %v3840_v42, %v3575_v14  ;;  %v4263_v17 = vpop.f32.mrb[87].mxu1 }
 0xc7b   : > { %v3591_v20 = vadd.f32 %v4761_v18, %v3576_v15 }
 0xc7c   : > { %v3580_v21 = vpop.f32.mrb[88].mxu1 }
 0xc7d   : > { %3600 = vst.msk [vmem:[%s6590_s1 + $0x38] sm:$0xff] %vm972_vm3, %v3591_v20  ;;  %v3581_v24 = vadd.f32 %v3840_v42, %v3580_v21  ;;  %v4266_v46 = vpop.f32.mrb[89].mxu1 }
 0xc7f   : > { %v3592_v27 = vadd.f32 %v4762_v26, %v3581_v24 }
 0xc81   : > { %3602 = vst.msk [vmem:[%s6590_s1 + $0x40] sm:$0x3] %vm3601_vm0, %v3592_v27 }
 0xc82 PF: > { %s6691_s28 = sld [smem:[#allocation13_spill]] }
 0xc88   : > { %s37_s5 = sadd.s32 1, %s6691_s28  }
 0xc89   : > { %p34_p2 = scmp.ge.s32.totalorder %s37_s5, 4  }
 0xc8b   :  { %36 = sbr.rel (!%p34_p2) target bundleno = 17 (0x11), region = 168 }
 0xc92   :  { %3624 = vsyncpa [#allocation4], 1 }
 0xc93   :  { %3626 = vsyncpa [#allocation4 + $0x1], 1 }
 0xc94   :  { %3627 = vsyncpa [#allocation6], 1 }
 0xc95   :  { %3628 = vsyncpa [#allocation9], 1 }

</bundles_post_ra>
